<compile_context>
chip_gen: v7x
topology: tpu7x:2x2x1
jax: 0.10.0
libtpu: 0.0.40
codegen_flags: <defaults>
</compile_context>

<pallas_src>
import jax
import jax.numpy as jnp
from jax.experimental import pallas as pl
from jax.experimental.pallas import tpu as pltpu

# ---- small synthetic config (stands in for real LaBSE/BERT sizes) ----------
SEQ = 8              # module hardcodes MAX_LEN = 130; small stand-in (mult of 8)
VOCAB = 64           # stands in for ~501K; table stays in HBM and is row-gathered
TYPE_VOCAB = 2
HIDDEN = 256         # lane-dense (>= 128)
NUM_HEADS = 2
HEAD_DIM = HIDDEN // NUM_HEADS   # = 128 -> head slices are lane-tile aligned
INTERMEDIATE = 512
NUM_LAYERS = 2
LN_EPS = 1e-12

assert HIDDEN == NUM_HEADS * HEAD_DIM and HEAD_DIM == 128


# ----------------------------- kernel helpers -------------------------------
def _layer_norm(x, gb):
    # gb is (2, H): row 0 = gamma, row 1 = beta.  f32 math.
    g = gb[0:1, :]
    b = gb[1:2, :]
    mu = jnp.mean(x, axis=-1, keepdims=True)
    var = jnp.mean(jnp.square(x - mu), axis=-1, keepdims=True)
    return (x - mu) * jax.lax.rsqrt(var + LN_EPS) * g + b


def _gelu(x):
    # TODO(synk): HF BERT/LaBSE uses exact erf GELU; tanh approximation used
    # here (EUP-friendly), expect tiny numerical deviation.
    return 0.5 * x * (1.0 + jnp.tanh(0.7978845608028654 * (x + 0.044715 * x * x * x)))


# ------------------------------- fused kernel --------------------------------
def labse_kernel(
    ids_ref, tids_ref, len_ref,                 # scalar prefetch (SMEM)
    word_hbm,                                   # word embedding table in HBM (pl.ANY)
    type_ref, pos_ref, embln_ref,               # small tables resident in VMEM
    wqkv_ref, bqkv_ref, wo_ref, bo_ref, ln1_ref,
    w1_ref, b1_ref, w2_ref, b2_ref, ln2_ref,
    out_ref,
    wbuf, tbuf, sem,                            # VMEM scratch + DMA semaphores
):
    b = pl.program_id(0)

    # ---- word embedding lookup: per-token row DMA gather from HBM ----------
    # All SEQ copies are issued before any wait so they fly concurrently.
    copies = []
    for i in range(SEQ):                        # static unrolled, SEQ is small
        tok = ids_ref[b, i]
        cw = pltpu.make_async_copy(word_hbm.at[pl.ds(tok, 1)],
                                   wbuf.at[pl.ds(i, 1)], sem.at[i])
        cw.start()
        copies.append(cw)

    # ---- work that hides the DMA latency ------------------------------------
    # type-embedding gather from the tiny VMEM table (dynamic leading-axis idx)
    for i in range(SEQ):
        tt = tids_ref[b, i]
        tbuf[pl.ds(i, 1), :] = type_ref[tt]                 # (1, H)

    # additive attention mask recomputed from sequence length
    # (tokenizer uses padding='max_length' => mask is contiguous 1s then 0s)
    length = len_ref[b]
    key_pos = jax.lax.broadcasted_iota(jnp.int32, (1, SEQ), 1)
    neg_mask = jnp.where(key_pos < length, 0.0, -1e9)       # (1, S) f32

    for cw in copies:
        cw.wait()

    # ---- embeddings + LayerNorm ---------------------------------------------
    x = wbuf[...] + tbuf[...] + pos_ref[...]                # (S, H) f32
    x = _layer_norm(x, embln_ref[...])

    scale = 1.0 / float(HEAD_DIM) ** 0.5

    # ---- transformer layers (all fused; weights resident in VMEM) ----------
    for l in range(NUM_LAYERS):
        # fused QKV projection: one bf16 MXU pass, f32 accumulation
        qkv = jnp.dot(x.astype(jnp.bfloat16), wqkv_ref[l],
                      preferred_element_type=jnp.float32) + bqkv_ref[l]

        # per-head attention: 2-D dots, lane-aligned 128-wide slices,
        # contraction on HEAD_DIM (no explicit transposes / 3-D stacks)
        ctx_parts = []
        for n in range(NUM_HEADS):
            qh = qkv[:, n * HEAD_DIM:(n + 1) * HEAD_DIM].astype(jnp.bfloat16)
            kh = qkv[:, HIDDEN + n * HEAD_DIM:
                        HIDDEN + (n + 1) * HEAD_DIM].astype(jnp.bfloat16)
            vh = qkv[:, 2 * HIDDEN + n * HEAD_DIM:
                        2 * HIDDEN + (n + 1) * HEAD_DIM].astype(jnp.bfloat16)

            s = jax.lax.dot_general(qh, kh, (((1,), (1,)), ((), ())),
                                    preferred_element_type=jnp.float32)
            s = s * scale + neg_mask                         # (S, S) f32
            s = s - jnp.max(s, axis=-1, keepdims=True)
            p = jnp.exp(s)
            p = p * pl.reciprocal(jnp.sum(p, axis=-1, keepdims=True), approx=True)
            ctx_parts.append(jnp.dot(p.astype(jnp.bfloat16), vh,
                                     preferred_element_type=jnp.float32))
        ctx = jnp.concatenate(ctx_parts, axis=-1)            # (S, H) f32

        attn = jnp.dot(ctx.astype(jnp.bfloat16), wo_ref[l],
                       preferred_element_type=jnp.float32) + bo_ref[l]
        h1 = _layer_norm(x + attn, ln1_ref[l])

        ffn = jnp.dot(h1.astype(jnp.bfloat16), w1_ref[l],
                      preferred_element_type=jnp.float32) + b1_ref[l]
        ffn = _gelu(ffn)
        ffn = jnp.dot(ffn.astype(jnp.bfloat16), w2_ref[l],
                      preferred_element_type=jnp.float32) + b2_ref[l]
        x = _layer_norm(h1 + ffn, ln2_ref[l])

    # ---- pooling: last_hidden_state[:, 1:-1, :].sum(dim=1), then F.normalize
    # (matches the PyTorch code: unconditional sum over positions 1..S-2,
    #  padded positions included, eps = 1e-12)
    pooled = jnp.sum(x[1:SEQ - 1, :], axis=0, keepdims=True)        # (1, H)
    norm = jnp.sqrt(jnp.sum(pooled * pooled, axis=-1, keepdims=True))
    out_ref[0] = pooled / jnp.maximum(norm, 1e-12)


# ------------------------------- wrapper --------------------------------------
def run_labse_encoder(input_ids, token_type_ids, attention_mask, params):
    B, S = input_ids.shape
    assert S == SEQ
    lengths = jnp.sum(attention_mask.astype(jnp.int32), axis=1)     # (B,)

    def full(shape):
        return pl.BlockSpec(shape, lambda b, *_: (0,) * len(shape))

    grid_spec = pltpu.PrefetchScalarGridSpec(
        num_scalar_prefetch=3,                 # ids, type ids, lengths -> SMEM
        grid=(B,),
        in_specs=[
            pl.BlockSpec(memory_space=pl.ANY),          # word embedding table (HBM)
            full((TYPE_VOCAB, 1, HIDDEN)),              # type embedding table (VMEM)
            full((SEQ, HIDDEN)),                        # position embeddings
            full((2, HIDDEN)),                          # embedding LN gamma/beta
            full((NUM_LAYERS, HIDDEN, 3 * HIDDEN)),     # fused wqkv
            full((NUM_LAYERS, 1, 3 * HIDDEN)),          # fused bqkv
            full((NUM_LAYERS, HIDDEN, HIDDEN)),         # wo
            full((NUM_LAYERS, 1, HIDDEN)),              # bo
            full((NUM_LAYERS, 2, HIDDEN)),              # ln1 gamma/beta
            full((NUM_LAYERS, HIDDEN, INTERMEDIATE)),   # w1
            full((NUM_LAYERS, 1, INTERMEDIATE)),        # b1
            full((NUM_LAYERS, INTERMEDIATE, HIDDEN)),   # w2
            full((NUM_LAYERS, 1, HIDDEN)),              # b2
            full((NUM_LAYERS, 2, HIDDEN)),              # ln2 gamma/beta
        ],
        out_specs=pl.BlockSpec((1, 1, HIDDEN), lambda b, *_: (b, 0, 0)),
        scratch_shapes=[
            pltpu.VMEM((SEQ, HIDDEN), jnp.float32),     # gathered word rows
            pltpu.VMEM((SEQ, HIDDEN), jnp.float32),     # gathered type rows
            pltpu.SemaphoreType.DMA((SEQ,)),
        ],
    )

    out = pl.pallas_call(
        labse_kernel,
        out_shape=jax.ShapeDtypeStruct((B, 1, HIDDEN), jnp.float32),
        grid_spec=grid_spec,
        compiler_params=pltpu.CompilerParams(
            dimension_semantics=("parallel",),          # batch rows independent
        ),
    )(input_ids.astype(jnp.int32), token_type_ids.astype(jnp.int32),
      lengths.astype(jnp.int32),
      params["word_emb"],
      params["type_emb"].reshape(TYPE_VOCAB, 1, HIDDEN),
      params["pos_emb"], params["emb_ln"],
      params["wqkv"], params["bqkv"], params["wo"], params["bo"], params["ln1"],
      params["w1"], params["b1"], params["w2"], params["b2"], params["ln2"])
    return out[:, 0, :]


# ------------------------------ parameters ------------------------------------
def init_params(key):
    keys = jax.random.split(key, 8)

    def nrm(k, shape, dtype=jnp.float32):
        return (0.02 * jax.random.normal(k, shape, jnp.float32)).astype(dtype)

    def ln_params(*lead):
        return jnp.concatenate(
            [jnp.ones(lead + (1, HIDDEN), jnp.float32),
             jnp.zeros(lead + (1, HIDDEN), jnp.float32)],
            axis=len(lead))

    return {
        # embedding tables stay in f32 (word table row-gathered from HBM)
        "word_emb": nrm(keys[0], (VOCAB, HIDDEN)),
        "type_emb": nrm(keys[1], (TYPE_VOCAB, HIDDEN)),
        "pos_emb": nrm(keys[2], (SEQ, HIDDEN)),
        "emb_ln": ln_params(),
        # matmul weights in bf16 (MXU inputs), biases / LN params in f32
        "wqkv": nrm(keys[3], (NUM_LAYERS, HIDDEN, 3 * HIDDEN), jnp.bfloat16),
        "bqkv": jnp.zeros((NUM_LAYERS, 1, 3 * HIDDEN), jnp.float32),
        "wo": nrm(keys[4], (NUM_LAYERS, HIDDEN, HIDDEN), jnp.bfloat16),
        "bo": jnp.zeros((NUM_LAYERS, 1, HIDDEN), jnp.float32),
        "ln1": ln_params(NUM_LAYERS),
        "w1": nrm(keys[5], (NUM_LAYERS, HIDDEN, INTERMEDIATE), jnp.bfloat16),
        "b1": jnp.zeros((NUM_LAYERS, 1, INTERMEDIATE), jnp.float32),
        "w2": nrm(keys[6], (NUM_LAYERS, INTERMEDIATE, HIDDEN), jnp.bfloat16),
        "b2": jnp.zeros((NUM_LAYERS, 1, HIDDEN), jnp.float32),
        "ln2": ln_params(NUM_LAYERS),
    }


if __name__ == "__main__":
    key = jax.random.PRNGKey(0)
    pkey, ikey = jax.random.split(key)
    params = init_params(pkey)

    B = 2
    input_ids = jax.random.randint(ikey, (B, SEQ), 0, VOCAB, dtype=jnp.int32)
    token_type_ids = jnp.zeros((B, SEQ), jnp.int32)
    attention_mask = jnp.concatenate(
        [jnp.ones((B, SEQ - 2), jnp.int32), jnp.zeros((B, 2), jnp.int32)], axis=1)

    out = run_labse_encoder(input_ids, token_type_ids, attention_mask, params)
    jax.block_until_ready(out)
    assert out.shape == (B, HIDDEN) and out.dtype == jnp.float32
    assert bool(jnp.all(jnp.isfinite(out)))
    # output rows must be unit L2 norm (F.normalize semantics)
    norms = jnp.sqrt(jnp.sum(out * out, axis=-1))
    assert bool(jnp.all(jnp.abs(norms - 1.0) < 1e-3))
    print("KERNEL_OK")
</pallas_src>

<mosaic_0001>
module attributes {stable_mosaic.version = 11 : i64} {
  func.func @labse_kernel(%arg0: i32, %arg1: memref<2x8xi32, #tpu.memory_space<smem>>, %arg2: memref<2x8xi32, #tpu.memory_space<smem>>, %arg3: memref<2xi32, #tpu.memory_space<smem>>, %arg4: memref<64x256xf32, #tpu.memory_space<any>>, %arg5: memref<2x1x256xf32, #tpu.memory_space<vmem>>, %arg6: memref<8x256xf32, #tpu.memory_space<vmem>>, %arg7: memref<2x256xf32, #tpu.memory_space<vmem>>, %arg8: memref<2x256x768xbf16, #tpu.memory_space<vmem>>, %arg9: memref<2x1x768xf32, #tpu.memory_space<vmem>>, %arg10: memref<2x256x256xbf16, #tpu.memory_space<vmem>>, %arg11: memref<2x1x256xf32, #tpu.memory_space<vmem>>, %arg12: memref<2x2x256xf32, #tpu.memory_space<vmem>>, %arg13: memref<2x256x512xbf16, #tpu.memory_space<vmem>>, %arg14: memref<2x1x512xf32, #tpu.memory_space<vmem>>, %arg15: memref<2x512x256xbf16, #tpu.memory_space<vmem>>, %arg16: memref<2x1x256xf32, #tpu.memory_space<vmem>>, %arg17: memref<2x2x256xf32, #tpu.memory_space<vmem>>, %arg18: memref<1x1x256xf32, #tpu.memory_space<vmem>>, %arg19: memref<8x256xf32, #tpu.memory_space<vmem>>, %arg20: memref<8x256xf32, #tpu.memory_space<vmem>>, %arg21: memref<8x!tpu.dma_semaphore, #tpu.memory_space<semaphore_mem>>) attributes {dimension_semantics = [#tpu.dimension_semantics<parallel>], iteration_bounds = array<i64: 2>, scalar_prefetch = 3 : i64, scratch_operands = 3 : i64, tpu.core_type = #tpu.core_type<tc>, window_params = [{}, {pipeline_mode = #tpu.pipeline_mode<synchronous>, transform_indices = @transform_1, window_bounds = array<i64: 2, 1, 256>}, {pipeline_mode = #tpu.pipeline_mode<synchronous>, transform_indices = @transform_2, window_bounds = array<i64: 8, 256>}, {pipeline_mode = #tpu.pipeline_mode<synchronous>, transform_indices = @transform_3, window_bounds = array<i64: 2, 256>}, {pipeline_mode = #tpu.pipeline_mode<synchronous>, transform_indices = @transform_4, window_bounds = array<i64: 2, 256, 768>}, {pipeline_mode = #tpu.pipeline_mode<synchronous>, transform_indices = @transform_5, window_bounds = array<i64: 2, 1, 768>}, {pipeline_mode = #tpu.pipeline_mode<synchronous>, transform_indices = @transform_6, window_bounds = array<i64: 2, 256, 256>}, {pipeline_mode = #tpu.pipeline_mode<synchronous>, transform_indices = @transform_7, window_bounds = array<i64: 2, 1, 256>}, {pipeline_mode = #tpu.pipeline_mode<synchronous>, transform_indices = @transform_8, window_bounds = array<i64: 2, 2, 256>}, {pipeline_mode = #tpu.pipeline_mode<synchronous>, transform_indices = @transform_9, window_bounds = array<i64: 2, 256, 512>}, {pipeline_mode = #tpu.pipeline_mode<synchronous>, transform_indices = @transform_10, window_bounds = array<i64: 2, 1, 512>}, {pipeline_mode = #tpu.pipeline_mode<synchronous>, transform_indices = @transform_11, window_bounds = array<i64: 2, 512, 256>}, {pipeline_mode = #tpu.pipeline_mode<synchronous>, transform_indices = @transform_12, window_bounds = array<i64: 2, 1, 256>}, {pipeline_mode = #tpu.pipeline_mode<synchronous>, transform_indices = @transform_13, window_bounds = array<i64: 2, 2, 256>}, {transform_indices = @transform_14, window_bounds = array<i64: 1, 1, 256>}]} {
    %0 = arith.index_cast %arg0 : i32 to index
    %c0 = arith.constant 0 : index
    %1 = memref.load %arg1[%0, %c0] : memref<2x8xi32, #tpu.memory_space<smem>>
    %c0_i32 = arith.constant 0 : i32
    %c0_i32_0 = arith.constant 0 : i32
    %2 = tpu.memref_slice %arg4[%1, %c0_i32_0] : memref<64x256xf32, #tpu.memory_space<any>> -> memref<1x256xf32, #tpu.memory_space<any>>
    %c0_i32_1 = arith.constant 0 : i32
    %c0_i32_2 = arith.constant 0 : i32
    %3 = tpu.memref_slice %arg19[%c0_i32_1, %c0_i32_2] : memref<8x256xf32, #tpu.memory_space<vmem>> -> memref<1x256xf32, #tpu.memory_space<vmem>>
    %4 = tpu.memref_slice %arg21[%c0_i32] : memref<8x!tpu.dma_semaphore, #tpu.memory_space<semaphore_mem>> -> memref<1x!tpu.dma_semaphore, #tpu.memory_space<semaphore_mem>>
    %5 = tpu.memref_squeeze %4 : memref<1x!tpu.dma_semaphore, #tpu.memory_space<semaphore_mem>> -> memref<!tpu.dma_semaphore, #tpu.memory_space<semaphore_mem>>
    tpu.enqueue_dma source(%2 : memref<1x256xf32, #tpu.memory_space<any>>) target(%3 : memref<1x256xf32, #tpu.memory_space<vmem>>) target_semaphore(%5 : memref<!tpu.dma_semaphore, #tpu.memory_space<semaphore_mem>>)
    %6 = arith.index_cast %arg0 : i32 to index
    %c1 = arith.constant 1 : index
    %7 = memref.load %arg1[%6, %c1] : memref<2x8xi32, #tpu.memory_space<smem>>
    %c1_i32 = arith.constant 1 : i32
    %c0_i32_3 = arith.constant 0 : i32
    %8 = tpu.memref_slice %arg4[%7, %c0_i32_3] : memref<64x256xf32, #tpu.memory_space<any>> -> memref<1x256xf32, #tpu.memory_space<any>>
    %c1_i32_4 = arith.constant 1 : i32
    %c0_i32_5 = arith.constant 0 : i32
    %9 = tpu.memref_slice %arg19[%c1_i32_4, %c0_i32_5] : memref<8x256xf32, #tpu.memory_space<vmem>> -> memref<1x256xf32, #tpu.memory_space<vmem>>
    %10 = tpu.memref_slice %arg21[%c1_i32] : memref<8x!tpu.dma_semaphore, #tpu.memory_space<semaphore_mem>> -> memref<1x!tpu.dma_semaphore, #tpu.memory_space<semaphore_mem>>
    %11 = tpu.memref_squeeze %10 : memref<1x!tpu.dma_semaphore, #tpu.memory_space<semaphore_mem>> -> memref<!tpu.dma_semaphore, #tpu.memory_space<semaphore_mem>>
    tpu.enqueue_dma source(%8 : memref<1x256xf32, #tpu.memory_space<any>>) target(%9 : memref<1x256xf32, #tpu.memory_space<vmem>>) target_semaphore(%11 : memref<!tpu.dma_semaphore, #tpu.memory_space<semaphore_mem>>)
    %12 = arith.index_cast %arg0 : i32 to index
    %c2 = arith.constant 2 : index
    %13 = memref.load %arg1[%12, %c2] : memref<2x8xi32, #tpu.memory_space<smem>>
    %c2_i32 = arith.constant 2 : i32
    %c0_i32_6 = arith.constant 0 : i32
    %14 = tpu.memref_slice %arg4[%13, %c0_i32_6] : memref<64x256xf32, #tpu.memory_space<any>> -> memref<1x256xf32, #tpu.memory_space<any>>
    %c2_i32_7 = arith.constant 2 : i32
    %c0_i32_8 = arith.constant 0 : i32
    %15 = tpu.memref_slice %arg19[%c2_i32_7, %c0_i32_8] : memref<8x256xf32, #tpu.memory_space<vmem>> -> memref<1x256xf32, #tpu.memory_space<vmem>>
    %16 = tpu.memref_slice %arg21[%c2_i32] : memref<8x!tpu.dma_semaphore, #tpu.memory_space<semaphore_mem>> -> memref<1x!tpu.dma_semaphore, #tpu.memory_space<semaphore_mem>>
    %17 = tpu.memref_squeeze %16 : memref<1x!tpu.dma_semaphore, #tpu.memory_space<semaphore_mem>> -> memref<!tpu.dma_semaphore, #tpu.memory_space<semaphore_mem>>
    tpu.enqueue_dma source(%14 : memref<1x256xf32, #tpu.memory_space<any>>) target(%15 : memref<1x256xf32, #tpu.memory_space<vmem>>) target_semaphore(%17 : memref<!tpu.dma_semaphore, #tpu.memory_space<semaphore_mem>>)
    %18 = arith.index_cast %arg0 : i32 to index
    %c3 = arith.constant 3 : index
    %19 = memref.load %arg1[%18, %c3] : memref<2x8xi32, #tpu.memory_space<smem>>
    %c3_i32 = arith.constant 3 : i32
    %c0_i32_9 = arith.constant 0 : i32
    %20 = tpu.memref_slice %arg4[%19, %c0_i32_9] : memref<64x256xf32, #tpu.memory_space<any>> -> memref<1x256xf32, #tpu.memory_space<any>>
    %c3_i32_10 = arith.constant 3 : i32
    %c0_i32_11 = arith.constant 0 : i32
    %21 = tpu.memref_slice %arg19[%c3_i32_10, %c0_i32_11] : memref<8x256xf32, #tpu.memory_space<vmem>> -> memref<1x256xf32, #tpu.memory_space<vmem>>
    %22 = tpu.memref_slice %arg21[%c3_i32] : memref<8x!tpu.dma_semaphore, #tpu.memory_space<semaphore_mem>> -> memref<1x!tpu.dma_semaphore, #tpu.memory_space<semaphore_mem>>
    %23 = tpu.memref_squeeze %22 : memref<1x!tpu.dma_semaphore, #tpu.memory_space<semaphore_mem>> -> memref<!tpu.dma_semaphore, #tpu.memory_space<semaphore_mem>>
    tpu.enqueue_dma source(%20 : memref<1x256xf32, #tpu.memory_space<any>>) target(%21 : memref<1x256xf32, #tpu.memory_space<vmem>>) target_semaphore(%23 : memref<!tpu.dma_semaphore, #tpu.memory_space<semaphore_mem>>)
    %24 = arith.index_cast %arg0 : i32 to index
    %c4 = arith.constant 4 : index
    %25 = memref.load %arg1[%24, %c4] : memref<2x8xi32, #tpu.memory_space<smem>>
    %c4_i32 = arith.constant 4 : i32
    %c0_i32_12 = arith.constant 0 : i32
    %26 = tpu.memref_slice %arg4[%25, %c0_i32_12] : memref<64x256xf32, #tpu.memory_space<any>> -> memref<1x256xf32, #tpu.memory_space<any>>
    %c4_i32_13 = arith.constant 4 : i32
    %c0_i32_14 = arith.constant 0 : i32
    %27 = tpu.memref_slice %arg19[%c4_i32_13, %c0_i32_14] : memref<8x256xf32, #tpu.memory_space<vmem>> -> memref<1x256xf32, #tpu.memory_space<vmem>>
    %28 = tpu.memref_slice %arg21[%c4_i32] : memref<8x!tpu.dma_semaphore, #tpu.memory_space<semaphore_mem>> -> memref<1x!tpu.dma_semaphore, #tpu.memory_space<semaphore_mem>>
    %29 = tpu.memref_squeeze %28 : memref<1x!tpu.dma_semaphore, #tpu.memory_space<semaphore_mem>> -> memref<!tpu.dma_semaphore, #tpu.memory_space<semaphore_mem>>
    tpu.enqueue_dma source(%26 : memref<1x256xf32, #tpu.memory_space<any>>) target(%27 : memref<1x256xf32, #tpu.memory_space<vmem>>) target_semaphore(%29 : memref<!tpu.dma_semaphore, #tpu.memory_space<semaphore_mem>>)
    %30 = arith.index_cast %arg0 : i32 to index
    %c5 = arith.constant 5 : index
    %31 = memref.load %arg1[%30, %c5] : memref<2x8xi32, #tpu.memory_space<smem>>
    %c5_i32 = arith.constant 5 : i32
    %c0_i32_15 = arith.constant 0 : i32
    %32 = tpu.memref_slice %arg4[%31, %c0_i32_15] : memref<64x256xf32, #tpu.memory_space<any>> -> memref<1x256xf32, #tpu.memory_space<any>>
    %c5_i32_16 = arith.constant 5 : i32
    %c0_i32_17 = arith.constant 0 : i32
    %33 = tpu.memref_slice %arg19[%c5_i32_16, %c0_i32_17] : memref<8x256xf32, #tpu.memory_space<vmem>> -> memref<1x256xf32, #tpu.memory_space<vmem>>
    %34 = tpu.memref_slice %arg21[%c5_i32] : memref<8x!tpu.dma_semaphore, #tpu.memory_space<semaphore_mem>> -> memref<1x!tpu.dma_semaphore, #tpu.memory_space<semaphore_mem>>
    %35 = tpu.memref_squeeze %34 : memref<1x!tpu.dma_semaphore, #tpu.memory_space<semaphore_mem>> -> memref<!tpu.dma_semaphore, #tpu.memory_space<semaphore_mem>>
    tpu.enqueue_dma source(%32 : memref<1x256xf32, #tpu.memory_space<any>>) target(%33 : memref<1x256xf32, #tpu.memory_space<vmem>>) target_semaphore(%35 : memref<!tpu.dma_semaphore, #tpu.memory_space<semaphore_mem>>)
    %36 = arith.index_cast %arg0 : i32 to index
    %c6 = arith.constant 6 : index
    %37 = memref.load %arg1[%36, %c6] : memref<2x8xi32, #tpu.memory_space<smem>>
    %c6_i32 = arith.constant 6 : i32
    %c0_i32_18 = arith.constant 0 : i32
    %38 = tpu.memref_slice %arg4[%37, %c0_i32_18] : memref<64x256xf32, #tpu.memory_space<any>> -> memref<1x256xf32, #tpu.memory_space<any>>
    %c6_i32_19 = arith.constant 6 : i32
    %c0_i32_20 = arith.constant 0 : i32
    %39 = tpu.memref_slice %arg19[%c6_i32_19, %c0_i32_20] : memref<8x256xf32, #tpu.memory_space<vmem>> -> memref<1x256xf32, #tpu.memory_space<vmem>>
    %40 = tpu.memref_slice %arg21[%c6_i32] : memref<8x!tpu.dma_semaphore, #tpu.memory_space<semaphore_mem>> -> memref<1x!tpu.dma_semaphore, #tpu.memory_space<semaphore_mem>>
    %41 = tpu.memref_squeeze %40 : memref<1x!tpu.dma_semaphore, #tpu.memory_space<semaphore_mem>> -> memref<!tpu.dma_semaphore, #tpu.memory_space<semaphore_mem>>
    tpu.enqueue_dma source(%38 : memref<1x256xf32, #tpu.memory_space<any>>) target(%39 : memref<1x256xf32, #tpu.memory_space<vmem>>) target_semaphore(%41 : memref<!tpu.dma_semaphore, #tpu.memory_space<semaphore_mem>>)
    %42 = arith.index_cast %arg0 : i32 to index
    %c7 = arith.constant 7 : index
    %43 = memref.load %arg1[%42, %c7] : memref<2x8xi32, #tpu.memory_space<smem>>
    %c7_i32 = arith.constant 7 : i32
    %c0_i32_21 = arith.constant 0 : i32
    %44 = tpu.memref_slice %arg4[%43, %c0_i32_21] : memref<64x256xf32, #tpu.memory_space<any>> -> memref<1x256xf32, #tpu.memory_space<any>>
    %c7_i32_22 = arith.constant 7 : i32
    %c0_i32_23 = arith.constant 0 : i32
    %45 = tpu.memref_slice %arg19[%c7_i32_22, %c0_i32_23] : memref<8x256xf32, #tpu.memory_space<vmem>> -> memref<1x256xf32, #tpu.memory_space<vmem>>
    %46 = tpu.memref_slice %arg21[%c7_i32] : memref<8x!tpu.dma_semaphore, #tpu.memory_space<semaphore_mem>> -> memref<1x!tpu.dma_semaphore, #tpu.memory_space<semaphore_mem>>
    %47 = tpu.memref_squeeze %46 : memref<1x!tpu.dma_semaphore, #tpu.memory_space<semaphore_mem>> -> memref<!tpu.dma_semaphore, #tpu.memory_space<semaphore_mem>>
    tpu.enqueue_dma source(%44 : memref<1x256xf32, #tpu.memory_space<any>>) target(%45 : memref<1x256xf32, #tpu.memory_space<vmem>>) target_semaphore(%47 : memref<!tpu.dma_semaphore, #tpu.memory_space<semaphore_mem>>)
    %48 = arith.index_cast %arg0 : i32 to index
    %c0_24 = arith.constant 0 : index
    %49 = memref.load %arg2[%48, %c0_24] : memref<2x8xi32, #tpu.memory_space<smem>>
    %50 = arith.index_cast %49 : i32 to index
    %c0_25 = arith.constant 0 : index
    %c0_26 = arith.constant 0 : index
    %51 = vector.load %arg5[%50, %c0_25, %c0_26] : memref<2x1x256xf32, #tpu.memory_space<vmem>>, vector<1x1x256xf32>
    %52 = vector.shape_cast %51 : vector<1x1x256xf32> to vector<1x256xf32>
    %c0_27 = arith.constant 0 : index
    %c0_28 = arith.constant 0 : index
    %53 = vector.load %arg20[%c0_27, %c0_28] : memref<8x256xf32, #tpu.memory_space<vmem>>, vector<1x256xf32>
    tpu.vector_store %arg20[%c0_27, %c0_28], %52 {strides = array<i32>} : memref<8x256xf32, #tpu.memory_space<vmem>>, vector<1x256xf32>,
    %54 = arith.index_cast %arg0 : i32 to index
    %c1_29 = arith.constant 1 : index
    %55 = memref.load %arg2[%54, %c1_29] : memref<2x8xi32, #tpu.memory_space<smem>>
    %56 = arith.index_cast %55 : i32 to index
    %c0_30 = arith.constant 0 : index
    %c0_31 = arith.constant 0 : index
    %57 = vector.load %arg5[%56, %c0_30, %c0_31] : memref<2x1x256xf32, #tpu.memory_space<vmem>>, vector<1x1x256xf32>
    %58 = vector.shape_cast %57 : vector<1x1x256xf32> to vector<1x256xf32>
    %c1_32 = arith.constant 1 : index
    %c0_33 = arith.constant 0 : index
    %59 = vector.load %arg20[%c1_32, %c0_33] : memref<8x256xf32, #tpu.memory_space<vmem>>, vector<1x256xf32>
    tpu.vector_store %arg20[%c1_32, %c0_33], %58 {strides = array<i32>} : memref<8x256xf32, #tpu.memory_space<vmem>>, vector<1x256xf32>,
    %60 = arith.index_cast %arg0 : i32 to index
    %c2_34 = arith.constant 2 : index
    %61 = memref.load %arg2[%60, %c2_34] : memref<2x8xi32, #tpu.memory_space<smem>>
    %62 = arith.index_cast %61 : i32 to index
    %c0_35 = arith.constant 0 : index
    %c0_36 = arith.constant 0 : index
    %63 = vector.load %arg5[%62, %c0_35, %c0_36] : memref<2x1x256xf32, #tpu.memory_space<vmem>>, vector<1x1x256xf32>
    %64 = vector.shape_cast %63 : vector<1x1x256xf32> to vector<1x256xf32>
    %c2_37 = arith.constant 2 : index
    %c0_38 = arith.constant 0 : index
    %65 = vector.load %arg20[%c2_37, %c0_38] : memref<8x256xf32, #tpu.memory_space<vmem>>, vector<1x256xf32>
    tpu.vector_store %arg20[%c2_37, %c0_38], %64 {strides = array<i32>} : memref<8x256xf32, #tpu.memory_space<vmem>>, vector<1x256xf32>,
    %66 = arith.index_cast %arg0 : i32 to index
    %c3_39 = arith.constant 3 : index
    %67 = memref.load %arg2[%66, %c3_39] : memref<2x8xi32, #tpu.memory_space<smem>>
    %68 = arith.index_cast %67 : i32 to index
    %c0_40 = arith.constant 0 : index
    %c0_41 = arith.constant 0 : index
    %69 = vector.load %arg5[%68, %c0_40, %c0_41] : memref<2x1x256xf32, #tpu.memory_space<vmem>>, vector<1x1x256xf32>
    %70 = vector.shape_cast %69 : vector<1x1x256xf32> to vector<1x256xf32>
    %c3_42 = arith.constant 3 : index
    %c0_43 = arith.constant 0 : index
    %71 = vector.load %arg20[%c3_42, %c0_43] : memref<8x256xf32, #tpu.memory_space<vmem>>, vector<1x256xf32>
    tpu.vector_store %arg20[%c3_42, %c0_43], %70 {strides = array<i32>} : memref<8x256xf32, #tpu.memory_space<vmem>>, vector<1x256xf32>,
    %72 = arith.index_cast %arg0 : i32 to index
    %c4_44 = arith.constant 4 : index
    %73 = memref.load %arg2[%72, %c4_44] : memref<2x8xi32, #tpu.memory_space<smem>>
    %74 = arith.index_cast %73 : i32 to index
    %c0_45 = arith.constant 0 : index
    %c0_46 = arith.constant 0 : index
    %75 = vector.load %arg5[%74, %c0_45, %c0_46] : memref<2x1x256xf32, #tpu.memory_space<vmem>>, vector<1x1x256xf32>
    %76 = vector.shape_cast %75 : vector<1x1x256xf32> to vector<1x256xf32>
    %c4_47 = arith.constant 4 : index
    %c0_48 = arith.constant 0 : index
    %77 = vector.load %arg20[%c4_47, %c0_48] : memref<8x256xf32, #tpu.memory_space<vmem>>, vector<1x256xf32>
    tpu.vector_store %arg20[%c4_47, %c0_48], %76 {strides = array<i32>} : memref<8x256xf32, #tpu.memory_space<vmem>>, vector<1x256xf32>,
    %78 = arith.index_cast %arg0 : i32 to index
    %c5_49 = arith.constant 5 : index
    %79 = memref.load %arg2[%78, %c5_49] : memref<2x8xi32, #tpu.memory_space<smem>>
    %80 = arith.index_cast %79 : i32 to index
    %c0_50 = arith.constant 0 : index
    %c0_51 = arith.constant 0 : index
    %81 = vector.load %arg5[%80, %c0_50, %c0_51] : memref<2x1x256xf32, #tpu.memory_space<vmem>>, vector<1x1x256xf32>
    %82 = vector.shape_cast %81 : vector<1x1x256xf32> to vector<1x256xf32>
    %c5_52 = arith.constant 5 : index
    %c0_53 = arith.constant 0 : index
    %83 = vector.load %arg20[%c5_52, %c0_53] : memref<8x256xf32, #tpu.memory_space<vmem>>, vector<1x256xf32>
    tpu.vector_store %arg20[%c5_52, %c0_53], %82 {strides = array<i32>} : memref<8x256xf32, #tpu.memory_space<vmem>>, vector<1x256xf32>,
    %84 = arith.index_cast %arg0 : i32 to index
    %c6_54 = arith.constant 6 : index
    %85 = memref.load %arg2[%84, %c6_54] : memref<2x8xi32, #tpu.memory_space<smem>>
    %86 = arith.index_cast %85 : i32 to index
    %c0_55 = arith.constant 0 : index
    %c0_56 = arith.constant 0 : index
    %87 = vector.load %arg5[%86, %c0_55, %c0_56] : memref<2x1x256xf32, #tpu.memory_space<vmem>>, vector<1x1x256xf32>
    %88 = vector.shape_cast %87 : vector<1x1x256xf32> to vector<1x256xf32>
    %c6_57 = arith.constant 6 : index
    %c0_58 = arith.constant 0 : index
    %89 = vector.load %arg20[%c6_57, %c0_58] : memref<8x256xf32, #tpu.memory_space<vmem>>, vector<1x256xf32>
    tpu.vector_store %arg20[%c6_57, %c0_58], %88 {strides = array<i32>} : memref<8x256xf32, #tpu.memory_space<vmem>>, vector<1x256xf32>,
    %90 = arith.index_cast %arg0 : i32 to index
    %c7_59 = arith.constant 7 : index
    %91 = memref.load %arg2[%90, %c7_59] : memref<2x8xi32, #tpu.memory_space<smem>>
    %92 = arith.index_cast %91 : i32 to index
    %c0_60 = arith.constant 0 : index
    %c0_61 = arith.constant 0 : index
    %93 = vector.load %arg5[%92, %c0_60, %c0_61] : memref<2x1x256xf32, #tpu.memory_space<vmem>>, vector<1x1x256xf32>
    %94 = vector.shape_cast %93 : vector<1x1x256xf32> to vector<1x256xf32>
    %c7_62 = arith.constant 7 : index
    %c0_63 = arith.constant 0 : index
    %95 = vector.load %arg20[%c7_62, %c0_63] : memref<8x256xf32, #tpu.memory_space<vmem>>, vector<1x256xf32>
    tpu.vector_store %arg20[%c7_62, %c0_63], %94 {strides = array<i32>} : memref<8x256xf32, #tpu.memory_space<vmem>>, vector<1x256xf32>,
    %96 = arith.index_cast %arg0 : i32 to index
    %97 = memref.load %arg3[%96] : memref<2xi32, #tpu.memory_space<smem>>
    %98 = tpu.iota {dimensions = array<i32: 1>} : vector<1x8xi32>
    %99 = vector.broadcast %97 : i32 to vector<1x8xi32>
    %100 = arith.cmpi slt, %98, %99 : vector<1x8xi32>
    %cst = arith.constant 0.000000e+00 : f32
    %cst_64 = arith.constant -1.000000e+09 : f32
    %101 = vector.broadcast %cst : f32 to vector<1x8xf32>
    %102 = vector.broadcast %cst_64 : f32 to vector<1x8xf32>
    %103 = arith.select %100, %101, %102 : vector<1x8xi1>, vector<1x8xf32>
    %c0_i32_65 = arith.constant 0 : i32
    %c0_i32_66 = arith.constant 0 : i32
    %104 = tpu.memref_slice %arg4[%1, %c0_i32_66] : memref<64x256xf32, #tpu.memory_space<any>> -> memref<1x256xf32, #tpu.memory_space<any>>
    %c0_i32_67 = arith.constant 0 : i32
    %c0_i32_68 = arith.constant 0 : i32
    %105 = tpu.memref_slice %arg19[%c0_i32_67, %c0_i32_68] : memref<8x256xf32, #tpu.memory_space<vmem>> -> memref<1x256xf32, #tpu.memory_space<vmem>>
    %106 = tpu.memref_slice %arg21[%c0_i32_65] : memref<8x!tpu.dma_semaphore, #tpu.memory_space<semaphore_mem>> -> memref<1x!tpu.dma_semaphore, #tpu.memory_space<semaphore_mem>>
    %107 = tpu.memref_squeeze %106 : memref<1x!tpu.dma_semaphore, #tpu.memory_space<semaphore_mem>> -> memref<!tpu.dma_semaphore, #tpu.memory_space<semaphore_mem>>
    tpu.wait_dma2 semaphore(%107 : memref<!tpu.dma_semaphore, #tpu.memory_space<semaphore_mem>>) src(%104 : memref<1x256xf32, #tpu.memory_space<any>>) dst(%105 : memref<1x256xf32, #tpu.memory_space<vmem>>)
    %c1_i32_69 = arith.constant 1 : i32
    %c0_i32_70 = arith.constant 0 : i32
    %108 = tpu.memref_slice %arg4[%7, %c0_i32_70] : memref<64x256xf32, #tpu.memory_space<any>> -> memref<1x256xf32, #tpu.memory_space<any>>
    %c1_i32_71 = arith.constant 1 : i32
    %c0_i32_72 = arith.constant 0 : i32
    %109 = tpu.memref_slice %arg19[%c1_i32_71, %c0_i32_72] : memref<8x256xf32, #tpu.memory_space<vmem>> -> memref<1x256xf32, #tpu.memory_space<vmem>>
    %110 = tpu.memref_slice %arg21[%c1_i32_69] : memref<8x!tpu.dma_semaphore, #tpu.memory_space<semaphore_mem>> -> memref<1x!tpu.dma_semaphore, #tpu.memory_space<semaphore_mem>>
    %111 = tpu.memref_squeeze %110 : memref<1x!tpu.dma_semaphore, #tpu.memory_space<semaphore_mem>> -> memref<!tpu.dma_semaphore, #tpu.memory_space<semaphore_mem>>
    tpu.wait_dma2 semaphore(%111 : memref<!tpu.dma_semaphore, #tpu.memory_space<semaphore_mem>>) src(%108 : memref<1x256xf32, #tpu.memory_space<any>>) dst(%109 : memref<1x256xf32, #tpu.memory_space<vmem>>)
    %c2_i32_73 = arith.constant 2 : i32
    %c0_i32_74 = arith.constant 0 : i32
    %112 = tpu.memref_slice %arg4[%13, %c0_i32_74] : memref<64x256xf32, #tpu.memory_space<any>> -> memref<1x256xf32, #tpu.memory_space<any>>
    %c2_i32_75 = arith.constant 2 : i32
    %c0_i32_76 = arith.constant 0 : i32
    %113 = tpu.memref_slice %arg19[%c2_i32_75, %c0_i32_76] : memref<8x256xf32, #tpu.memory_space<vmem>> -> memref<1x256xf32, #tpu.memory_space<vmem>>
    %114 = tpu.memref_slice %arg21[%c2_i32_73] : memref<8x!tpu.dma_semaphore, #tpu.memory_space<semaphore_mem>> -> memref<1x!tpu.dma_semaphore, #tpu.memory_space<semaphore_mem>>
    %115 = tpu.memref_squeeze %114 : memref<1x!tpu.dma_semaphore, #tpu.memory_space<semaphore_mem>> -> memref<!tpu.dma_semaphore, #tpu.memory_space<semaphore_mem>>
    tpu.wait_dma2 semaphore(%115 : memref<!tpu.dma_semaphore, #tpu.memory_space<semaphore_mem>>) src(%112 : memref<1x256xf32, #tpu.memory_space<any>>) dst(%113 : memref<1x256xf32, #tpu.memory_space<vmem>>)
    %c3_i32_77 = arith.constant 3 : i32
    %c0_i32_78 = arith.constant 0 : i32
    %116 = tpu.memref_slice %arg4[%19, %c0_i32_78] : memref<64x256xf32, #tpu.memory_space<any>> -> memref<1x256xf32, #tpu.memory_space<any>>
    %c3_i32_79 = arith.constant 3 : i32
    %c0_i32_80 = arith.constant 0 : i32
    %117 = tpu.memref_slice %arg19[%c3_i32_79, %c0_i32_80] : memref<8x256xf32, #tpu.memory_space<vmem>> -> memref<1x256xf32, #tpu.memory_space<vmem>>
    %118 = tpu.memref_slice %arg21[%c3_i32_77] : memref<8x!tpu.dma_semaphore, #tpu.memory_space<semaphore_mem>> -> memref<1x!tpu.dma_semaphore, #tpu.memory_space<semaphore_mem>>
    %119 = tpu.memref_squeeze %118 : memref<1x!tpu.dma_semaphore, #tpu.memory_space<semaphore_mem>> -> memref<!tpu.dma_semaphore, #tpu.memory_space<semaphore_mem>>
    tpu.wait_dma2 semaphore(%119 : memref<!tpu.dma_semaphore, #tpu.memory_space<semaphore_mem>>) src(%116 : memref<1x256xf32, #tpu.memory_space<any>>) dst(%117 : memref<1x256xf32, #tpu.memory_space<vmem>>)
    %c4_i32_81 = arith.constant 4 : i32
    %c0_i32_82 = arith.constant 0 : i32
    %120 = tpu.memref_slice %arg4[%25, %c0_i32_82] : memref<64x256xf32, #tpu.memory_space<any>> -> memref<1x256xf32, #tpu.memory_space<any>>
    %c4_i32_83 = arith.constant 4 : i32
    %c0_i32_84 = arith.constant 0 : i32
    %121 = tpu.memref_slice %arg19[%c4_i32_83, %c0_i32_84] : memref<8x256xf32, #tpu.memory_space<vmem>> -> memref<1x256xf32, #tpu.memory_space<vmem>>
    %122 = tpu.memref_slice %arg21[%c4_i32_81] : memref<8x!tpu.dma_semaphore, #tpu.memory_space<semaphore_mem>> -> memref<1x!tpu.dma_semaphore, #tpu.memory_space<semaphore_mem>>
    %123 = tpu.memref_squeeze %122 : memref<1x!tpu.dma_semaphore, #tpu.memory_space<semaphore_mem>> -> memref<!tpu.dma_semaphore, #tpu.memory_space<semaphore_mem>>
    tpu.wait_dma2 semaphore(%123 : memref<!tpu.dma_semaphore, #tpu.memory_space<semaphore_mem>>) src(%120 : memref<1x256xf32, #tpu.memory_space<any>>) dst(%121 : memref<1x256xf32, #tpu.memory_space<vmem>>)
    %c5_i32_85 = arith.constant 5 : i32
    %c0_i32_86 = arith.constant 0 : i32
    %124 = tpu.memref_slice %arg4[%31, %c0_i32_86] : memref<64x256xf32, #tpu.memory_space<any>> -> memref<1x256xf32, #tpu.memory_space<any>>
    %c5_i32_87 = arith.constant 5 : i32
    %c0_i32_88 = arith.constant 0 : i32
    %125 = tpu.memref_slice %arg19[%c5_i32_87, %c0_i32_88] : memref<8x256xf32, #tpu.memory_space<vmem>> -> memref<1x256xf32, #tpu.memory_space<vmem>>
    %126 = tpu.memref_slice %arg21[%c5_i32_85] : memref<8x!tpu.dma_semaphore, #tpu.memory_space<semaphore_mem>> -> memref<1x!tpu.dma_semaphore, #tpu.memory_space<semaphore_mem>>
    %127 = tpu.memref_squeeze %126 : memref<1x!tpu.dma_semaphore, #tpu.memory_space<semaphore_mem>> -> memref<!tpu.dma_semaphore, #tpu.memory_space<semaphore_mem>>
    tpu.wait_dma2 semaphore(%127 : memref<!tpu.dma_semaphore, #tpu.memory_space<semaphore_mem>>) src(%124 : memref<1x256xf32, #tpu.memory_space<any>>) dst(%125 : memref<1x256xf32, #tpu.memory_space<vmem>>)
    %c6_i32_89 = arith.constant 6 : i32
    %c0_i32_90 = arith.constant 0 : i32
    %128 = tpu.memref_slice %arg4[%37, %c0_i32_90] : memref<64x256xf32, #tpu.memory_space<any>> -> memref<1x256xf32, #tpu.memory_space<any>>
    %c6_i32_91 = arith.constant 6 : i32
    %c0_i32_92 = arith.constant 0 : i32
    %129 = tpu.memref_slice %arg19[%c6_i32_91, %c0_i32_92] : memref<8x256xf32, #tpu.memory_space<vmem>> -> memref<1x256xf32, #tpu.memory_space<vmem>>
    %130 = tpu.memref_slice %arg21[%c6_i32_89] : memref<8x!tpu.dma_semaphore, #tpu.memory_space<semaphore_mem>> -> memref<1x!tpu.dma_semaphore, #tpu.memory_space<semaphore_mem>>
    %131 = tpu.memref_squeeze %130 : memref<1x!tpu.dma_semaphore, #tpu.memory_space<semaphore_mem>> -> memref<!tpu.dma_semaphore, #tpu.memory_space<semaphore_mem>>
    tpu.wait_dma2 semaphore(%131 : memref<!tpu.dma_semaphore, #tpu.memory_space<semaphore_mem>>) src(%128 : memref<1x256xf32, #tpu.memory_space<any>>) dst(%129 : memref<1x256xf32, #tpu.memory_space<vmem>>)
    %c7_i32_93 = arith.constant 7 : i32
    %c0_i32_94 = arith.constant 0 : i32
    %132 = tpu.memref_slice %arg4[%43, %c0_i32_94] : memref<64x256xf32, #tpu.memory_space<any>> -> memref<1x256xf32, #tpu.memory_space<any>>
    %c7_i32_95 = arith.constant 7 : i32
    %c0_i32_96 = arith.constant 0 : i32
    %133 = tpu.memref_slice %arg19[%c7_i32_95, %c0_i32_96] : memref<8x256xf32, #tpu.memory_space<vmem>> -> memref<1x256xf32, #tpu.memory_space<vmem>>
    %134 = tpu.memref_slice %arg21[%c7_i32_93] : memref<8x!tpu.dma_semaphore, #tpu.memory_space<semaphore_mem>> -> memref<1x!tpu.dma_semaphore, #tpu.memory_space<semaphore_mem>>
    %135 = tpu.memref_squeeze %134 : memref<1x!tpu.dma_semaphore, #tpu.memory_space<semaphore_mem>> -> memref<!tpu.dma_semaphore, #tpu.memory_space<semaphore_mem>>
    tpu.wait_dma2 semaphore(%135 : memref<!tpu.dma_semaphore, #tpu.memory_space<semaphore_mem>>) src(%132 : memref<1x256xf32, #tpu.memory_space<any>>) dst(%133 : memref<1x256xf32, #tpu.memory_space<vmem>>)
    %c0_97 = arith.constant 0 : index
    %c0_98 = arith.constant 0 : index
    %136 = vector.load %arg19[%c0_97, %c0_98] : memref<8x256xf32, #tpu.memory_space<vmem>>, vector<8x256xf32>
    %c0_99 = arith.constant 0 : index
    %c0_100 = arith.constant 0 : index
    %137 = vector.load %arg20[%c0_99, %c0_100] : memref<8x256xf32, #tpu.memory_space<vmem>>, vector<8x256xf32>
    %138 = arith.addf %136, %137 : vector<8x256xf32>
    %c0_101 = arith.constant 0 : index
    %c0_102 = arith.constant 0 : index
    %139 = vector.load %arg6[%c0_101, %c0_102] : memref<8x256xf32, #tpu.memory_space<vmem>>, vector<8x256xf32>
    %140 = arith.addf %138, %139 : vector<8x256xf32>
    %c0_103 = arith.constant 0 : index
    %c0_104 = arith.constant 0 : index
    %141 = vector.load %arg7[%c0_103, %c0_104] : memref<2x256xf32, #tpu.memory_space<vmem>>, vector<2x256xf32>
    %142 = vector.extract_strided_slice %141 {offsets = [0, 0], sizes = [1, 256], strides = [1, 1]} : vector<2x256xf32> to vector<1x256xf32>
    %143 = vector.extract_strided_slice %141 {offsets = [1, 0], sizes = [1, 256], strides = [1, 1]} : vector<2x256xf32> to vector<1x256xf32>
    %cst_105 = arith.constant dense<0.000000e+00> : vector<8xf32>
    %144 = vector.multi_reduction <add>, %140, %cst_105 [1] : vector<8x256xf32> to vector<8xf32>
    %145 = vector.shape_cast %144 : vector<8xf32> to vector<8x1xf32>
    %cst_106 = arith.constant 2.560000e+02 : f32
    %146 = vector.broadcast %cst_106 : f32 to vector<8x1xf32>
    %147 = arith.divf %145, %146 : vector<8x1xf32>
    %148 = vector.broadcast %147 : vector<8x1xf32> to vector<8x256xf32>
    %149 = arith.subf %140, %148 : vector<8x256xf32>
    %150 = arith.mulf %149, %149 : vector<8x256xf32>
    %cst_107 = arith.constant dense<0.000000e+00> : vector<8xf32>
    %151 = vector.multi_reduction <add>, %150, %cst_107 [1] : vector<8x256xf32> to vector<8xf32>
    %152 = vector.shape_cast %151 : vector<8xf32> to vector<8x1xf32>
    %cst_108 = arith.constant 2.560000e+02 : f32
    %153 = vector.broadcast %cst_108 : f32 to vector<8x1xf32>
    %154 = arith.divf %152, %153 : vector<8x1xf32>
    %155 = vector.broadcast %147 : vector<8x1xf32> to vector<8x256xf32>
    %156 = arith.subf %140, %155 : vector<8x256xf32>
    %cst_109 = arith.constant 9.99999996E-13 : f32
    %157 = vector.broadcast %cst_109 : f32 to vector<8x1xf32>
    %158 = arith.addf %154, %157 : vector<8x1xf32>
    %159 = math.rsqrt %158 : vector<8x1xf32>
    %160 = vector.broadcast %159 : vector<8x1xf32> to vector<8x256xf32>
    %161 = arith.mulf %156, %160 : vector<8x256xf32>
    %162 = vector.broadcast %142 : vector<1x256xf32> to vector<8x256xf32>
    %163 = arith.mulf %161, %162 : vector<8x256xf32>
    %164 = vector.broadcast %143 : vector<1x256xf32> to vector<8x256xf32>
    %165 = arith.addf %163, %164 : vector<8x256xf32>
    %166 = arith.truncf %165 : vector<8x256xf32> to vector<8x256xbf16>
    %c0_110 = arith.constant 0 : index
    %c0_111 = arith.constant 0 : index
    %c0_112 = arith.constant 0 : index
    %167 = vector.load %arg8[%c0_110, %c0_111, %c0_112] : memref<2x256x768xbf16, #tpu.memory_space<vmem>>, vector<1x256x768xbf16>
    %168 = vector.shape_cast %167 : vector<1x256x768xbf16> to vector<256x768xbf16>
    %cst_113 = arith.constant dense<0.000000e+00> : vector<8x768xf32>
    %169 = tpu.matmul %166, %168, %cst_113 {dimension_numbers = #tpu.dot_dimension_numbers<[1], [0], [0], [1], [0, 0, 1, 1], [], []>} : vector<8x256xbf16>, vector<256x768xbf16>, vector<8x768xf32> -> vector<8x768xf32>
    %c0_114 = arith.constant 0 : index
    %c0_115 = arith.constant 0 : index
    %c0_116 = arith.constant 0 : index
    %170 = vector.load %arg9[%c0_114, %c0_115, %c0_116] : memref<2x1x768xf32, #tpu.memory_space<vmem>>, vector<1x1x768xf32>
    %171 = vector.shape_cast %170 : vector<1x1x768xf32> to vector<1x768xf32>
    %172 = vector.broadcast %171 : vector<1x768xf32> to vector<8x768xf32>
    %173 = arith.addf %169, %172 : vector<8x768xf32>
    %174 = vector.extract_strided_slice %173 {offsets = [0, 0], sizes = [8, 128], strides = [1, 1]} : vector<8x768xf32> to vector<8x128xf32>
    %175 = arith.truncf %174 : vector<8x128xf32> to vector<8x128xbf16>
    %176 = vector.extract_strided_slice %173 {offsets = [0, 256], sizes = [8, 128], strides = [1, 1]} : vector<8x768xf32> to vector<8x128xf32>
    %177 = arith.truncf %176 : vector<8x128xf32> to vector<8x128xbf16>
    %178 = vector.extract_strided_slice %173 {offsets = [0, 512], sizes = [8, 128], strides = [1, 1]} : vector<8x768xf32> to vector<8x128xf32>
    %179 = arith.truncf %178 : vector<8x128xf32> to vector<8x128xbf16>
    %cst_117 = arith.constant dense<0.000000e+00> : vector<8x8xf32>
    %180 = tpu.matmul %175, %177, %cst_117 {dimension_numbers = #tpu.dot_dimension_numbers<[1], [1], [0], [0], [0, 0, 1, 0], [], []>} : vector<8x128xbf16>, vector<8x128xbf16>, vector<8x8xf32> -> vector<8x8xf32>
    %cst_118 = arith.constant 0.0883883461 : f32
    %181 = vector.broadcast %cst_118 : f32 to vector<8x8xf32>
    %182 = arith.mulf %180, %181 : vector<8x8xf32>
    %183 = vector.broadcast %103 : vector<1x8xf32> to vector<8x8xf32>
    %184 = arith.addf %182, %183 : vector<8x8xf32>
    %cst_119 = arith.constant dense<0xFF800000> : vector<8xf32>
    %185 = vector.multi_reduction <maximumf>, %184, %cst_119 [1] : vector<8x8xf32> to vector<8xf32>
    %186 = vector.shape_cast %185 : vector<8xf32> to vector<8x1xf32>
    %187 = vector.broadcast %186 : vector<8x1xf32> to vector<8x8xf32>
    %188 = arith.subf %184, %187 : vector<8x8xf32>
    %189 = math.exp %188 : vector<8x8xf32>
    %cst_120 = arith.constant dense<0.000000e+00> : vector<8xf32>
    %190 = vector.multi_reduction <add>, %189, %cst_120 [1] : vector<8x8xf32> to vector<8xf32>
    %191 = vector.shape_cast %190 : vector<8xf32> to vector<8x1xf32>
    %192 = tpu.reciprocal %191 {approx = true} : vector<8x1xf32> -> vector<8x1xf32>
    %193 = vector.broadcast %192 : vector<8x1xf32> to vector<8x8xf32>
    %194 = arith.mulf %189, %193 : vector<8x8xf32>
    %195 = arith.truncf %194 : vector<8x8xf32> to vector<8x8xbf16>
    %cst_121 = arith.constant dense<0.000000e+00> : vector<8x128xf32>
    %196 = tpu.matmul %195, %179, %cst_121 {dimension_numbers = #tpu.dot_dimension_numbers<[1], [0], [0], [1], [0, 0, 1, 1], [], []>} : vector<8x8xbf16>, vector<8x128xbf16>, vector<8x128xf32> -> vector<8x128xf32>
    %197 = vector.extract_strided_slice %173 {offsets = [0, 128], sizes = [8, 128], strides = [1, 1]} : vector<8x768xf32> to vector<8x128xf32>
    %198 = arith.truncf %197 : vector<8x128xf32> to vector<8x128xbf16>
    %199 = vector.extract_strided_slice %173 {offsets = [0, 384], sizes = [8, 128], strides = [1, 1]} : vector<8x768xf32> to vector<8x128xf32>
    %200 = arith.truncf %199 : vector<8x128xf32> to vector<8x128xbf16>
    %201 = vector.extract_strided_slice %173 {offsets = [0, 640], sizes = [8, 128], strides = [1, 1]} : vector<8x768xf32> to vector<8x128xf32>
    %202 = arith.truncf %201 : vector<8x128xf32> to vector<8x128xbf16>
    %cst_122 = arith.constant dense<0.000000e+00> : vector<8x8xf32>
    %203 = tpu.matmul %198, %200, %cst_122 {dimension_numbers = #tpu.dot_dimension_numbers<[1], [1], [0], [0], [0, 0, 1, 0], [], []>} : vector<8x128xbf16>, vector<8x128xbf16>, vector<8x8xf32> -> vector<8x8xf32>
    %cst_123 = arith.constant 0.0883883461 : f32
    %204 = vector.broadcast %cst_123 : f32 to vector<8x8xf32>
    %205 = arith.mulf %203, %204 : vector<8x8xf32>
    %206 = vector.broadcast %103 : vector<1x8xf32> to vector<8x8xf32>
    %207 = arith.addf %205, %206 : vector<8x8xf32>
    %cst_124 = arith.constant dense<0xFF800000> : vector<8xf32>
    %208 = vector.multi_reduction <maximumf>, %207, %cst_124 [1] : vector<8x8xf32> to vector<8xf32>
    %209 = vector.shape_cast %208 : vector<8xf32> to vector<8x1xf32>
    %210 = vector.broadcast %209 : vector<8x1xf32> to vector<8x8xf32>
    %211 = arith.subf %207, %210 : vector<8x8xf32>
    %212 = math.exp %211 : vector<8x8xf32>
    %cst_125 = arith.constant dense<0.000000e+00> : vector<8xf32>
    %213 = vector.multi_reduction <add>, %212, %cst_125 [1] : vector<8x8xf32> to vector<8xf32>
    %214 = vector.shape_cast %213 : vector<8xf32> to vector<8x1xf32>
    %215 = tpu.reciprocal %214 {approx = true} : vector<8x1xf32> -> vector<8x1xf32>
    %216 = vector.broadcast %215 : vector<8x1xf32> to vector<8x8xf32>
    %217 = arith.mulf %212, %216 : vector<8x8xf32>
    %218 = arith.truncf %217 : vector<8x8xf32> to vector<8x8xbf16>
    %cst_126 = arith.constant dense<0.000000e+00> : vector<8x128xf32>
    %219 = tpu.matmul %218, %202, %cst_126 {dimension_numbers = #tpu.dot_dimension_numbers<[1], [0], [0], [1], [0, 0, 1, 1], [], []>} : vector<8x8xbf16>, vector<8x128xbf16>, vector<8x128xf32> -> vector<8x128xf32>
    %220 = tpu.concatenate %196, %219 in 1 : vector<8x128xf32>, vector<8x128xf32> -> vector<8x256xf32>
    %221 = arith.truncf %220 : vector<8x256xf32> to vector<8x256xbf16>
    %c0_127 = arith.constant 0 : index
    %c0_128 = arith.constant 0 : index
    %c0_129 = arith.constant 0 : index
    %222 = vector.load %arg10[%c0_127, %c0_128, %c0_129] : memref<2x256x256xbf16, #tpu.memory_space<vmem>>, vector<1x256x256xbf16>
    %223 = vector.shape_cast %222 : vector<1x256x256xbf16> to vector<256x256xbf16>
    %cst_130 = arith.constant dense<0.000000e+00> : vector<8x256xf32>
    %224 = tpu.matmul %221, %223, %cst_130 {dimension_numbers = #tpu.dot_dimension_numbers<[1], [0], [0], [1], [0, 0, 1, 1], [], []>} : vector<8x256xbf16>, vector<256x256xbf16>, vector<8x256xf32> -> vector<8x256xf32>
    %c0_131 = arith.constant 0 : index
    %c0_132 = arith.constant 0 : index
    %c0_133 = arith.constant 0 : index
    %225 = vector.load %arg11[%c0_131, %c0_132, %c0_133] : memref<2x1x256xf32, #tpu.memory_space<vmem>>, vector<1x1x256xf32>
    %226 = vector.shape_cast %225 : vector<1x1x256xf32> to vector<1x256xf32>
    %227 = vector.broadcast %226 : vector<1x256xf32> to vector<8x256xf32>
    %228 = arith.addf %224, %227 : vector<8x256xf32>
    %229 = arith.addf %165, %228 : vector<8x256xf32>
    %c0_134 = arith.constant 0 : index
    %c0_135 = arith.constant 0 : index
    %c0_136 = arith.constant 0 : index
    %230 = vector.load %arg12[%c0_134, %c0_135, %c0_136] : memref<2x2x256xf32, #tpu.memory_space<vmem>>, vector<1x2x256xf32>
    %231 = vector.shape_cast %230 : vector<1x2x256xf32> to vector<2x256xf32>
    %232 = vector.extract_strided_slice %231 {offsets = [0, 0], sizes = [1, 256], strides = [1, 1]} : vector<2x256xf32> to vector<1x256xf32>
    %233 = vector.extract_strided_slice %231 {offsets = [1, 0], sizes = [1, 256], strides = [1, 1]} : vector<2x256xf32> to vector<1x256xf32>
    %cst_137 = arith.constant dense<0.000000e+00> : vector<8xf32>
    %234 = vector.multi_reduction <add>, %229, %cst_137 [1] : vector<8x256xf32> to vector<8xf32>
    %235 = vector.shape_cast %234 : vector<8xf32> to vector<8x1xf32>
    %cst_138 = arith.constant 2.560000e+02 : f32
    %236 = vector.broadcast %cst_138 : f32 to vector<8x1xf32>
    %237 = arith.divf %235, %236 : vector<8x1xf32>
    %238 = vector.broadcast %237 : vector<8x1xf32> to vector<8x256xf32>
    %239 = arith.subf %229, %238 : vector<8x256xf32>
    %240 = arith.mulf %239, %239 : vector<8x256xf32>
    %cst_139 = arith.constant dense<0.000000e+00> : vector<8xf32>
    %241 = vector.multi_reduction <add>, %240, %cst_139 [1] : vector<8x256xf32> to vector<8xf32>
    %242 = vector.shape_cast %241 : vector<8xf32> to vector<8x1xf32>
    %cst_140 = arith.constant 2.560000e+02 : f32
    %243 = vector.broadcast %cst_140 : f32 to vector<8x1xf32>
    %244 = arith.divf %242, %243 : vector<8x1xf32>
    %245 = vector.broadcast %237 : vector<8x1xf32> to vector<8x256xf32>
    %246 = arith.subf %229, %245 : vector<8x256xf32>
    %cst_141 = arith.constant 9.99999996E-13 : f32
    %247 = vector.broadcast %cst_141 : f32 to vector<8x1xf32>
    %248 = arith.addf %244, %247 : vector<8x1xf32>
    %249 = math.rsqrt %248 : vector<8x1xf32>
    %250 = vector.broadcast %249 : vector<8x1xf32> to vector<8x256xf32>
    %251 = arith.mulf %246, %250 : vector<8x256xf32>
    %252 = vector.broadcast %232 : vector<1x256xf32> to vector<8x256xf32>
    %253 = arith.mulf %251, %252 : vector<8x256xf32>
    %254 = vector.broadcast %233 : vector<1x256xf32> to vector<8x256xf32>
    %255 = arith.addf %253, %254 : vector<8x256xf32>
    %256 = arith.truncf %255 : vector<8x256xf32> to vector<8x256xbf16>
    %c0_142 = arith.constant 0 : index
    %c0_143 = arith.constant 0 : index
    %c0_144 = arith.constant 0 : index
    %257 = vector.load %arg13[%c0_142, %c0_143, %c0_144] : memref<2x256x512xbf16, #tpu.memory_space<vmem>>, vector<1x256x512xbf16>
    %258 = vector.shape_cast %257 : vector<1x256x512xbf16> to vector<256x512xbf16>
    %cst_145 = arith.constant dense<0.000000e+00> : vector<8x512xf32>
    %259 = tpu.matmul %256, %258, %cst_145 {dimension_numbers = #tpu.dot_dimension_numbers<[1], [0], [0], [1], [0, 0, 1, 1], [], []>} : vector<8x256xbf16>, vector<256x512xbf16>, vector<8x512xf32> -> vector<8x512xf32>
    %c0_146 = arith.constant 0 : index
    %c0_147 = arith.constant 0 : index
    %c0_148 = arith.constant 0 : index
    %260 = vector.load %arg14[%c0_146, %c0_147, %c0_148] : memref<2x1x512xf32, #tpu.memory_space<vmem>>, vector<1x1x512xf32>
    %261 = vector.shape_cast %260 : vector<1x1x512xf32> to vector<1x512xf32>
    %262 = vector.broadcast %261 : vector<1x512xf32> to vector<8x512xf32>
    %263 = arith.addf %259, %262 : vector<8x512xf32>
    %cst_149 = arith.constant 5.000000e-01 : f32
    %264 = vector.broadcast %cst_149 : f32 to vector<8x512xf32>
    %265 = arith.mulf %264, %263 : vector<8x512xf32>
    %cst_150 = arith.constant 4.471500e-02 : f32
    %266 = vector.broadcast %cst_150 : f32 to vector<8x512xf32>
    %267 = arith.mulf %266, %263 : vector<8x512xf32>
    %268 = arith.mulf %267, %263 : vector<8x512xf32>
    %269 = arith.mulf %268, %263 : vector<8x512xf32>
    %270 = arith.addf %263, %269 : vector<8x512xf32>
    %cst_151 = arith.constant 0.797884583 : f32
    %271 = vector.broadcast %cst_151 : f32 to vector<8x512xf32>
    %272 = arith.mulf %271, %270 : vector<8x512xf32>
    %273 = math.tanh %272 : vector<8x512xf32>
    %cst_152 = arith.constant 1.000000e+00 : f32
    %274 = vector.broadcast %cst_152 : f32 to vector<8x512xf32>
    %275 = arith.addf %274, %273 : vector<8x512xf32>
    %276 = arith.mulf %265, %275 : vector<8x512xf32>
    %277 = arith.truncf %276 : vector<8x512xf32> to vector<8x512xbf16>
    %c0_153 = arith.constant 0 : index
    %c0_154 = arith.constant 0 : index
    %c0_155 = arith.constant 0 : index
    %278 = vector.load %arg15[%c0_153, %c0_154, %c0_155] : memref<2x512x256xbf16, #tpu.memory_space<vmem>>, vector<1x512x256xbf16>
    %279 = vector.shape_cast %278 : vector<1x512x256xbf16> to vector<512x256xbf16>
    %cst_156 = arith.constant dense<0.000000e+00> : vector<8x256xf32>
    %280 = tpu.matmul %277, %279, %cst_156 {dimension_numbers = #tpu.dot_dimension_numbers<[1], [0], [0], [1], [0, 0, 1, 1], [], []>} : vector<8x512xbf16>, vector<512x256xbf16>, vector<8x256xf32> -> vector<8x256xf32>
    %c0_157 = arith.constant 0 : index
    %c0_158 = arith.constant 0 : index
    %c0_159 = arith.constant 0 : index
    %281 = vector.load %arg16[%c0_157, %c0_158, %c0_159] : memref<2x1x256xf32, #tpu.memory_space<vmem>>, vector<1x1x256xf32>
    %282 = vector.shape_cast %281 : vector<1x1x256xf32> to vector<1x256xf32>
    %283 = vector.broadcast %282 : vector<1x256xf32> to vector<8x256xf32>
    %284 = arith.addf %280, %283 : vector<8x256xf32>
    %285 = arith.addf %255, %284 : vector<8x256xf32>
    %c0_160 = arith.constant 0 : index
    %c0_161 = arith.constant 0 : index
    %c0_162 = arith.constant 0 : index
    %286 = vector.load %arg17[%c0_160, %c0_161, %c0_162] : memref<2x2x256xf32, #tpu.memory_space<vmem>>, vector<1x2x256xf32>
    %287 = vector.shape_cast %286 : vector<1x2x256xf32> to vector<2x256xf32>
    %288 = vector.extract_strided_slice %287 {offsets = [0, 0], sizes = [1, 256], strides = [1, 1]} : vector<2x256xf32> to vector<1x256xf32>
    %289 = vector.extract_strided_slice %287 {offsets = [1, 0], sizes = [1, 256], strides = [1, 1]} : vector<2x256xf32> to vector<1x256xf32>
    %cst_163 = arith.constant dense<0.000000e+00> : vector<8xf32>
    %290 = vector.multi_reduction <add>, %285, %cst_163 [1] : vector<8x256xf32> to vector<8xf32>
    %291 = vector.shape_cast %290 : vector<8xf32> to vector<8x1xf32>
    %cst_164 = arith.constant 2.560000e+02 : f32
    %292 = vector.broadcast %cst_164 : f32 to vector<8x1xf32>
    %293 = arith.divf %291, %292 : vector<8x1xf32>
    %294 = vector.broadcast %293 : vector<8x1xf32> to vector<8x256xf32>
    %295 = arith.subf %285, %294 : vector<8x256xf32>
    %296 = arith.mulf %295, %295 : vector<8x256xf32>
    %cst_165 = arith.constant dense<0.000000e+00> : vector<8xf32>
    %297 = vector.multi_reduction <add>, %296, %cst_165 [1] : vector<8x256xf32> to vector<8xf32>
    %298 = vector.shape_cast %297 : vector<8xf32> to vector<8x1xf32>
    %cst_166 = arith.constant 2.560000e+02 : f32
    %299 = vector.broadcast %cst_166 : f32 to vector<8x1xf32>
    %300 = arith.divf %298, %299 : vector<8x1xf32>
    %301 = vector.broadcast %293 : vector<8x1xf32> to vector<8x256xf32>
    %302 = arith.subf %285, %301 : vector<8x256xf32>
    %cst_167 = arith.constant 9.99999996E-13 : f32
    %303 = vector.broadcast %cst_167 : f32 to vector<8x1xf32>
    %304 = arith.addf %300, %303 : vector<8x1xf32>
    %305 = math.rsqrt %304 : vector<8x1xf32>
    %306 = vector.broadcast %305 : vector<8x1xf32> to vector<8x256xf32>
    %307 = arith.mulf %302, %306 : vector<8x256xf32>
    %308 = vector.broadcast %288 : vector<1x256xf32> to vector<8x256xf32>
    %309 = arith.mulf %307, %308 : vector<8x256xf32>
    %310 = vector.broadcast %289 : vector<1x256xf32> to vector<8x256xf32>
    %311 = arith.addf %309, %310 : vector<8x256xf32>
    %312 = arith.truncf %311 : vector<8x256xf32> to vector<8x256xbf16>
    %c1_168 = arith.constant 1 : index
    %c0_169 = arith.constant 0 : index
    %c0_170 = arith.constant 0 : index
    %313 = vector.load %arg8[%c1_168, %c0_169, %c0_170] : memref<2x256x768xbf16, #tpu.memory_space<vmem>>, vector<1x256x768xbf16>
    %314 = vector.shape_cast %313 : vector<1x256x768xbf16> to vector<256x768xbf16>
    %cst_171 = arith.constant dense<0.000000e+00> : vector<8x768xf32>
    %315 = tpu.matmul %312, %314, %cst_171 {dimension_numbers = #tpu.dot_dimension_numbers<[1], [0], [0], [1], [0, 0, 1, 1], [], []>} : vector<8x256xbf16>, vector<256x768xbf16>, vector<8x768xf32> -> vector<8x768xf32>
    %c1_172 = arith.constant 1 : index
    %c0_173 = arith.constant 0 : index
    %c0_174 = arith.constant 0 : index
    %316 = vector.load %arg9[%c1_172, %c0_173, %c0_174] : memref<2x1x768xf32, #tpu.memory_space<vmem>>, vector<1x1x768xf32>
    %317 = vector.shape_cast %316 : vector<1x1x768xf32> to vector<1x768xf32>
    %318 = vector.broadcast %317 : vector<1x768xf32> to vector<8x768xf32>
    %319 = arith.addf %315, %318 : vector<8x768xf32>
    %320 = vector.extract_strided_slice %319 {offsets = [0, 0], sizes = [8, 128], strides = [1, 1]} : vector<8x768xf32> to vector<8x128xf32>
    %321 = arith.truncf %320 : vector<8x128xf32> to vector<8x128xbf16>
    %322 = vector.extract_strided_slice %319 {offsets = [0, 256], sizes = [8, 128], strides = [1, 1]} : vector<8x768xf32> to vector<8x128xf32>
    %323 = arith.truncf %322 : vector<8x128xf32> to vector<8x128xbf16>
    %324 = vector.extract_strided_slice %319 {offsets = [0, 512], sizes = [8, 128], strides = [1, 1]} : vector<8x768xf32> to vector<8x128xf32>
    %325 = arith.truncf %324 : vector<8x128xf32> to vector<8x128xbf16>
    %cst_175 = arith.constant dense<0.000000e+00> : vector<8x8xf32>
    %326 = tpu.matmul %321, %323, %cst_175 {dimension_numbers = #tpu.dot_dimension_numbers<[1], [1], [0], [0], [0, 0, 1, 0], [], []>} : vector<8x128xbf16>, vector<8x128xbf16>, vector<8x8xf32> -> vector<8x8xf32>
    %cst_176 = arith.constant 0.0883883461 : f32
    %327 = vector.broadcast %cst_176 : f32 to vector<8x8xf32>
    %328 = arith.mulf %326, %327 : vector<8x8xf32>
    %329 = vector.broadcast %103 : vector<1x8xf32> to vector<8x8xf32>
    %330 = arith.addf %328, %329 : vector<8x8xf32>
    %cst_177 = arith.constant dense<0xFF800000> : vector<8xf32>
    %331 = vector.multi_reduction <maximumf>, %330, %cst_177 [1] : vector<8x8xf32> to vector<8xf32>
    %332 = vector.shape_cast %331 : vector<8xf32> to vector<8x1xf32>
    %333 = vector.broadcast %332 : vector<8x1xf32> to vector<8x8xf32>
    %334 = arith.subf %330, %333 : vector<8x8xf32>
    %335 = math.exp %334 : vector<8x8xf32>
    %cst_178 = arith.constant dense<0.000000e+00> : vector<8xf32>
    %336 = vector.multi_reduction <add>, %335, %cst_178 [1] : vector<8x8xf32> to vector<8xf32>
    %337 = vector.shape_cast %336 : vector<8xf32> to vector<8x1xf32>
    %338 = tpu.reciprocal %337 {approx = true} : vector<8x1xf32> -> vector<8x1xf32>
    %339 = vector.broadcast %338 : vector<8x1xf32> to vector<8x8xf32>
    %340 = arith.mulf %335, %339 : vector<8x8xf32>
    %341 = arith.truncf %340 : vector<8x8xf32> to vector<8x8xbf16>
    %cst_179 = arith.constant dense<0.000000e+00> : vector<8x128xf32>
    %342 = tpu.matmul %341, %325, %cst_179 {dimension_numbers = #tpu.dot_dimension_numbers<[1], [0], [0], [1], [0, 0, 1, 1], [], []>} : vector<8x8xbf16>, vector<8x128xbf16>, vector<8x128xf32> -> vector<8x128xf32>
    %343 = vector.extract_strided_slice %319 {offsets = [0, 128], sizes = [8, 128], strides = [1, 1]} : vector<8x768xf32> to vector<8x128xf32>
    %344 = arith.truncf %343 : vector<8x128xf32> to vector<8x128xbf16>
    %345 = vector.extract_strided_slice %319 {offsets = [0, 384], sizes = [8, 128], strides = [1, 1]} : vector<8x768xf32> to vector<8x128xf32>
    %346 = arith.truncf %345 : vector<8x128xf32> to vector<8x128xbf16>
    %347 = vector.extract_strided_slice %319 {offsets = [0, 640], sizes = [8, 128], strides = [1, 1]} : vector<8x768xf32> to vector<8x128xf32>
    %348 = arith.truncf %347 : vector<8x128xf32> to vector<8x128xbf16>
    %cst_180 = arith.constant dense<0.000000e+00> : vector<8x8xf32>
    %349 = tpu.matmul %344, %346, %cst_180 {dimension_numbers = #tpu.dot_dimension_numbers<[1], [1], [0], [0], [0, 0, 1, 0], [], []>} : vector<8x128xbf16>, vector<8x128xbf16>, vector<8x8xf32> -> vector<8x8xf32>
    %cst_181 = arith.constant 0.0883883461 : f32
    %350 = vector.broadcast %cst_181 : f32 to vector<8x8xf32>
    %351 = arith.mulf %349, %350 : vector<8x8xf32>
    %352 = vector.broadcast %103 : vector<1x8xf32> to vector<8x8xf32>
    %353 = arith.addf %351, %352 : vector<8x8xf32>
    %cst_182 = arith.constant dense<0xFF800000> : vector<8xf32>
    %354 = vector.multi_reduction <maximumf>, %353, %cst_182 [1] : vector<8x8xf32> to vector<8xf32>
    %355 = vector.shape_cast %354 : vector<8xf32> to vector<8x1xf32>
    %356 = vector.broadcast %355 : vector<8x1xf32> to vector<8x8xf32>
    %357 = arith.subf %353, %356 : vector<8x8xf32>
    %358 = math.exp %357 : vector<8x8xf32>
    %cst_183 = arith.constant dense<0.000000e+00> : vector<8xf32>
    %359 = vector.multi_reduction <add>, %358, %cst_183 [1] : vector<8x8xf32> to vector<8xf32>
    %360 = vector.shape_cast %359 : vector<8xf32> to vector<8x1xf32>
    %361 = tpu.reciprocal %360 {approx = true} : vector<8x1xf32> -> vector<8x1xf32>
    %362 = vector.broadcast %361 : vector<8x1xf32> to vector<8x8xf32>
    %363 = arith.mulf %358, %362 : vector<8x8xf32>
    %364 = arith.truncf %363 : vector<8x8xf32> to vector<8x8xbf16>
    %cst_184 = arith.constant dense<0.000000e+00> : vector<8x128xf32>
    %365 = tpu.matmul %364, %348, %cst_184 {dimension_numbers = #tpu.dot_dimension_numbers<[1], [0], [0], [1], [0, 0, 1, 1], [], []>} : vector<8x8xbf16>, vector<8x128xbf16>, vector<8x128xf32> -> vector<8x128xf32>
    %366 = tpu.concatenate %342, %365 in 1 : vector<8x128xf32>, vector<8x128xf32> -> vector<8x256xf32>
    %367 = arith.truncf %366 : vector<8x256xf32> to vector<8x256xbf16>
    %c1_185 = arith.constant 1 : index
    %c0_186 = arith.constant 0 : index
    %c0_187 = arith.constant 0 : index
    %368 = vector.load %arg10[%c1_185, %c0_186, %c0_187] : memref<2x256x256xbf16, #tpu.memory_space<vmem>>, vector<1x256x256xbf16>
    %369 = vector.shape_cast %368 : vector<1x256x256xbf16> to vector<256x256xbf16>
    %cst_188 = arith.constant dense<0.000000e+00> : vector<8x256xf32>
    %370 = tpu.matmul %367, %369, %cst_188 {dimension_numbers = #tpu.dot_dimension_numbers<[1], [0], [0], [1], [0, 0, 1, 1], [], []>} : vector<8x256xbf16>, vector<256x256xbf16>, vector<8x256xf32> -> vector<8x256xf32>
    %c1_189 = arith.constant 1 : index
    %c0_190 = arith.constant 0 : index
    %c0_191 = arith.constant 0 : index
    %371 = vector.load %arg11[%c1_189, %c0_190, %c0_191] : memref<2x1x256xf32, #tpu.memory_space<vmem>>, vector<1x1x256xf32>
    %372 = vector.shape_cast %371 : vector<1x1x256xf32> to vector<1x256xf32>
    %373 = vector.broadcast %372 : vector<1x256xf32> to vector<8x256xf32>
    %374 = arith.addf %370, %373 : vector<8x256xf32>
    %375 = arith.addf %311, %374 : vector<8x256xf32>
    %c1_192 = arith.constant 1 : index
    %c0_193 = arith.constant 0 : index
    %c0_194 = arith.constant 0 : index
    %376 = vector.load %arg12[%c1_192, %c0_193, %c0_194] : memref<2x2x256xf32, #tpu.memory_space<vmem>>, vector<1x2x256xf32>
    %377 = vector.shape_cast %376 : vector<1x2x256xf32> to vector<2x256xf32>
    %378 = vector.extract_strided_slice %377 {offsets = [0, 0], sizes = [1, 256], strides = [1, 1]} : vector<2x256xf32> to vector<1x256xf32>
    %379 = vector.extract_strided_slice %377 {offsets = [1, 0], sizes = [1, 256], strides = [1, 1]} : vector<2x256xf32> to vector<1x256xf32>
    %cst_195 = arith.constant dense<0.000000e+00> : vector<8xf32>
    %380 = vector.multi_reduction <add>, %375, %cst_195 [1] : vector<8x256xf32> to vector<8xf32>
    %381 = vector.shape_cast %380 : vector<8xf32> to vector<8x1xf32>
    %cst_196 = arith.constant 2.560000e+02 : f32
    %382 = vector.broadcast %cst_196 : f32 to vector<8x1xf32>
    %383 = arith.divf %381, %382 : vector<8x1xf32>
    %384 = vector.broadcast %383 : vector<8x1xf32> to vector<8x256xf32>
    %385 = arith.subf %375, %384 : vector<8x256xf32>
    %386 = arith.mulf %385, %385 : vector<8x256xf32>
    %cst_197 = arith.constant dense<0.000000e+00> : vector<8xf32>
    %387 = vector.multi_reduction <add>, %386, %cst_197 [1] : vector<8x256xf32> to vector<8xf32>
    %388 = vector.shape_cast %387 : vector<8xf32> to vector<8x1xf32>
    %cst_198 = arith.constant 2.560000e+02 : f32
    %389 = vector.broadcast %cst_198 : f32 to vector<8x1xf32>
    %390 = arith.divf %388, %389 : vector<8x1xf32>
    %391 = vector.broadcast %383 : vector<8x1xf32> to vector<8x256xf32>
    %392 = arith.subf %375, %391 : vector<8x256xf32>
    %cst_199 = arith.constant 9.99999996E-13 : f32
    %393 = vector.broadcast %cst_199 : f32 to vector<8x1xf32>
    %394 = arith.addf %390, %393 : vector<8x1xf32>
    %395 = math.rsqrt %394 : vector<8x1xf32>
    %396 = vector.broadcast %395 : vector<8x1xf32> to vector<8x256xf32>
    %397 = arith.mulf %392, %396 : vector<8x256xf32>
    %398 = vector.broadcast %378 : vector<1x256xf32> to vector<8x256xf32>
    %399 = arith.mulf %397, %398 : vector<8x256xf32>
    %400 = vector.broadcast %379 : vector<1x256xf32> to vector<8x256xf32>
    %401 = arith.addf %399, %400 : vector<8x256xf32>
    %402 = arith.truncf %401 : vector<8x256xf32> to vector<8x256xbf16>
    %c1_200 = arith.constant 1 : index
    %c0_201 = arith.constant 0 : index
    %c0_202 = arith.constant 0 : index
    %403 = vector.load %arg13[%c1_200, %c0_201, %c0_202] : memref<2x256x512xbf16, #tpu.memory_space<vmem>>, vector<1x256x512xbf16>
    %404 = vector.shape_cast %403 : vector<1x256x512xbf16> to vector<256x512xbf16>
    %cst_203 = arith.constant dense<0.000000e+00> : vector<8x512xf32>
    %405 = tpu.matmul %402, %404, %cst_203 {dimension_numbers = #tpu.dot_dimension_numbers<[1], [0], [0], [1], [0, 0, 1, 1], [], []>} : vector<8x256xbf16>, vector<256x512xbf16>, vector<8x512xf32> -> vector<8x512xf32>
    %c1_204 = arith.constant 1 : index
    %c0_205 = arith.constant 0 : index
    %c0_206 = arith.constant 0 : index
    %406 = vector.load %arg14[%c1_204, %c0_205, %c0_206] : memref<2x1x512xf32, #tpu.memory_space<vmem>>, vector<1x1x512xf32>
    %407 = vector.shape_cast %406 : vector<1x1x512xf32> to vector<1x512xf32>
    %408 = vector.broadcast %407 : vector<1x512xf32> to vector<8x512xf32>
    %409 = arith.addf %405, %408 : vector<8x512xf32>
    %cst_207 = arith.constant 5.000000e-01 : f32
    %410 = vector.broadcast %cst_207 : f32 to vector<8x512xf32>
    %411 = arith.mulf %410, %409 : vector<8x512xf32>
    %cst_208 = arith.constant 4.471500e-02 : f32
    %412 = vector.broadcast %cst_208 : f32 to vector<8x512xf32>
    %413 = arith.mulf %412, %409 : vector<8x512xf32>
    %414 = arith.mulf %413, %409 : vector<8x512xf32>
    %415 = arith.mulf %414, %409 : vector<8x512xf32>
    %416 = arith.addf %409, %415 : vector<8x512xf32>
    %cst_209 = arith.constant 0.797884583 : f32
    %417 = vector.broadcast %cst_209 : f32 to vector<8x512xf32>
    %418 = arith.mulf %417, %416 : vector<8x512xf32>
    %419 = math.tanh %418 : vector<8x512xf32>
    %cst_210 = arith.constant 1.000000e+00 : f32
    %420 = vector.broadcast %cst_210 : f32 to vector<8x512xf32>
    %421 = arith.addf %420, %419 : vector<8x512xf32>
    %422 = arith.mulf %411, %421 : vector<8x512xf32>
    %423 = arith.truncf %422 : vector<8x512xf32> to vector<8x512xbf16>
    %c1_211 = arith.constant 1 : index
    %c0_212 = arith.constant 0 : index
    %c0_213 = arith.constant 0 : index
    %424 = vector.load %arg15[%c1_211, %c0_212, %c0_213] : memref<2x512x256xbf16, #tpu.memory_space<vmem>>, vector<1x512x256xbf16>
    %425 = vector.shape_cast %424 : vector<1x512x256xbf16> to vector<512x256xbf16>
    %cst_214 = arith.constant dense<0.000000e+00> : vector<8x256xf32>
    %426 = tpu.matmul %423, %425, %cst_214 {dimension_numbers = #tpu.dot_dimension_numbers<[1], [0], [0], [1], [0, 0, 1, 1], [], []>} : vector<8x512xbf16>, vector<512x256xbf16>, vector<8x256xf32> -> vector<8x256xf32>
    %c1_215 = arith.constant 1 : index
    %c0_216 = arith.constant 0 : index
    %c0_217 = arith.constant 0 : index
    %427 = vector.load %arg16[%c1_215, %c0_216, %c0_217] : memref<2x1x256xf32, #tpu.memory_space<vmem>>, vector<1x1x256xf32>
    %428 = vector.shape_cast %427 : vector<1x1x256xf32> to vector<1x256xf32>
    %429 = vector.broadcast %428 : vector<1x256xf32> to vector<8x256xf32>
    %430 = arith.addf %426, %429 : vector<8x256xf32>
    %431 = arith.addf %401, %430 : vector<8x256xf32>
    %c1_218 = arith.constant 1 : index
    %c0_219 = arith.constant 0 : index
    %c0_220 = arith.constant 0 : index
    %432 = vector.load %arg17[%c1_218, %c0_219, %c0_220] : memref<2x2x256xf32, #tpu.memory_space<vmem>>, vector<1x2x256xf32>
    %433 = vector.shape_cast %432 : vector<1x2x256xf32> to vector<2x256xf32>
    %434 = vector.extract_strided_slice %433 {offsets = [0, 0], sizes = [1, 256], strides = [1, 1]} : vector<2x256xf32> to vector<1x256xf32>
    %435 = vector.extract_strided_slice %433 {offsets = [1, 0], sizes = [1, 256], strides = [1, 1]} : vector<2x256xf32> to vector<1x256xf32>
    %cst_221 = arith.constant dense<0.000000e+00> : vector<8xf32>
    %436 = vector.multi_reduction <add>, %431, %cst_221 [1] : vector<8x256xf32> to vector<8xf32>
    %437 = vector.shape_cast %436 : vector<8xf32> to vector<8x1xf32>
    %cst_222 = arith.constant 2.560000e+02 : f32
    %438 = vector.broadcast %cst_222 : f32 to vector<8x1xf32>
    %439 = arith.divf %437, %438 : vector<8x1xf32>
    %440 = vector.broadcast %439 : vector<8x1xf32> to vector<8x256xf32>
    %441 = arith.subf %431, %440 : vector<8x256xf32>
    %442 = arith.mulf %441, %441 : vector<8x256xf32>
    %cst_223 = arith.constant dense<0.000000e+00> : vector<8xf32>
    %443 = vector.multi_reduction <add>, %442, %cst_223 [1] : vector<8x256xf32> to vector<8xf32>
    %444 = vector.shape_cast %443 : vector<8xf32> to vector<8x1xf32>
    %cst_224 = arith.constant 2.560000e+02 : f32
    %445 = vector.broadcast %cst_224 : f32 to vector<8x1xf32>
    %446 = arith.divf %444, %445 : vector<8x1xf32>
    %447 = vector.broadcast %439 : vector<8x1xf32> to vector<8x256xf32>
    %448 = arith.subf %431, %447 : vector<8x256xf32>
    %cst_225 = arith.constant 9.99999996E-13 : f32
    %449 = vector.broadcast %cst_225 : f32 to vector<8x1xf32>
    %450 = arith.addf %446, %449 : vector<8x1xf32>
    %451 = math.rsqrt %450 : vector<8x1xf32>
    %452 = vector.broadcast %451 : vector<8x1xf32> to vector<8x256xf32>
    %453 = arith.mulf %448, %452 : vector<8x256xf32>
    %454 = vector.broadcast %434 : vector<1x256xf32> to vector<8x256xf32>
    %455 = arith.mulf %453, %454 : vector<8x256xf32>
    %456 = vector.broadcast %435 : vector<1x256xf32> to vector<8x256xf32>
    %457 = arith.addf %455, %456 : vector<8x256xf32>
    %458 = vector.extract_strided_slice %457 {offsets = [1, 0], sizes = [6, 256], strides = [1, 1]} : vector<8x256xf32> to vector<6x256xf32>
    %cst_226 = arith.constant dense<0.000000e+00> : vector<256xf32>
    %459 = vector.multi_reduction <add>, %458, %cst_226 [0] : vector<6x256xf32> to vector<256xf32>
    %460 = vector.shape_cast %459 : vector<256xf32> to vector<1x256xf32>
    %461 = arith.mulf %460, %460 : vector<1x256xf32>
    %cst_227 = arith.constant dense<0.000000e+00> : vector<1xf32>
    %462 = vector.multi_reduction <add>, %461, %cst_227 [1] : vector<1x256xf32> to vector<1xf32>
    %463 = vector.shape_cast %462 : vector<1xf32> to vector<1x1xf32>
    %464 = math.sqrt %463 : vector<1x1xf32>
    %cst_228 = arith.constant 9.99999996E-13 : f32
    %465 = vector.broadcast %cst_228 : f32 to vector<1x1xf32>
    %466 = arith.maximumf %464, %465 : vector<1x1xf32>
    %467 = vector.broadcast %466 : vector<1x1xf32> to vector<1x256xf32>
    %468 = arith.divf %460, %467 : vector<1x256xf32>
    %c0_229 = arith.constant 0 : index
    %c0_230 = arith.constant 0 : index
    %c0_231 = arith.constant 0 : index
    %469 = vector.load %arg18[%c0_229, %c0_230, %c0_231] : memref<1x1x256xf32, #tpu.memory_space<vmem>>, vector<1x1x256xf32>
    %470 = vector.shape_cast %469 : vector<1x1x256xf32> to vector<1x256xf32>
    %471 = vector.shape_cast %468 : vector<1x256xf32> to vector<1x1x256xf32>
    tpu.vector_store %arg18[%c0_229, %c0_230, %c0_231], %471 {strides = array<i32>} : memref<1x1x256xf32, #tpu.memory_space<vmem>>, vector<1x1x256xf32>,
    return
  }
  func.func @transform_1(%arg0: i32, %arg1: memref<2x8xi32, #tpu.memory_space<smem>>, %arg2: memref<2x8xi32, #tpu.memory_space<smem>>, %arg3: memref<2xi32, #tpu.memory_space<smem>>) -> (i32, i32, i32) {
    %c0_i32 = arith.constant 0 : i32
    %c0_i32_0 = arith.constant 0 : i32
    %c0_i32_1 = arith.constant 0 : i32
    %c0_i32_2 = arith.constant 0 : i32
    return %c0_i32, %c0_i32_0, %c0_i32_1 : i32, i32, i32
  }
  func.func @transform_2(%arg0: i32, %arg1: memref<2x8xi32, #tpu.memory_space<smem>>, %arg2: memref<2x8xi32, #tpu.memory_space<smem>>, %arg3: memref<2xi32, #tpu.memory_space<smem>>) -> (i32, i32) {
    %c0_i32 = arith.constant 0 : i32
    %c0_i32_0 = arith.constant 0 : i32
    %c0_i32_1 = arith.constant 0 : i32
    return %c0_i32, %c0_i32_0 : i32, i32
  }
  func.func @transform_3(%arg0: i32, %arg1: memref<2x8xi32, #tpu.memory_space<smem>>, %arg2: memref<2x8xi32, #tpu.memory_space<smem>>, %arg3: memref<2xi32, #tpu.memory_space<smem>>) -> (i32, i32) {
    %c0_i32 = arith.constant 0 : i32
    %c0_i32_0 = arith.constant 0 : i32
    %c0_i32_1 = arith.constant 0 : i32
    return %c0_i32, %c0_i32_0 : i32, i32
  }
  func.func @transform_4(%arg0: i32, %arg1: memref<2x8xi32, #tpu.memory_space<smem>>, %arg2: memref<2x8xi32, #tpu.memory_space<smem>>, %arg3: memref<2xi32, #tpu.memory_space<smem>>) -> (i32, i32, i32) {
    %c0_i32 = arith.constant 0 : i32
    %c0_i32_0 = arith.constant 0 : i32
    %c0_i32_1 = arith.constant 0 : i32
    %c0_i32_2 = arith.constant 0 : i32
    return %c0_i32, %c0_i32_0, %c0_i32_1 : i32, i32, i32
  }
  func.func @transform_5(%arg0: i32, %arg1: memref<2x8xi32, #tpu.memory_space<smem>>, %arg2: memref<2x8xi32, #tpu.memory_space<smem>>, %arg3: memref<2xi32, #tpu.memory_space<smem>>) -> (i32, i32, i32) {
    %c0_i32 = arith.constant 0 : i32
    %c0_i32_0 = arith.constant 0 : i32
    %c0_i32_1 = arith.constant 0 : i32
    %c0_i32_2 = arith.constant 0 : i32
    return %c0_i32, %c0_i32_0, %c0_i32_1 : i32, i32, i32
  }
  func.func @transform_6(%arg0: i32, %arg1: memref<2x8xi32, #tpu.memory_space<smem>>, %arg2: memref<2x8xi32, #tpu.memory_space<smem>>, %arg3: memref<2xi32, #tpu.memory_space<smem>>) -> (i32, i32, i32) {
    %c0_i32 = arith.constant 0 : i32
    %c0_i32_0 = arith.constant 0 : i32
    %c0_i32_1 = arith.constant 0 : i32
    %c0_i32_2 = arith.constant 0 : i32
    return %c0_i32, %c0_i32_0, %c0_i32_1 : i32, i32, i32
  }
  func.func @transform_7(%arg0: i32, %arg1: memref<2x8xi32, #tpu.memory_space<smem>>, %arg2: memref<2x8xi32, #tpu.memory_space<smem>>, %arg3: memref<2xi32, #tpu.memory_space<smem>>) -> (i32, i32, i32) {
    %c0_i32 = arith.constant 0 : i32
    %c0_i32_0 = arith.constant 0 : i32
    %c0_i32_1 = arith.constant 0 : i32
    %c0_i32_2 = arith.constant 0 : i32
    return %c0_i32, %c0_i32_0, %c0_i32_1 : i32, i32, i32
  }
  func.func @transform_8(%arg0: i32, %arg1: memref<2x8xi32, #tpu.memory_space<smem>>, %arg2: memref<2x8xi32, #tpu.memory_space<smem>>, %arg3: memref<2xi32, #tpu.memory_space<smem>>) -> (i32, i32, i32) {
    %c0_i32 = arith.constant 0 : i32
    %c0_i32_0 = arith.constant 0 : i32
    %c0_i32_1 = arith.constant 0 : i32
    %c0_i32_2 = arith.constant 0 : i32
    return %c0_i32, %c0_i32_0, %c0_i32_1 : i32, i32, i32
  }
  func.func @transform_9(%arg0: i32, %arg1: memref<2x8xi32, #tpu.memory_space<smem>>, %arg2: memref<2x8xi32, #tpu.memory_space<smem>>, %arg3: memref<2xi32, #tpu.memory_space<smem>>) -> (i32, i32, i32) {
    %c0_i32 = arith.constant 0 : i32
    %c0_i32_0 = arith.constant 0 : i32
    %c0_i32_1 = arith.constant 0 : i32
    %c0_i32_2 = arith.constant 0 : i32
    return %c0_i32, %c0_i32_0, %c0_i32_1 : i32, i32, i32
  }
  func.func @transform_10(%arg0: i32, %arg1: memref<2x8xi32, #tpu.memory_space<smem>>, %arg2: memref<2x8xi32, #tpu.memory_space<smem>>, %arg3: memref<2xi32, #tpu.memory_space<smem>>) -> (i32, i32, i32) {
    %c0_i32 = arith.constant 0 : i32
    %c0_i32_0 = arith.constant 0 : i32
    %c0_i32_1 = arith.constant 0 : i32
    %c0_i32_2 = arith.constant 0 : i32
    return %c0_i32, %c0_i32_0, %c0_i32_1 : i32, i32, i32
  }
  func.func @transform_11(%arg0: i32, %arg1: memref<2x8xi32, #tpu.memory_space<smem>>, %arg2: memref<2x8xi32, #tpu.memory_space<smem>>, %arg3: memref<2xi32, #tpu.memory_space<smem>>) -> (i32, i32, i32) {
    %c0_i32 = arith.constant 0 : i32
    %c0_i32_0 = arith.constant 0 : i32
    %c0_i32_1 = arith.constant 0 : i32
    %c0_i32_2 = arith.constant 0 : i32
    return %c0_i32, %c0_i32_0, %c0_i32_1 : i32, i32, i32
  }
  func.func @transform_12(%arg0: i32, %arg1: memref<2x8xi32, #tpu.memory_space<smem>>, %arg2: memref<2x8xi32, #tpu.memory_space<smem>>, %arg3: memref<2xi32, #tpu.memory_space<smem>>) -> (i32, i32, i32) {
    %c0_i32 = arith.constant 0 : i32
    %c0_i32_0 = arith.constant 0 : i32
    %c0_i32_1 = arith.constant 0 : i32
    %c0_i32_2 = arith.constant 0 : i32
    return %c0_i32, %c0_i32_0, %c0_i32_1 : i32, i32, i32
  }
  func.func @transform_13(%arg0: i32, %arg1: memref<2x8xi32, #tpu.memory_space<smem>>, %arg2: memref<2x8xi32, #tpu.memory_space<smem>>, %arg3: memref<2xi32, #tpu.memory_space<smem>>) -> (i32, i32, i32) {
    %c0_i32 = arith.constant 0 : i32
    %c0_i32_0 = arith.constant 0 : i32
    %c0_i32_1 = arith.constant 0 : i32
    %c0_i32_2 = arith.constant 0 : i32
    return %c0_i32, %c0_i32_0, %c0_i32_1 : i32, i32, i32
  }
  func.func @transform_14(%arg0: i32, %arg1: memref<2x8xi32, #tpu.memory_space<smem>>, %arg2: memref<2x8xi32, #tpu.memory_space<smem>>, %arg3: memref<2xi32, #tpu.memory_space<smem>>) -> (i32, i32, i32) {
    %c0_i32 = arith.constant 0 : i32
    %c0_i32_0 = arith.constant 0 : i32
    %c0_i32_1 = arith.constant 0 : i32
    return %arg0, %c0_i32, %c0_i32_0 : i32, i32, i32
  }
}

</mosaic_0001>

<bundles_post_ra>
// kernel: tpu_custom_call.1
= control target key start
LH: loop header
LB: loop body
LE: loop exit
PB: predicated region body
PF: predicated region fallthrough
CT: control target
= control target key end

     0   :  { %s8856_s0 = inlined_call_operand.hbm [shape: s32[2,8], index: 0, kind: input, shape index: {}]   ;;  %s8857_s3 = inlined_call_operand.hbm [shape: f32[64,256], index: 3, kind: input, shape index: {}]   ;;  %s8858_s4 = inlined_call_operand.hbm [shape: f32[2,1,256], index: 4, kind: input, shape index: {}]   ;;  %s8859_s5 = inlined_call_operand.vmem [shape: f32[8,256], index: 5, kind: input, shape index: {}]   ;;  %s8860_s6 = inlined_call_operand.hbm [shape: f32[2,256], index: 6, kind: input, shape index: {}]   ;;  %s8861_s7 = inlined_call_operand.hbm [shape: bf16[2,256,768], index: 7, kind: input, shape index: {}]   ;;  %s8862_s8 = inlined_call_operand.vmem [shape: f32[2,1,768], index: 8, kind: input, shape index: {}]   ;;  %s8863_s9 = inlined_call_operand.hbm [shape: bf16[2,256,256], index: 9, kind: input, shape index: {}]   ;;  %s8864_s10 = inlined_call_operand.hbm [shape: f32[2,1,256], index: 10, kind: input, shape index: {}]   ;;  %s8865_s11 = inlined_call_operand.vmem [shape: f32[2,2,256], index: 11, kind: input, shape index: {}]   ;;  %s8866_s12 = inlined_call_operand.hbm [shape: bf16[2,256,512], index: 12, kind: input, shape index: {}]   ;;  %s8867_s13 = inlined_call_operand.vmem [shape: f32[2,1,512], index: 13, kind: input, shape index: {}]   ;;  %s8868_s14 = inlined_call_operand.hbm [shape: bf16[2,512,256], index: 14, kind: input, shape index: {}]   ;;  %s8869_s15 = inlined_call_operand.vmem [shape: f32[2,1,256], index: 15, kind: input, shape index: {}]   ;;  %s8870_s16 = inlined_call_operand.vmem [shape: f32[2,2,256], index: 16, kind: input, shape index: {}]   ;;  %s8871_s17 = inlined_call_operand.hbm [shape: f32[2,1,256], index: 17, kind: output, shape index: {}]   ;;  %s8872_s1 = inlined_call_operand.hbm [shape: s32[2,8], index: 1, kind: input, shape index: {}]   ;;  %s8873_s2 = inlined_call_operand.hbm [shape: s32[2], index: 2, kind: input, shape index: {}]  }
   0x1   :  { %8904 = sst [smem:[#allocation52_spill]] %s8856_s0 }
   0x2   :  { %8905 = sst [smem:[#allocation53_spill]] %s8857_s3  ;;  %s8917_s26 = sld [smem:[#allocation52_spill]] }
   0x3   :  { %8906 = sst [smem:[#allocation54_spill]] %s8858_s4 }
   0x4   :  { %8907 = sst [smem:[#allocation55_spill]] %s8860_s6 }
   0x5   :  { %8908 = sst [smem:[#allocation56_spill]] %s8861_s7 }
   0x6   :  { %8909 = sst [smem:[#allocation57_spill]] %s8863_s9 }
   0x7   :  { %8910 = sst [smem:[#allocation58_spill]] %s8864_s10 }
   0x8   :  { %8911 = sst [smem:[#allocation59_spill]] %s8866_s12 }
   0x9   :  { %8912 = sst [smem:[#allocation60_spill]] %s8867_s13  ;;  %s7322_s13 = scalar_lea.hbm %s8917_s26, 32 }
   0xa   :  { %8913 = sst [smem:[#allocation61_spill]] %s8868_s14  ;;  %p7323_p0 = scmp.ne.s32.totalorder %s8917_s26, %s7322_s13 }
   0xb   :  { %8914 = sst [smem:[#allocation62_spill]] %s8869_s15  ;;  %p7326_p1 = scmp.lt.u32.totalorder %s7322_s13, %s8917_s26 }
   0xc   :  { %8915 = sst [smem:[#allocation63_spill]] %s8870_s16 }
   0xd   :  { %8916 = sst [smem:[#allocation64_spill]] %s8871_s17  ;;  %p7328_p2 = pnand %p7326_p1, %p7323_p0 }
   0xf   :  { %7331 = shalt.err (!%p7328_p2)  }
  0x10   :  { %s7838_s30 = smov [#allocation6]   ;;  %s7332_s21 = scalar_lea.hbm %s8872_s1, 32 }
  0x11   :  { %23 = dma.hbm_to_smem %s8917_s26, 32, %s7838_s30, [#allocation5] }
  0x12   :  { %p7333_p3 = scmp.ne.s32.totalorder %s8872_s1, %s7332_s21  ;;  %p7336_p4 = scmp.lt.u32.totalorder %s7332_s21, %s8872_s1 }
  0x14   :  { %p7338_p5 = pnand %p7336_p4, %p7333_p3 }
  0x16   :  { %7341 = shalt.err (!%p7338_p5)  }
  0x17   :  { %s7839_s13 = smov [#allocation7]   ;;  %s7342_s0 = scalar_lea.hbm %s8873_s2, 16 }
  0x18   :  { %25 = dma.hbm_to_smem %s8872_s1, 32, %s7839_s13, [#allocation5] }
  0x19   :  { %p7343_p6 = scmp.ne.s32.totalorder %s8873_s2, %s7342_s0  ;;  %p7346_p7 = scmp.lt.u32.totalorder %s7342_s0, %s8873_s2 }
  0x1b   :  { %p7348_p8 = pnand %p7346_p7, %p7343_p6 }
  0x1d   :  { %7351 = shalt.err (!%p7348_p8)  }
  0x1e   :  { %s7840_s20 = smov [#allocation8]  }
  0x1f   :  { %27 = dma.hbm_to_smem %s8873_s2, 16, %s7840_s20, [#allocation5] }
  0x20   :  { %7784 = dma.done.wait [#allocation5], 80 }
  0x21   :  { %7785 = vsyncadd [#allocation5], 4294967216 }
  0x22   :  { %29 = sfence }
  0x23   :  { %30 = vsyncpa [#allocation10], 0 }
  0x24   :  { %31 = vsyncpa [#allocation13], 0 }
  0x25   :  { %32 = vsyncpa [#allocation16], 0 }
  0x26   :  { %33 = vsyncpa [#allocation19], 0 }
  0x27   :  { %34 = vsyncpa [#allocation11], 0 }
  0x28   :  { %36 = vsyncpa [#allocation11 + $0x1], 0  ;;  %s7997_s1 = smov 0   ;;  %s7999_s23 = smov 0  }
  0x29   :  { %s8001_s24 = smov 0   ;;  %s8003_s25 = smov 0  }
  0x2a LB: > { %8918 = sst [smem:[#allocation44_spill]] %s7824_s1  ;;  %s8018_s2 = sadd.s32 4294967295, %s7836_s25   ;;  %s7836_s25 = sphi %s8003_s25, %s8973_s25   ;;  %s7832_s24 = sphi %s8001_s24, %s8976_s24   ;;  %s7828_s23 = sphi %s7999_s23, %s8975_s23   ;;  %s7824_s1 = sphi %s7997_s1, %s8974_s1  }
  0x2b   : > { %8919 = sst [smem:[#allocation45_spill]] %s7828_s23  ;;  %s5731_s13 = sadd.s32 4294967294, %s7836_s25  }
  0x2c   : > { %8920 = sst [smem:[#allocation46_spill]] %s7832_s24  ;;  %s8022_s27 = sadd.s32 1, %s7836_s25  }
  0x2d   : > { %8921 = sst [smem:[#allocation47_spill]] %s7836_s25  ;;  %s322_s28 = sadd.s32 1, %s7832_s24 }
  0x2e   : > { %8922 = sst [smem:[#allocation48_spill]] %s8022_s27  ;;  %s319_s26 = ssub.s32 %s7836_s25, %s8022_s27 }
  0x2f   : > { %p332_p9 = scmp.ne.s32.totalorder %s7832_s24, %s7828_s23  ;;  %p320_p10 = scmp.eq.s32.totalorder %s319_s26, 0 }
  0x30   : > { %p333_p11 = scmp.eq.s32.totalorder %s8018_s2, 1  ;;  %p338_p12 = scmp.ne.s32.totalorder %s7828_s23, %s7824_s1 }
  0x31   : > { %p339_p13 = scmp.eq.s32.totalorder %s5731_s13, 1  ;;  %p5732_p2 = scmp.ge.s32.totalorder %s7836_s25, 1 }
  0x32   : > { %s8033_s29 = scalar_select %p320_p10, %s7832_s24, %s322_s28  }
  0x33   : > { %p8035_p0 = por %p333_p11, %p332_p9  ;;  %p8039_p1 = por %p339_p13, %p338_p12 }
  0x34   : > { %8923 = sst [smem:[#allocation49_spill]] %s8033_s29  ;;  %p346_p3 = scmp.lt.s32.totalorder %s7836_s25, 3 }
  0x35   : > { %s8924_s0 = scalar_select %p8035_p0, 1, 0 }
  0x36   : > { %s8926_s30 = scalar_select %p8039_p1, 1, 0 }
  0x37   : > { %8925 = sst [smem:[#allocation50_spill]] %s8924_s0  ;;  %p8881_p4 = scmp.eq.s32.totalorder %s8018_s2, 0 }
  0x38   : > { %8927 = sst [smem:[#allocation51_spill]] %s8926_s30  ;;  %p8046_p5 = pnand %p5732_p2, %p346_p3 }
  0x39   : > { %s7841_s19 = smov [#allocation12]   ;;  %s7842_s20 = smov [#allocation15]  }
  0x3a   : > { %s8928_s18 = scalar_select %p8046_p5, 1, 0 }
  0x3b   : > { %s375_s3 = sshll.u32 %s7841_s19, 4  ;;  %p6403_p6 = pneg %p8046_p5  ;;  %s376_s3 = int_to_ptr.vmem [resolvable:$true] %s375_s3 }
  0x3c   : > { %s401_s21 = sshll.u32 %s7842_s20, 4  ;;  %s7843_s13 = smov [#allocation18]   ;;  %s8058_s21 = int_to_ptr.vmem [resolvable:$true] %s401_s21 }
  0x3d   : > { %p8054_p7 = pnand %p8881_p4, %p6403_p6  ;;  %s8060_s28 = sshll.u32 %s7843_s13, 4  ;;  %s431_s28 = int_to_ptr.vmem [resolvable:$true] %s8060_s28 }
  0x3e   : > { %s8930_s6 = sld [smem:[#allocation55_spill]] }
  0x3f   : > { %p8070_p9 = pneg %p8054_p7 }
  0x44   : > { %s7352_s19 = scalar_lea.hbm %s8930_s6, 64 }
  0x45   : > { %p7353_p8 = scmp.ne.s32.totalorder %s8930_s6, %s7352_s19  ;;  %p7359_p12 = scmp.lt.u32.totalorder %s7352_s19, %s8930_s6 }
  0x47   : > { %p7355_p10 = pnand %p8070_p9, %p7353_p8 }
  0x49   : > { %p7356_p11 = pneg %p7355_p10 }
  0x4b   : > { %p7361_p13 = pnand %p7359_p12, %p7356_p11 }
  0x4d   : > { %7364 = shalt.err (!%p7361_p13)
}
  0x4e   : > { %s7365_s29 = scalar_lea.vmem %s376_s3, 64  ;;  %p7373_p4 = scmp.lt.s32.totalorder %s376_s3, %s376_s3 }
  0x4f   : > { %p7366_p2 = scmp.ne.s32.totalorder %s376_s3, %s7365_s29  ;;  %p7374_p1 = scmp.lt.s32.totalorder %s7365_s29, %s7365_s29 }
  0x51   : > { %p7368_p3 = pnand %p7366_p2, %p8070_p9  ;;  %p7375_p0 = por %p7374_p1, %p7373_p4 }
  0x53   : > { %p7369_p6 = pneg %p7368_p3 }
  0x55   : > { %p7376_p5 = pnand %p7375_p0, %p7369_p6 }
  0x57   : > { %7379 = shalt.err (!%p7376_p5)
}
  0x58   : > { %6409 = dma.hbm_to_vmem [thread:$0]  (!%p8054_p7), %s8930_s6, 64, %s376_s3, [#allocation13]  }
  0x59   : > { %s8932_s9 = sld [smem:[#allocation57_spill]] }
  0x5f   : > { %s7380_s19 = scalar_lea.hbm %s8932_s9, 8192 }
  0x60   : > { %p7381_p8 = scmp.ne.s32.totalorder %s8932_s9, %s7380_s19  ;;  %p7387_p0 = scmp.lt.u32.totalorder %s7380_s19, %s8932_s9 }
  0x62   : > { %p7383_p10 = pnand %p7381_p8, %p8070_p9 }
  0x64   : > { %p7384_p1 = pneg %p7383_p10 }
  0x66   : > { %p7389_p4 = pnand %p7387_p0, %p7384_p1 }
  0x68   : > { %7392 = shalt.err (!%p7389_p4)
}
  0x69   : > { %s7393_s3 = scalar_lea.vmem %s8058_s21, 8192  ;;  %p7401_p13 = scmp.lt.s32.totalorder %s8058_s21, %s8058_s21 }
  0x6a   : > { %p7394_p5 = scmp.ne.s32.totalorder %s8058_s21, %s7393_s3  ;;  %p7402_p2 = scmp.lt.s32.totalorder %s7393_s3, %s7393_s3 }
  0x6c   : > { %p7396_p11 = pnand %p7394_p5, %p8070_p9  ;;  %p7403_p3 = por %p7402_p2, %p7401_p13 }
  0x6e   : > { %p7397_p12 = pneg %p7396_p11 }
  0x70   : > { %p7404_p6 = pnand %p7403_p3, %p7397_p12 }
  0x72   : > { %7407 = shalt.err (!%p7404_p6)
}
  0x73   : > { %s8886_s1 = smov 128   ;;  %s8887_s25 = smov 8  }
  0x74   : > { %6415 = dma.hbm_to_vmem [thread:$0]  (!%p8054_p7), %s8932_s9, 8192, %s8058_s21, [#allocation16], %s8886_s1, %s8886_s1, %s8887_s25  }
  0x75   : > { %s8933_s12 = sld [smem:[#allocation59_spill]] }
  0x7b   : > { %s7408_s19 = scalar_lea.hbm %s8933_s12, 16384 }
  0x7c   : > { %p7409_p8 = scmp.ne.s32.totalorder %s8933_s12, %s7408_s19  ;;  %p7415_p0 = scmp.lt.u32.totalorder %s7408_s19, %s8933_s12 }
  0x7e   : > { %p7411_p10 = pnand %p7409_p8, %p8070_p9 }
  0x80   : > { %p7412_p1 = pneg %p7411_p10 }
  0x82   : > { %p7417_p4 = pnand %p7415_p0, %p7412_p1 }
  0x84   : > { %7420 = shalt.err (!%p7417_p4)
}
  0x85   : > { %s7421_s24 = scalar_lea.vmem %s431_s28, 16384  ;;  %p7429_p13 = scmp.lt.s32.totalorder %s431_s28, %s431_s28 }
  0x86   : > { %p7422_p5 = scmp.ne.s32.totalorder %s431_s28, %s7421_s24  ;;  %p7430_p2 = scmp.lt.s32.totalorder %s7421_s24, %s7421_s24 }
  0x88   : > { %p7424_p11 = pnand %p7422_p5, %p8070_p9  ;;  %p7431_p3 = por %p7430_p2, %p7429_p13 }
  0x8a   : > { %p7425_p12 = pneg %p7424_p11 }
  0x8c   : > { %p7432_p6 = pnand %p7431_p3, %p7425_p12 }
  0x8e   : > { %7435 = shalt.err (!%p7432_p6)
}
  0x8f   : > { %s7846_s21 = smov 256   ;;  %s7847_s27 = smov 16  }
  0x90   : > { %6421 = dma.hbm_to_vmem [thread:$0]  (!%p8054_p7), %s8933_s12, 16384, %s431_s28, [#allocation19], %s7846_s21, %s7846_s21, %s7847_s27  }
  0x91   : > { %s7848_s26 = smov [#allocation9]   ;;  %s8934_s4 = sld [smem:[#allocation54_spill]] }
  0x92   : > { %s358_s19 = sshll.u32 %s7848_s26, 4  ;;  %s359_s19 = int_to_ptr.vmem [resolvable:$true] %s358_s19 }
  0x97   : > { %s7436_s3 = scalar_lea.hbm %s8934_s4, 64 }
  0x98   : > { %p7437_p8 = scmp.ne.s32.totalorder %s8934_s4, %s7436_s3  ;;  %p7443_p0 = scmp.lt.u32.totalorder %s7436_s3, %s8934_s4 }
  0x9a   : > { %p7439_p10 = pnand %p7437_p8, %p8070_p9 }
  0x9c   : > { %p7440_p1 = pneg %p7439_p10 }
  0x9e   : > { %p7445_p4 = pnand %p7443_p0, %p7440_p1 }
  0xa0   : > { %7448 = shalt.err (!%p7445_p4)
}
  0xa1   : > { %s7449_s28 = scalar_lea.vmem %s359_s19, 64  ;;  %p7457_p13 = scmp.lt.s32.totalorder %s359_s19, %s359_s19 }
  0xa2   : > { %p7450_p5 = scmp.ne.s32.totalorder %s359_s19, %s7449_s28  ;;  %p7458_p2 = scmp.lt.s32.totalorder %s7449_s28, %s7449_s28 }
  0xa4   : > { %p7452_p11 = pnand %p7450_p5, %p8070_p9  ;;  %p7459_p3 = por %p7458_p2, %p7457_p13 }
  0xa6   : > { %p7453_p12 = pneg %p7452_p11 }
  0xa8   : > { %p7460_p6 = pnand %p7459_p3, %p7453_p12 }
  0xaa   : > { %7463 = shalt.err (!%p7460_p6)
}
  0xab   : > { %s8888_s1 = smov 32   ;;  %s8889_s21 = smov 2  }
  0xac   : > { %6406 = dma.hbm_to_vmem [thread:$0]  (!%p8054_p7), %s8934_s4, 64, %s359_s19, [#allocation10], %s8888_s1, %s8888_s1, %s8889_s21  }
  0xad   : > { %s7851_s27 = smov [#allocation14]   ;;  %s8935_s7 = sld [smem:[#allocation56_spill]] }
  0xae   : > { %s385_s6 = sshll.u32 %s7851_s27, 4  ;;  %s386_s6 = int_to_ptr.vmem [resolvable:$true] %s385_s6 }
  0xb3   : > { %s7464_s13 = scalar_lea.hbm %s8935_s7, 24576 }
  0xb4   : > { %p7465_p8 = scmp.ne.s32.totalorder %s8935_s7, %s7464_s13  ;;  %p7471_p0 = scmp.lt.u32.totalorder %s7464_s13, %s8935_s7 }
  0xb6   : > { %p7467_p10 = pnand %p7465_p8, %p8070_p9 }
  0xb8   : > { %p7468_p1 = pneg %p7467_p10 }
  0xba   : > { %p7473_p4 = pnand %p7471_p0, %p7468_p1 }
  0xbc   : > { %7476 = shalt.err (!%p7473_p4)
}
  0xbd   : > { %s7477_s19 = scalar_lea.vmem %s386_s6, 24576  ;;  %p7485_p13 = scmp.lt.s32.totalorder %s386_s6, %s386_s6 }
  0xbe   : > { %p7478_p5 = scmp.ne.s32.totalorder %s386_s6, %s7477_s19  ;;  %p7486_p2 = scmp.lt.s32.totalorder %s7477_s19, %s7477_s19 }
  0xc0   : > { %p7480_p11 = pnand %p7478_p5, %p8070_p9  ;;  %p7487_p3 = por %p7486_p2, %p7485_p13 }
  0xc2   : > { %p7481_p12 = pneg %p7480_p11 }
  0xc4   : > { %p7488_p6 = pnand %p7487_p3, %p7481_p12 }
  0xc6   : > { %7491 = shalt.err (!%p7488_p6)
}
  0xc7   : > { %s7852_s9 = smov 384   ;;  %s7853_s25 = smov 24  }
  0xc8   : > { %6412 = dma.hbm_to_vmem [thread:$0]  (!%p8054_p7), %s8935_s7, 24576, %s386_s6, [#allocation13], %s7852_s9, %s7852_s9, %s7853_s25  }
  0xc9   : > { %s7854_s26 = smov [#allocation17]   ;;  %s7855_s29 = smov [#allocation20]  }
  0xca   : > { %s414_s13 = sshll.u32 %s7854_s26, 4  ;;  %s446_s3 = sshll.u32 %s7855_s29, 4  ;;  %s415_s13 = int_to_ptr.vmem [resolvable:$true] %s414_s13  ;;  %s447_s3 = int_to_ptr.vmem [resolvable:$true] %s446_s3 }
  0xcb   : > { %s8936_s10 = sld [smem:[#allocation58_spill]] }
  0xd1   : > { %s7492_s19 = scalar_lea.hbm %s8936_s10, 64 }
  0xd2   : > { %p7493_p8 = scmp.ne.s32.totalorder %s8936_s10, %s7492_s19  ;;  %p7499_p0 = scmp.lt.u32.totalorder %s7492_s19, %s8936_s10 }
  0xd4   : > { %p7495_p10 = pnand %p7493_p8, %p8070_p9 }
  0xd6   : > { %p7496_p1 = pneg %p7495_p10 }
  0xd8   : > { %p7501_p4 = pnand %p7499_p0, %p7496_p1 }
  0xda   : > { %7504 = shalt.err (!%p7501_p4)
}
  0xdb   : > { %s7505_s6 = scalar_lea.vmem %s415_s13, 64  ;;  %p7513_p13 = scmp.lt.s32.totalorder %s415_s13, %s415_s13 }
  0xdc   : > { %p7506_p5 = scmp.ne.s32.totalorder %s415_s13, %s7505_s6  ;;  %p7514_p2 = scmp.lt.s32.totalorder %s7505_s6, %s7505_s6 }
  0xde   : > { %p7508_p11 = pnand %p7506_p5, %p8070_p9  ;;  %p7515_p3 = por %p7514_p2, %p7513_p13 }
  0xe0   : > { %p7509_p12 = pneg %p7508_p11 }
  0xe2   : > { %p7516_p6 = pnand %p7515_p3, %p7509_p12 }
  0xe4   : > { %7519 = shalt.err (!%p7516_p6)
}
  0xe5   : > { %s8937_s1 = smov 2   ;;  %s8938_s21 = smov 32  }
  0xe6   : > { %6418 = dma.hbm_to_vmem [thread:$0]  (!%p8054_p7), %s8936_s10, 64, %s415_s13, [#allocation16], %s8938_s21, %s8938_s21, %s8937_s1  }
  0xe7   : > { %s8939_s14 = sld [smem:[#allocation61_spill]] }
  0xed   : > { %s7520_s27 = scalar_lea.hbm %s8939_s14, 16384 }
  0xee   : > { %p7521_p8 = scmp.ne.s32.totalorder %s8939_s14, %s7520_s27  ;;  %p7527_p0 = scmp.lt.u32.totalorder %s7520_s27, %s8939_s14 }
  0xf0   : > { %p7523_p10 = pnand %p7521_p8, %p8070_p9 }
  0xf2   : > { %p7524_p1 = pneg %p7523_p10 }
  0xf4   : > { %p7529_p4 = pnand %p7527_p0, %p7524_p1 }
  0xf6   : > { %7532 = shalt.err (!%p7529_p4)
}
  0xf7   : > { %s7533_s28 = scalar_lea.vmem %s447_s3, 16384  ;;  %p7541_p13 = scmp.lt.s32.totalorder %s447_s3, %s447_s3 }
  0xf8   : > { %p7534_p5 = scmp.ne.s32.totalorder %s447_s3, %s7533_s28  ;;  %p7542_p2 = scmp.lt.s32.totalorder %s7533_s28, %s7533_s28 }
  0xfa   : > { %p7536_p11 = pnand %p7534_p5, %p8070_p9  ;;  %p7543_p3 = por %p7542_p2, %p7541_p13 }
  0xfc   : > { %p7537_p12 = pneg %p7536_p11 }
  0xfe   : > { %p7544_p6 = pnand %p7543_p3, %p7537_p12 }
 0x100   : > { %7547 = shalt.err (!%p7544_p6)
}
 0x101   : > { %s8940_s13 = smov 8   ;;  %s8941_s19 = smov 128  }
 0x102   : > { %6424 = dma.hbm_to_vmem [thread:$0]  (!%p8054_p7), %s8939_s14, 16384, %s447_s3, [#allocation19], %s8941_s19, %s8941_s19, %s8940_s13  }
 0x103   : > { %p8942_p8 = scmp.ne.s32.totalorder %s8928_s18, 0 }
 0x104   : > { %p8943_p9 = scmp.eq.s32.totalorder (!%p8942_p8), %s8018_s2, 0 }
 0x105   : > { %468 = sbr.rel (%p8942_p8) target bundleno = 6697 (0x1a29), region = 72 }
 0x10c   : > { %7787 = dma.done.wait (%p8943_p9), [#allocation10], 64   ;;  %p8944_p10 = pmov %p8943_p9 }
 0x10d   : > { %p8945_p1 = pmov %p8943_p9 }
 0x10e   : > { %7789 = vsyncadd (%p8944_p10), [#allocation10], 4294967232 }
 0x10f   : > { %7791 = dma.done.wait (%p8945_p1), [#allocation13], 24640   ;;  %p8946_p0 = pmov %p8945_p1 }
 0x111   : > { %7793 = vsyncadd (%p8946_p0), [#allocation13], 4294942656  ;;  %p8947_p4 = pmov %p8946_p0 }
 0x112   : > { %p8948_p7 = pmov %p8946_p0 }
 0x113   : > { %7795 = dma.done.wait (%p8947_p4), [#allocation16], 8256  }
 0x114   : > { %7797 = vsyncadd (%p8948_p7), [#allocation16], 4294959040  ;;  %p8949_p5 = pmov %p8946_p0 }
 0x115   : > { %p8950_p11 = pmov %p8946_p0 }
 0x116   : > { %7799 = dma.done.wait (%p8949_p5), [#allocation19], 32768  }
 0x117   : > { %7801 = vsyncadd (%p8950_p11), [#allocation19], 4294934528  ;;  %s8890_s18 = sand.u32 1, %s7828_s23   ;;  %s8232_s22 = sshll.u32 %s8018_s2, 7 }
 0x118   : > { %s8236_s20 = sshll.u32 %s8890_s18, 1  ;;  %s533_s3 = sld [smem:[#allocation6 + %s8232_s22]] }
 0x119   : > { %s7856_s21 = smov [#allocation2]   ;;  %s8891_s12 = sadd.s32 1, %s8232_s22 }
 0x11a   : > { %s541_s4 = sshll.u32 %s7856_s21, 4  ;;  %s8244_s9 = sld [smem:[#allocation6 + %s8891_s12]]  ;;  %s8239_s4 = int_to_ptr.vmem [resolvable:$true] %s541_s4 }
 0x11b   : > { %s7857_s25 = smov [#allocation2 + $0x1]   ;;  %s8892_s28 = sadd.s32 2, %s8232_s22 }
 0x11c   : > { %s556_s27 = sshll.u32 %s7857_s25, 4  ;;  %s8251_s19 = sld [smem:[#allocation6 + %s8892_s28]]  ;;  %s8246_s27 = int_to_ptr.vmem [resolvable:$true] %s556_s27 }
 0x11d   : > { %s8951_s21 = sld [smem:[#allocation53_spill]] }
 0x11e   : > { %s534_s30 = sshrl.u32 %s533_s3, 3  ;;  %s535_s26 = sand.u32 7, %s533_s3  }
 0x11f   : > { %s5750_s29 = sshll.u32 %s534_s30, 4 }
 0x120   : > { %s537_s24 = sadd.s32 %s5750_s29, %s535_s26 }
 0x121   : > { %s5751_s13 = sshll.u32 %s537_s24, 4 }
 0x123   : > { %s539_s18 = scalar_lea.hbm %s8951_s21, %s5751_s13  ;;  %s8259_s25 = scalar_lea.hbm %s8951_s21, 2048 }
 0x124   : > { %s7548_s7 = scalar_lea.hbm %s539_s18, 32  ;;  %p7551_p13 = scmp.lt.u32.totalorder %s539_s18, %s8951_s21 }
 0x125   : > { %p7549_p12 = scmp.ne.s32.totalorder %s539_s18, %s7548_s7  ;;  %p7552_p2 = scmp.lt.u32.totalorder %s8259_s25, %s7548_s7 }
 0x126   : > { %p7554_p6 = scmp.lt.u32.totalorder %s7548_s7, %s539_s18 }
 0x127   : > { %p7553_p3 = por %p7552_p2, %p7551_p13 }
 0x129   : > { %p7555_p8 = por %p7554_p6, %p7553_p3 }
 0x12b   : > { %p7556_p9 = pnand %p7555_p8, %p7549_p12 }
 0x12d   : > { %7559 = shalt.err (!%p7556_p9)  }
 0x12e   : > { %s7560_s26 = scalar_lea.vmem %s8239_s4, 32  ;;  %s8268_s10 = scalar_lea.vmem %s8239_s4, 256 }
 0x12f   : > { %p7561_p10 = scmp.ne.s32.totalorder %s8239_s4, %s7560_s26  ;;  %p7565_p1 = scmp.lt.s32.totalorder %s8239_s4, %s8239_s4 }
 0x130   : > { %p7566_p0 = scmp.lt.s32.totalorder %s8268_s10, %s7560_s26 }
 0x132   : > { %p7567_p4 = por %p7566_p0, %p7565_p1 }
 0x134   : > { %p7568_p7 = pnand %p7567_p4, %p7561_p10 }
 0x136   : > { %7571 = shalt.err (!%p7568_p7)  }
 0x137   : > { %s7858_s12 = smov 128   ;;  %s7859_s7 = smov 1  }
 0x138   : > { %544 = dma.hbm_to_vmem [thread:$0]  %s539_s18, 32, %s8239_s4, [#allocation4], %s7858_s12, %s7858_s12, %s7859_s7 }
 0x139   : > { %s547_s29 = sshrl.u32 %s8244_s9, 3  ;;  %s548_s24 = sand.u32 7, %s8244_s9  }
 0x13a   : > { %s5752_s13 = sshll.u32 %s547_s29, 4  ;;  %s7860_s6 = smov [#allocation2 + $0x2]  }
 0x13b   : > { %s571_s1 = sshll.u32 %s7860_s6, 4  ;;  %s550_s3 = sadd.s32 %s5752_s13, %s548_s24  ;;  %s8279_s1 = int_to_ptr.vmem [resolvable:$true] %s571_s1 }
 0x13c   : > { %s5753_s30 = sshll.u32 %s550_s3, 4  ;;  %s562_s26 = sshrl.u32 %s8251_s19, 3 }
 0x13d   : > { %s552_s17 = scalar_lea.hbm %s8951_s21, %s5753_s30  ;;  %s563_s0 = sand.u32 7, %s8251_s19  }
 0x13e   : > { %s7572_s23 = scalar_lea.hbm %s552_s17, 32  ;;  %p7575_p11 = scmp.lt.u32.totalorder %s552_s17, %s8951_s21 }
 0x13f   : > { %p7573_p5 = scmp.ne.s32.totalorder %s552_s17, %s7572_s23  ;;  %p7576_p12 = scmp.lt.u32.totalorder %s8259_s25, %s7572_s23 }
 0x140   : > { %p7578_p2 = scmp.lt.u32.totalorder %s7572_s23, %s552_s17 }
 0x141   : > { %p7577_p13 = por %p7576_p12, %p7575_p11 }
 0x143   : > { %p7579_p3 = por %p7578_p2, %p7577_p13 }
 0x145   : > { %p7580_p6 = pnand %p7579_p3, %p7573_p5 }
 0x147   : > { %7583 = shalt.err (!%p7580_p6)  }
 0x148   : > { %s7584_s14 = scalar_lea.vmem %s8246_s27, 32  ;;  %p7589_p9 = scmp.lt.s32.totalorder %s8246_s27, %s8239_s4 }
 0x149   : > { %p7585_p8 = scmp.ne.s32.totalorder %s8246_s27, %s7584_s14  ;;  %p7590_p10 = scmp.lt.s32.totalorder %s8268_s10, %s7584_s14 }
 0x14b   : > { %p7591_p1 = por %p7590_p10, %p7589_p9 }
 0x14d   : > { %p7592_p0 = pnand %p7591_p1, %p7585_p8 }
 0x14f   : > { %7595 = shalt.err (!%p7592_p0)  }
 0x150   : > { %559 = dma.hbm_to_vmem [thread:$0]  %s552_s17, 32, %s8246_s27, [#allocation4 + $0x1], %s7858_s12, %s7858_s12, %s7859_s7 }
 0x151   : > { %s5754_s15 = sshll.u32 %s562_s26, 4  ;;  %s8901_s16 = sadd.s32 3, %s8232_s22 }
 0x152   : > { %s565_s23 = sadd.s32 %s5754_s15, %s563_s0  ;;  %s8302_s18 = sld [smem:[#allocation6 + %s8901_s16]] }
 0x153   : > { %s5755_s9 = sshll.u32 %s565_s23, 4  ;;  %s7861_s24 = smov [#allocation2 + $0x3]  }
 0x154   : > { %s567_s29 = scalar_lea.hbm %s8951_s21, %s5755_s9  ;;  %s586_s13 = sshll.u32 %s7861_s24, 4  ;;  %s8320_s13 = int_to_ptr.vmem [resolvable:$true] %s586_s13 }
 0x155   : > { %s7596_s6 = scalar_lea.hbm %s567_s29, 32  ;;  %p7599_p7 = scmp.lt.u32.totalorder %s567_s29, %s8951_s21 }
 0x156   : > { %p7597_p4 = scmp.ne.s32.totalorder %s567_s29, %s7596_s6  ;;  %p7600_p5 = scmp.lt.u32.totalorder %s8259_s25, %s7596_s6 }
 0x157   : > { %p7602_p12 = scmp.lt.u32.totalorder %s7596_s6, %s567_s29 }
 0x158   : > { %p7601_p11 = por %p7600_p5, %p7599_p7 }
 0x15a   : > { %p7603_p13 = por %p7602_p12, %p7601_p11 }
 0x15c   : > { %p7604_p2 = pnand %p7603_p13, %p7597_p4 }
 0x15e   : > { %7607 = shalt.err (!%p7604_p2)  }
 0x15f   : > { %s7608_s17 = scalar_lea.vmem %s8279_s1, 32  ;;  %p7613_p6 = scmp.lt.s32.totalorder %s8279_s1, %s8239_s4 }
 0x160   : > { %p7609_p3 = scmp.ne.s32.totalorder %s8279_s1, %s7608_s17  ;;  %p7614_p8 = scmp.lt.s32.totalorder %s8268_s10, %s7608_s17 }
 0x162   : > { %p7615_p9 = por %p7614_p8, %p7613_p6 }
 0x164   : > { %p7616_p10 = pnand %p7615_p9, %p7609_p3 }
 0x166   : > { %7619 = shalt.err (!%p7616_p10)  }
 0x167   : > { %574 = dma.hbm_to_vmem [thread:$0]  %s567_s29, 32, %s8279_s1, [#allocation4 + $0x2], %s7858_s12, %s7858_s12, %s7859_s7 }
 0x168   : > { %s8899_s0 = sadd.s32 4, %s8232_s22  ;;  %s577_s26 = sshrl.u32 %s8302_s18, 3 }
 0x169   : > { %s8325_s27 = sld [smem:[#allocation6 + %s8899_s0]]  ;;  %s578_s14 = sand.u32 7, %s8302_s18  }
 0x16a   : > { %s5756_s15 = sshll.u32 %s577_s26, 4  ;;  %s7862_s23 = smov [#allocation2 + $0x4]  }
 0x16b   : > { %s601_s9 = sshll.u32 %s7862_s23, 4  ;;  %s580_s28 = sadd.s32 %s5756_s15, %s578_s14  ;;  %s8329_s9 = int_to_ptr.vmem [resolvable:$true] %s601_s9 }
 0x16c   : > { %s5757_s19 = sshll.u32 %s580_s28, 4  ;;  %s8900_s24 = sadd.s32 5, %s8232_s22 }
 0x16d   : > { %s582_s1 = scalar_lea.hbm %s8951_s21, %s5757_s19  ;;  %s8337_s29 = sld [smem:[#allocation6 + %s8900_s24]] }
 0x16e   : > { %s7620_s30 = scalar_lea.hbm %s582_s1, 32  ;;  %p7623_p0 = scmp.lt.u32.totalorder %s582_s1, %s8951_s21 }
 0x16f   : > { %p7621_p1 = scmp.ne.s32.totalorder %s582_s1, %s7620_s30  ;;  %p7624_p4 = scmp.lt.u32.totalorder %s8259_s25, %s7620_s30 }
 0x170   : > { %p7626_p5 = scmp.lt.u32.totalorder %s7620_s30, %s582_s1 }
 0x171   : > { %p7625_p7 = por %p7624_p4, %p7623_p0 }
 0x173   : > { %p7627_p11 = por %p7626_p5, %p7625_p7 }
 0x175   : > { %p7628_p12 = pnand %p7627_p11, %p7621_p1 }
 0x177   : > { %7631 = shalt.err (!%p7628_p12)  }
 0x178   : > { %s7632_s18 = scalar_lea.vmem %s8320_s13, 32  ;;  %p7637_p2 = scmp.lt.s32.totalorder %s8320_s13, %s8239_s4 }
 0x179   : > { %p7633_p13 = scmp.ne.s32.totalorder %s8320_s13, %s7632_s18  ;;  %p7638_p3 = scmp.lt.s32.totalorder %s8268_s10, %s7632_s18 }
 0x17b   : > { %p7639_p6 = por %p7638_p3, %p7637_p2 }
 0x17d   : > { %p7640_p8 = pnand %p7639_p6, %p7633_p13 }
 0x17f   : > { %7643 = shalt.err (!%p7640_p8)  }
 0x180   : > { %589 = dma.hbm_to_vmem [thread:$0]  %s582_s1, 32, %s8320_s13, [#allocation4 + $0x3], %s7858_s12, %s7858_s12, %s7859_s7 }
 0x181   : > { %s592_s0 = sshrl.u32 %s8325_s27, 3  ;;  %s593_s26 = sand.u32 7, %s8325_s27  }
 0x182   : > { %s5758_s14 = sshll.u32 %s592_s0, 4  ;;  %s7863_s23 = smov [#allocation2 + $0x5]  }
 0x183   : > { %s595_s15 = sadd.s32 %s5758_s14, %s593_s26  ;;  %s616_s28 = sshll.u32 %s7863_s23, 4  ;;  %s8354_s28 = int_to_ptr.vmem [resolvable:$true] %s616_s28 }
 0x184   : > { %s5759_s19 = sshll.u32 %s595_s15, 4  ;;  %s607_s17 = sshrl.u32 %s8337_s29, 3 }
 0x185   : > { %s597_s30 = scalar_lea.hbm %s8951_s21, %s5759_s19 }
 0x186   : > { %s7644_s18 = scalar_lea.hbm %s597_s30, 32  ;;  %p7647_p10 = scmp.lt.u32.totalorder %s597_s30, %s8951_s21 }
 0x187   : > { %p7645_p9 = scmp.ne.s32.totalorder %s597_s30, %s7644_s18  ;;  %p7648_p1 = scmp.lt.u32.totalorder %s8259_s25, %s7644_s18 }
 0x188   : > { %p7650_p4 = scmp.lt.u32.totalorder %s7644_s18, %s597_s30 }
 0x189   : > { %p7649_p0 = por %p7648_p1, %p7647_p10 }
 0x18b   : > { %p7651_p7 = por %p7650_p4, %p7649_p0 }
 0x18d   : > { %p7652_p5 = pnand %p7651_p7, %p7645_p9 }
 0x18f   : > { %7655 = shalt.err (!%p7652_p5)  }
 0x190   : > { %s7656_s13 = scalar_lea.vmem %s8329_s9, 32  ;;  %p7661_p12 = scmp.lt.s32.totalorder %s8329_s9, %s8239_s4 }
 0x191   : > { %p7657_p11 = scmp.ne.s32.totalorder %s8329_s9, %s7656_s13  ;;  %p7662_p13 = scmp.lt.s32.totalorder %s8268_s10, %s7656_s13 }
 0x193   : > { %p7663_p2 = por %p7662_p13, %p7661_p12 }
 0x195   : > { %p7664_p3 = pnand %p7663_p2, %p7657_p11 }
 0x197   : > { %7667 = shalt.err (!%p7664_p3)  }
 0x198   : > { %604 = dma.hbm_to_vmem [thread:$0]  %s597_s30, 32, %s8329_s9, [#allocation4 + $0x4], %s7858_s12, %s7858_s12, %s7859_s7 }
 0x199   : > { %s608_s16 = sand.u32 7, %s8337_s29   ;;  %s5760_s27 = sshll.u32 %s607_s17, 4 }
 0x19a   : > { %s610_s24 = sadd.s32 %s5760_s27, %s608_s16  ;;  %s8903_s1 = sadd.s32 6, %s8232_s22 }
 0x19b   : > { %s5761_s0 = sshll.u32 %s610_s24, 4  ;;  %s8377_s26 = sld [smem:[#allocation6 + %s8903_s1]] }
 0x19c   : > { %s612_s23 = scalar_lea.hbm %s8951_s21, %s5761_s0 }
 0x19d   : > { %s7668_s19 = scalar_lea.hbm %s612_s23, 32  ;;  %p7671_p8 = scmp.lt.u32.totalorder %s612_s23, %s8951_s21 }
 0x19e   : > { %p7669_p6 = scmp.ne.s32.totalorder %s612_s23, %s7668_s19  ;;  %p7672_p9 = scmp.lt.u32.totalorder %s8259_s25, %s7668_s19 }
 0x19f   : > { %p7674_p1 = scmp.lt.u32.totalorder %s7668_s19, %s612_s23 }
 0x1a0   : > { %p7673_p10 = por %p7672_p9, %p7671_p8 }
 0x1a2   : > { %p7675_p0 = por %p7674_p1, %p7673_p10 }
 0x1a4   : > { %p7676_p4 = pnand %p7675_p0, %p7669_p6 }
 0x1a6   : > { %7679 = shalt.err (!%p7676_p4)  }
 0x1a7   : > { %s7680_s9 = scalar_lea.vmem %s8354_s28, 32  ;;  %p7685_p5 = scmp.lt.s32.totalorder %s8354_s28, %s8239_s4 }
 0x1a8   : > { %p7681_p7 = scmp.ne.s32.totalorder %s8354_s28, %s7680_s9  ;;  %p7686_p11 = scmp.lt.s32.totalorder %s8268_s10, %s7680_s9 }
 0x1aa   : > { %p7687_p12 = por %p7686_p11, %p7685_p5 }
 0x1ac   : > { %p7688_p13 = pnand %p7687_p12, %p7681_p7 }
 0x1ae   : > { %7691 = shalt.err (!%p7688_p13)  }
 0x1af   : > { %619 = dma.hbm_to_vmem [thread:$0]  %s612_s23, 32, %s8354_s28, [#allocation4 + $0x5], %s7858_s12, %s7858_s12, %s7859_s7  ;;  %v654_v0 = vlaneseq }
 0x1b0   : > { %s7864_s29 = smov [#allocation2 + $0x6]   ;;  %s8902_s17 = sadd.s32 7, %s8232_s22 }
 0x1b1   : > { %s631_s30 = sshll.u32 %s7864_s29, 4  ;;  %s8400_s18 = sld [smem:[#allocation6 + %s8902_s17]]  ;;  %s8396_s30 = int_to_ptr.vmem [resolvable:$true] %s631_s30 }
 0x1b2   : > { %s8403_s13 = sld [smem:[#allocation7 + %s8232_s22]]  ;;  %s622_s16 = sshrl.u32 %s8377_s26, 3 }
 0x1b3   : > { %s623_s27 = sand.u32 7, %s8377_s26   ;;  %s5762_s24 = sshll.u32 %s622_s16, 4 }
 0x1b4   : > { %s7865_s0 = smov [#allocation2 + $0x7]   ;;  %s625_s15 = sadd.s32 %s5762_s24, %s623_s27 }
 0x1b5   : > { %s646_s14 = sshll.u32 %s7865_s0, 4  ;;  %s5763_s28 = sshll.u32 %s625_s15, 4  ;;  %s8407_s14 = int_to_ptr.vmem [resolvable:$true] %s646_s14 }
 0x1b6   : > { %s8410_s23 = sld [smem:[#allocation8 + %s8018_s2]]  ;;  %s627_s3 = scalar_lea.hbm %s8951_s21, %s5763_s28 }
 0x1b7   : > { %s637_s9 = sshrl.u32 %s8400_s18, 3  ;;  %s7692_s29 = scalar_lea.hbm %s627_s3, 32 }
 0x1b8   : > { %p7693_p2 = scmp.ne.s32.totalorder %s627_s3, %s7692_s29  ;;  %p7695_p3 = scmp.lt.u32.totalorder %s627_s3, %s8951_s21 }
 0x1b9   : > { %p7696_p6 = scmp.lt.u32.totalorder %s8259_s25, %s7692_s29  ;;  %p7698_p9 = scmp.lt.u32.totalorder %s7692_s29, %s627_s3 }
 0x1bb   : > { %p7697_p8 = por %p7696_p6, %p7695_p3 }
 0x1bd   : > { %p7699_p10 = por %p7698_p9, %p7697_p8 }
 0x1bf   : > { %p7700_p1 = pnand %p7699_p10, %p7693_p2 }
 0x1c1   : > { %7703 = shalt.err (!%p7700_p1)  }
 0x1c2   : > { %s7704_s26 = scalar_lea.vmem %s8396_s30, 32  ;;  %p7709_p4 = scmp.lt.s32.totalorder %s8396_s30, %s8239_s4 }
 0x1c3   : > { %p7705_p0 = scmp.ne.s32.totalorder %s8396_s30, %s7704_s26  ;;  %p7710_p7 = scmp.lt.s32.totalorder %s8268_s10, %s7704_s26 }
 0x1c5   : > { %p7711_p5 = por %p7710_p7, %p7709_p4 }
 0x1c7   : > { %p7712_p11 = pnand %p7711_p5, %p7705_p0 }
 0x1c9   : > { %7715 = shalt.err (!%p7712_p11)  }
 0x1ca   : > { %634 = dma.hbm_to_vmem [thread:$0]  %s627_s3, 32, %s8396_s30, [#allocation4 + $0x6], %s7858_s12, %s7858_s12, %s7859_s7  ;;  %v711_v1 = vand.u32 127, %v654_v0  ;;  %vm8433_vm0 = vcmp.lt.s32.totalorder %v654_v0, 256 }
 0x1cb   : > { %s638_s1 = sand.u32 7, %s8400_s18   ;;  %s5764_s17 = sshll.u32 %s637_s9, 4  ;;  %v712_v4 = vstv %s8410_s23 }
 0x1cc   : > { %s640_s16 = sadd.s32 %s5764_s17, %s638_s1  ;;  %s5766_s27 = sshll.u32 %s8403_s13, 1 }
 0x1cd   : > { %s5765_s24 = sshll.u32 %s640_s16, 4  ;;  %s652_s19 = scalar_lea.vmem [#allocation9], %s5766_s27 }
 0x1ce   : > { %s642_s28 = scalar_lea.hbm %s8951_s21, %s5765_s24  ;;  %v653_v3 = vld [vmem:[%s652_s19] sm:$0x3]  ;;  %s8954_s30 = sadd.s32 1, %s8232_s22 }
 0x1cf   : > { %s8443_s18 = sld [smem:[#allocation7 + %s8954_s30]]  ;;  %s7716_s6 = scalar_lea.hbm %s642_s28, 32 }
 0x1d0   : > { %p7717_p12 = scmp.ne.s32.totalorder %s642_s28, %s7716_s6  ;;  %p7719_p13 = scmp.lt.u32.totalorder %s642_s28, %s8951_s21 }
 0x1d1   : > { %p7720_p2 = scmp.lt.u32.totalorder %s8259_s25, %s7716_s6  ;;  %p7722_p6 = scmp.lt.u32.totalorder %s7716_s6, %s642_s28 }
 0x1d3   : > { %p7721_p3 = por %p7720_p2, %p7719_p13 }
 0x1d5   : > { %p7723_p8 = por %p7722_p6, %p7721_p3 }
 0x1d7   : > { %p7724_p9 = pnand %p7723_p8, %p7717_p12 }
 0x1d9   : > { %7727 = shalt.err (!%p7724_p9)  }
 0x1da   : > { %s7728_s23 = scalar_lea.vmem %s8407_s14, 32  ;;  %p7733_p1 = scmp.lt.s32.totalorder %s8407_s14, %s8239_s4 }
 0x1db   : > { %p7729_p10 = scmp.ne.s32.totalorder %s8407_s14, %s7728_s23  ;;  %p7734_p0 = scmp.lt.s32.totalorder %s8268_s10, %s7728_s23 }
 0x1dd   : > { %p7735_p4 = por %p7734_p0, %p7733_p1 }
 0x1df   : > { %p7736_p7 = pnand %p7735_p4, %p7729_p10 }
 0x1e1   : > { %7739 = shalt.err (!%p7736_p7)  }
 0x1e2   : > { %649 = dma.hbm_to_vmem [thread:$0]  %s642_s28, 32, %s8407_s14, [#allocation4 + $0x7], %s7858_s12, %s7858_s12, %s7859_s7  ;;  %658 = vst.msk [vmem:[#allocation3] ss:$8 sm:$0x3] %vm8433_vm0, %v653_v3  ;;  %vm713_vm1 = vcmp.lt.s32.totalorder %v711_v1, %v712_v4 }
 0x1e3   : > { %v7866_v5 = vmov -1e+09   ;;  %s8955_s4 = sadd.s32 2, %s8232_s22  ;;  %s8956_s10 = sadd.s32 3, %s8232_s22 }
 0x1e4   : > { %v8460_v6 = vsel %vm713_vm1, 0.0, %v7866_v5  ;;  %s667_s25 = sld [smem:[#allocation7 + %s8955_s4]]  ;;  %s8957_s29 = sadd.s32 4, %s8232_s22 }
 0x1e5   : > { %s674_s9 = sld [smem:[#allocation7 + %s8956_s10]]  ;;  %s8958_s1 = sadd.s32 5, %s8232_s22 }
 0x1e6   : > { %s681_s26 = sld [smem:[#allocation7 + %s8957_s29]]  ;;  %s8959_s16 = sadd.s32 6, %s8232_s22 }
 0x1e7   : > { %s688_s17 = sld [smem:[#allocation7 + %s8958_s1]]  ;;  %s8960_s24 = sadd.s32 7, %s8232_s22 }
 0x1e8   : > { %s695_s27 = sld [smem:[#allocation7 + %s8959_s16]]  ;;  %s5767_s12 = sshll.u32 %s8443_s18, 1 }
 0x1e9   : > { %s702_s0 = sld [smem:[#allocation7 + %s8960_s24]]  ;;  %s662_s7 = scalar_lea.vmem [#allocation9], %s5767_s12 }
 0x1ea   : > { %v663_v7 = vld [vmem:[%s662_s7] sm:$0x3]  ;;  %s5768_s14 = sshll.u32 %s667_s25, 1  ;;  %s530_s25 = scalar_lea.vmem [#allocation21], %s8236_s20 }
 0x1eb   : > { %s5769_s15 = sshll.u32 %s674_s9, 1  ;;  %665 = vst.msk [vmem:[#allocation3 + $0x1] ss:$8 sm:$0x3] %vm8433_vm0, %v663_v7  ;;  %s669_s28 = scalar_lea.vmem [#allocation9], %s5768_s14 }
 0x1ec   : > { %v670_v8 = vld [vmem:[%s669_s28] sm:$0x3]  ;;  %s676_s19 = scalar_lea.vmem [#allocation9], %s5769_s15  ;;  %s5770_s30 = sshll.u32 %s681_s26, 1 }
 0x1ed   : > { %v677_v9 = vld [vmem:[%s676_s19] sm:$0x3]  ;;  %s5771_s6 = sshll.u32 %s688_s17, 1  ;;  %672 = vst.msk [vmem:[#allocation3 + $0x2] ss:$8 sm:$0x3] %vm8433_vm0, %v670_v8 }
 0x1ee   : > { %679 = vst.msk [vmem:[#allocation3 + $0x3] ss:$8 sm:$0x3] %vm8433_vm0, %v677_v9  ;;  %s683_s22 = scalar_lea.vmem [#allocation9], %s5770_s30  ;;  %s690_s18 = scalar_lea.vmem [#allocation9], %s5771_s6 }
 0x1ef   : > { %v684_v10 = vld [vmem:[%s683_s22] sm:$0x3]  ;;  %s5772_s3 = sshll.u32 %s695_s27, 1  ;;  %s5773_s13 = sshll.u32 %s702_s0, 1 }
 0x1f0   : > { %v691_v11 = vld [vmem:[%s690_s18] sm:$0x3]  ;;  %686 = vst.msk [vmem:[#allocation3 + $0x4] ss:$8 sm:$0x3] %vm8433_vm0, %v684_v10  ;;  %s697_s23 = scalar_lea.vmem [#allocation9], %s5772_s3 }
 0x1f1   : > { %693 = vst.msk [vmem:[#allocation3 + $0x5] ss:$8 sm:$0x3] %vm8433_vm0, %v691_v11  ;;  %v698_v12 = vld [vmem:[%s697_s23] sm:$0x3]  ;;  %s704_s4 = scalar_lea.vmem [#allocation9], %s5773_s13 }
 0x1f2   : > { %v705_v13 = vld [vmem:[%s704_s4] sm:$0x3]  ;;  %700 = vst.msk [vmem:[#allocation3 + $0x6] ss:$8 sm:$0x3] %vm8433_vm0, %v698_v12 }
 0x1f3   : > { %707 = vst.msk [vmem:[#allocation3 + $0x7] ss:$8 sm:$0x3] %vm8433_vm0, %v705_v13 }
 0x1f4   : > { %7802 = dma.done.wait [#allocation4], 32 }
 0x1f5   : > { %7803 = vsyncadd [#allocation4], 4294967264 }
 0x1f6   : > { %7804 = dma.done.wait [#allocation4 + $0x1], 32 }
 0x1f7   : > { %7805 = vsyncadd [#allocation4 + $0x1], 4294967264 }
 0x1f8   : > { %7806 = dma.done.wait [#allocation4 + $0x2], 32 }
 0x1f9   : > { %7807 = vsyncadd [#allocation4 + $0x2], 4294967264 }
 0x1fa   : > { %7808 = dma.done.wait [#allocation4 + $0x3], 32 }
 0x1fb   : > { %7809 = vsyncadd [#allocation4 + $0x3], 4294967264 }
 0x1fc   : > { %7810 = dma.done.wait [#allocation4 + $0x4], 32 }
 0x1fd   : > { %7811 = vsyncadd [#allocation4 + $0x4], 4294967264 }
 0x1fe   : > { %7812 = dma.done.wait [#allocation4 + $0x5], 32 }
 0x1ff   : > { %7813 = vsyncadd [#allocation4 + $0x5], 4294967264 }
 0x200   : > { %7814 = dma.done.wait [#allocation4 + $0x6], 32 }
 0x201   : > { %7815 = vsyncadd [#allocation4 + $0x6], 4294967264 }
 0x202   : > { %7816 = dma.done.wait [#allocation4 + $0x7], 32 }
 0x203   : > { %7817 = vsyncadd [#allocation4 + $0x7], 4294967264  ;;  %v732_v14 = vld [vmem:[#allocation2] sm:$0xff]  ;;  %v733_v15 = vld [vmem:[#allocation2 + $0x8] sm:$0xff]  ;;  %vm7868_vm2 = vmmov 0   ;;  %vm1595_vm3 = vcmask 1043456  }
 0x204   : > { %v734_v16 = vld [vmem:[#allocation3] sm:$0xff]  ;;  %v735_v17 = vld [vmem:[#allocation3 + $0x8] sm:$0xff]  ;;  %v738_v19 = vld [vmem:[%s8859_s5] sm:$0xff]  ;;  %vm1579_vm4 = vcmask 64512   ;;  %s8961_s12 = sld [smem:[#allocation60_spill]]  ;;  %s8962_s15 = sld [smem:[#allocation62_spill]] }
 0x205   : > { %v736_v18 = vadd.f32 %v734_v16, %v732_v14  ;;  %v739_v20 = vld [vmem:[%s8859_s5 + $0x8] sm:$0xff]  ;;  %v737_v21 = vadd.f32 %v735_v17, %v733_v15  ;;  %v6514_v29 = vld [vmem:[#allocation14 + $0x34] ss:$24 sps:$4 sm:$0xff]   ;;  %v6516_v31 = vld [vmem:[#allocation14 + $0x30] ss:$24 sps:$4 sm:$0xff]   ;;  %s8963_s30 = sld [smem:[#allocation63_spill]] }
 0x206   : > { %v6508_v25 = vld [vmem:[#allocation14 + $0x4] ss:$24 sps:$4 sm:$0xff]   ;;  %v6510_v26 = vld [vmem:[#allocation14] ss:$24 sps:$4 sm:$0xff]   ;;  %v6526_v37 = vld [vmem:[#allocation14 + $0x94] ss:$24 sps:$4 sm:$0xff]  }
 0x207   : > { %v8496_v22 = vadd.f32 %v738_v19, %v736_v18  ;;  %v8498_v23 = vadd.f32 %v739_v20, %v737_v21  ;;  %v6511_v27 = vld [vmem:[#allocation14 + $0xc] ss:$24 sps:$4 sm:$0xff]   ;;  %v6513_v28 = vld [vmem:[#allocation14 + $0x8] ss:$24 sps:$4 sm:$0xff]   ;;  %1411 = vmatprep.subr.bf16.mxu0 %v6508_v25  ;;  %v6517_v30 = vld [vmem:[#allocation14 + $0x3c] ss:$24 sps:$4 sm:$0xff]  }
 0x208   : > { %1452 = vmatprep.subr.bf16.mxu1 %v6511_v27  ;;  %1412 = vmatpush1.bf16.msra.mxu0 %v6510_v26  ;;  %v6519_v32 = vld [vmem:[#allocation14 + $0x38] ss:$24 sps:$4 sm:$0xff]   ;;  %v6520_v33 = vld [vmem:[#allocation14 + $0x64] ss:$24 sps:$4 sm:$0xff]   ;;  %v6525_v36 = vld [vmem:[#allocation14 + $0x68] ss:$24 sps:$4 sm:$0xff]  }
 0x209   : > { %v743_v24 = vadd.f32 %v8498_v23, %v8496_v22  ;;  %1453 = vmatpush1.bf16.msra.mxu1 %v6513_v28  ;;  %1413 = vmatprep.subr.bf16.mxu0 %v6514_v29  ;;  %v6523_v34 = vld [vmem:[#allocation14 + $0x6c] ss:$24 sps:$4 sm:$0xff]   ;;  %v6522_v35 = vld [vmem:[#allocation14 + $0x60] ss:$24 sps:$4 sm:$0xff]   ;;  %v6529_v38 = vld [vmem:[#allocation14 + $0x9c] ss:$24 sps:$4 sm:$0xff]  }
 0x20a   : > { %1454 = vmatprep.subr.bf16.mxu1 %v6517_v30  ;;  %v6528_v39 = vld [vmem:[#allocation14 + $0x90] ss:$24 sps:$4 sm:$0xff]   ;;  %v6532_v41 = vld [vmem:[#allocation14 + $0xc4] ss:$24 sps:$4 sm:$0xff]   ;;  %v6534_v43 = vld [vmem:[#allocation14 + $0xc0] ss:$24 sps:$4 sm:$0xff]  }
 0x20b   : > { %744 = vadd.xlane.f32.xlu0 %v743_v24  ;;  %v6531_v40 = vld [vmem:[#allocation14 + $0x98] ss:$24 sps:$4 sm:$0xff]   ;;  %v6535_v42 = vld [vmem:[#allocation14 + $0xcc] ss:$24 sps:$4 sm:$0xff]   ;;  %v6537_v44 = vld [vmem:[#allocation14 + $0xc8] ss:$24 sps:$4 sm:$0xff]  }
 0x20c   : > { %1414 = vmatpush1.bf16.msra.mxu0 %v6516_v31  ;;  %v6538_v45 = vld [vmem:[#allocation14 + $0xf4] ss:$24 sps:$4 sm:$0xff]   ;;  %v6540_v47 = vld [vmem:[#allocation14 + $0xf0] ss:$24 sps:$4 sm:$0xff]   ;;  %v6544_v49 = vld [vmem:[#allocation14 + $0x124] ss:$24 sps:$4 sm:$0xff]  }
 0x20d   : > { %1455 = vmatpush1.bf16.msra.mxu1 %v6519_v32  ;;  %1415 = vmatprep.subr.bf16.mxu0 %v6520_v33  ;;  %v6541_v46 = vld [vmem:[#allocation14 + $0xfc] ss:$24 sps:$4 sm:$0xff]   ;;  %v6543_v48 = vld [vmem:[#allocation14 + $0xf8] ss:$24 sps:$4 sm:$0xff]   ;;  %v6547_v50 = vld [vmem:[#allocation14 + $0x12c] ss:$24 sps:$4 sm:$0xff]  }
 0x20e   : > { %1456 = vmatprep.subr.bf16.mxu1 %v6523_v34  ;;  %v6546_v51 = vld [vmem:[#allocation14 + $0x120] ss:$24 sps:$4 sm:$0xff]   ;;  %v6550_v53 = vld [vmem:[#allocation14 + $0x154] ss:$24 sps:$4 sm:$0xff]   ;;  %v6552_v55 = vld [vmem:[#allocation14 + $0x150] ss:$24 sps:$4 sm:$0xff]  }
 0x20f   : > { %v6549_v52 = vld [vmem:[#allocation14 + $0x128] ss:$24 sps:$4 sm:$0xff]   ;;  %v6553_v54 = vld [vmem:[#allocation14 + $0x15c] ss:$24 sps:$4 sm:$0xff]   ;;  %v6555_v56 = vld [vmem:[#allocation14 + $0x158] ss:$24 sps:$4 sm:$0xff]  }
 0x210   : > { %1416 = vmatpush1.bf16.msra.mxu0 %v6522_v35  ;;  %v6556_v57 = vld [vmem:[#allocation14 + $0x184] ss:$24 sps:$4 sm:$0xff]   ;;  %v6558_v59 = vld [vmem:[#allocation14 + $0x180] ss:$24 sps:$4 sm:$0xff]   ;;  %v6562_v61 = vld [vmem:[#allocation14 + $0x1b4] ss:$24 sps:$4 sm:$0xff]  }
 0x211   : > { %1457 = vmatpush1.bf16.msra.mxu1 %v6525_v36  ;;  %1417 = vmatprep.subr.bf16.mxu0 %v6526_v37  ;;  %v6559_v58 = vld [vmem:[#allocation14 + $0x18c] ss:$24 sps:$4 sm:$0xff]   ;;  %v6561_v60 = vld [vmem:[#allocation14 + $0x188] ss:$24 sps:$4 sm:$0xff]   ;;  %v6565_v62 = vld [vmem:[#allocation14 + $0x1bc] ss:$24 sps:$4 sm:$0xff]  }
 0x212   : > { %1458 = vmatprep.subr.bf16.mxu1 %v6529_v38  ;;  %v6564_v63 = vld [vmem:[#allocation14 + $0x1b0] ss:$24 sps:$4 sm:$0xff]   ;;  %v6568_v3 = vld [vmem:[#allocation14 + $0x1e4] ss:$24 sps:$4 sm:$0xff]   ;;  %v6570_v12 = vld [vmem:[#allocation14 + $0x1e0] ss:$24 sps:$4 sm:$0xff]  }
 0x213   : > { %v6567_v1 = vld [vmem:[#allocation14 + $0x1b8] ss:$24 sps:$4 sm:$0xff]   ;;  %v6571_v13 = vld [vmem:[#allocation14 + $0x1ec] ss:$24 sps:$4 sm:$0xff]   ;;  %v6573_v14 = vld [vmem:[#allocation14 + $0x1e8] ss:$24 sps:$4 sm:$0xff]  }
 0x214   : > { %1418 = vmatpush1.bf16.msra.mxu0 %v6528_v39  ;;  %v6574_v15 = vld [vmem:[#allocation14 + $0x214] ss:$24 sps:$4 sm:$0xff]   ;;  %v6576_v16 = vld [vmem:[#allocation14 + $0x210] ss:$24 sps:$4 sm:$0xff]   ;;  %v6580_v19 = vld [vmem:[#allocation14 + $0x244] ss:$24 sps:$4 sm:$0xff]  }
 0x215   : > { %1459 = vmatpush1.bf16.msra.mxu1 %v6531_v40  ;;  %1419 = vmatprep.subr.bf16.mxu0 %v6532_v41  ;;  %v6577_v17 = vld [vmem:[#allocation14 + $0x21c] ss:$24 sps:$4 sm:$0xff]   ;;  %v6579_v18 = vld [vmem:[#allocation14 + $0x218] ss:$24 sps:$4 sm:$0xff]   ;;  %v6583_v21 = vld [vmem:[#allocation14 + $0x24c] ss:$24 sps:$4 sm:$0xff]  }
 0x216   : > { %1460 = vmatprep.subr.bf16.mxu1 %v6535_v42  ;;  %v6582_v20 = vld [vmem:[#allocation14 + $0x240] ss:$24 sps:$4 sm:$0xff]   ;;  %v6589_v24 = vld [vmem:[#allocation14 + $0x27c] ss:$24 sps:$4 sm:$0xff]   ;;  %v6588_v25 = vld [vmem:[#allocation14 + $0x270] ss:$24 sps:$4 sm:$0xff]  }
 0x217   : > { %v6591_v26 = vld [vmem:[#allocation14 + $0x278] ss:$24 sps:$4 sm:$0xff]   ;;  %v6592_v27 = vld [vmem:[#allocation14 + $0x2a4] ss:$24 sps:$4 sm:$0xff]   ;;  %v6597_v30 = vld [vmem:[#allocation14 + $0x2a8] ss:$24 sps:$4 sm:$0xff]  }
 0x218   : > { %1420 = vmatpush1.bf16.msra.mxu0 %v6534_v43  ;;  %v6595_v28 = vld [vmem:[#allocation14 + $0x2ac] ss:$24 sps:$4 sm:$0xff]   ;;  %v6594_v29 = vld [vmem:[#allocation14 + $0x2a0] ss:$24 sps:$4 sm:$0xff]   ;;  %v6601_v32 = vld [vmem:[#allocation14 + $0x2dc] ss:$24 sps:$4 sm:$0xff]  }
 0x219   : > { %1461 = vmatpush1.bf16.msra.mxu1 %v6537_v44  ;;  %1421 = vmatprep.subr.bf16.mxu0 %v6538_v45  ;;  %v6598_v31 = vld [vmem:[#allocation14 + $0x2d4] ss:$24 sps:$4 sm:$0xff]   ;;  %v6600_v33 = vld [vmem:[#allocation14 + $0x2d0] ss:$24 sps:$4 sm:$0xff]   ;;  %v8513_v38 = vshrl.u32 %v654_v0, 7  ;;  %vm5447_vm5 = vcmask 1045504  }
 0x21a   : > { %1462 = vmatprep.subr.bf16.mxu1 %v6541_v46  ;;  %v6603_v34 = vld [vmem:[#allocation14 + $0x2d8] ss:$24 sps:$4 sm:$0xff]   ;;  %v6606_v35 = vld [vmem:[#allocation14 + $0x14] ss:$24 sps:$4 sm:$0xff]   ;;  %v742_v42 = vld [vmem:[#allocation12] sm:$0xf] }
 0x21b   : > { %v8516_v40 = vsub.s32 0, %v8513_v38  ;;  %v8519_v41 = vsub.s32 2, %v8513_v38  ;;  %v8522_v43 = vsub.s32 1, %v8513_v38  ;;  %v8525_v44 = vsub.s32 3, %v8513_v38  ;;  %s8964_s26 = sld [smem:[#allocation45_spill]]  ;;  %s8965_s1 = sld [smem:[#allocation50_spill]] }
 0x21c   : > { %1422 = vmatpush1.bf16.msra.mxu0 %v6540_v47  ;;  %s6308_s17 = sshll.u32 %s8018_s2, 5  ;;  %s5512_s16 = sshll.u32 %s530_s25, 4  ;;  %s8810_s16 = int_to_ptr.vmem [resolvable:$true] %s5512_s16 }
 0x21d   : > { %1463 = vmatpush1.bf16.msra.mxu1 %v6543_v48  ;;  %1423 = vmatprep.subr.bf16.mxu0 %v6544_v49  ;;  %v768_v45 = vrot.slane %v742_v42, %v8519_v41  ;;  %v764_v0 = vrot.slane %v742_v42, %v8516_v40  ;;  %v788_v46 = vrot.slane %v742_v42, %v8525_v44  ;;  %s8966_s0 = sld [smem:[#allocation64_spill]]  ;;  %s7740_s28 = scalar_lea.vmem %s8810_s16, 32 }
 0x21e   : > { %1464 = vmatprep.subr.bf16.mxu1 %v6547_v50  ;;  %v784_v47 = vrot.slane %v742_v42, %v8522_v43  ;;  %p7741_p5 = scmp.ne.s32.totalorder %s8810_s16, %s7740_s28  ;;  %s7870_s19 = smov [#allocation21]  }
 0x21f   : > { %v778_v48 = vrot.slane %v768_v45, %v8516_v40  ;;  %v774_v49 = vrot.slane %v764_v0, %v8516_v40  ;;  %s7744_s6 = sshll.u32 %s7870_s19, 4  ;;  %s7745_s6 = int_to_ptr.vmem [resolvable:$false] %s7744_s6 }
 0x220   : > { %1424 = vmatpush1.bf16.msra.mxu0 %v6546_v51  ;;  %s7746_s22 = scalar_lea.vmem %s7745_s6, 64  ;;  %p7747_p2 = scmp.lt.s32.totalorder %s8810_s16, %s7745_s6 }
 0x221   : > { %1465 = vmatpush1.bf16.msra.mxu1 %v6549_v52  ;;  %1425 = vmatprep.subr.bf16.mxu0 %v6550_v53  ;;  %v798_v52 = vrot.slane %v788_v46, %v8522_v43  ;;  %s8967_s14 = sand.u32 1, %s8964_s26   ;;  %p8968_p11 = scmp.ne.s32.totalorder %s8965_s1, 0 }
 0x222   : > { %1466 = vmatprep.subr.bf16.mxu1 %v6553_v54  ;;  %v794_v54 = vrot.slane %v784_v47, %v8522_v43  ;;  %s5498_s2 = scalar_lea.sflag [#allocation11], %s8967_s14  ;;  %p7748_p3 = scmp.lt.s32.totalorder %s7746_s22, %s7740_s28 }
 0x223   : > { %s8808_s7 = scalar_lea.hbm %s8966_s0, %s6308_s17  ;;  %p7742_p12 = pnand %p7741_p5, %p8968_p11 }
 0x224   : > { %1426 = vmatpush1.bf16.msra.mxu0 %v6552_v55  ;;  %p7749_p6 = por %p7748_p3, %p7747_p2 }
 0x225   : > { %1467 = vmatpush1.bf16.msra.mxu1 %v6555_v56  ;;  %1427 = vmatprep.subr.bf16.mxu0 %v6556_v57  ;;  %p7743_p13 = pneg %p7742_p12 }
 0x226   : > { %1468 = vmatprep.subr.bf16.mxu1 %v6559_v58 }
 0x227   : > { %p7750_p8 = pnand %p7749_p6, %p7743_p13 }
 0x228   : > { %1428 = vmatpush1.bf16.msra.mxu0 %v6558_v59 }
 0x229   : > { %1469 = vmatpush1.bf16.msra.mxu1 %v6561_v60  ;;  %1429 = vmatprep.subr.bf16.mxu0 %v6562_v61  ;;  %v6604_v60 = vld [vmem:[#allocation14 + $0x10] ss:$24 sps:$4 sm:$0xff]  }
 0x22a   : > { %1470 = vmatprep.subr.bf16.mxu1 %v6565_v62  ;;  %v6609_v62 = vld [vmem:[#allocation14 + $0x44] ss:$24 sps:$4 sm:$0xff]  }
 0x22c   : > { %1430 = vmatpush1.bf16.msra.mxu0 %v6564_v63  ;;  %v6607_v63 = vld [vmem:[#allocation14 + $0x40] ss:$24 sps:$4 sm:$0xff]  }
 0x22d   : > { %1471 = vmatpush1.bf16.msra.mxu1 %v6567_v1  ;;  %1431 = vmatprep.subr.bf16.mxu0 %v6568_v3  ;;  %v6612_v1 = vld [vmem:[#allocation14 + $0x74] ss:$24 sps:$4 sm:$0xff]   ;;  %v6610_v3 = vld [vmem:[#allocation14 + $0x70] ss:$24 sps:$4 sm:$0xff]  }
 0x22e   : > { %1472 = vmatprep.subr.bf16.mxu1 %v6571_v13  ;;  %v6627_v13 = vld [vmem:[#allocation14 + $0x164] ss:$24 sps:$4 sm:$0xff]  }
 0x230   : > { %1432 = vmatpush1.bf16.msra.mxu0 %v6570_v12  ;;  %v6622_v12 = vld [vmem:[#allocation14 + $0x130] ss:$24 sps:$4 sm:$0xff]  }
 0x231   : > { %1473 = vmatpush1.bf16.msra.mxu1 %v6573_v14  ;;  %1433 = vmatprep.subr.bf16.mxu0 %v6574_v15  ;;  %v6625_v14 = vld [vmem:[#allocation14 + $0x160] ss:$24 sps:$4 sm:$0xff]   ;;  %v6630_v15 = vld [vmem:[#allocation14 + $0x194] ss:$24 sps:$4 sm:$0xff]  }
 0x232   : > { %1474 = vmatprep.subr.bf16.mxu1 %v6577_v17  ;;  %v6633_v17 = vld [vmem:[#allocation14 + $0x1c4] ss:$24 sps:$4 sm:$0xff]  }
 0x234   : > { %1434 = vmatpush1.bf16.msra.mxu0 %v6576_v16  ;;  %v6628_v16 = vld [vmem:[#allocation14 + $0x190] ss:$24 sps:$4 sm:$0xff]  }
 0x235   : > { %1475 = vmatpush1.bf16.msra.mxu1 %v6579_v18  ;;  %1435 = vmatprep.subr.bf16.mxu0 %v6580_v19  ;;  %v6631_v18 = vld [vmem:[#allocation14 + $0x1c0] ss:$24 sps:$4 sm:$0xff]   ;;  %v6636_v19 = vld [vmem:[#allocation14 + $0x1f4] ss:$24 sps:$4 sm:$0xff]  }
 0x236   : > { %1476 = vmatprep.subr.bf16.mxu1 %v6583_v21  ;;  %v6639_v21 = vld [vmem:[#allocation14 + $0x224] ss:$24 sps:$4 sm:$0xff]  }
 0x238   : > { %1436 = vmatpush1.bf16.msra.mxu0 %v6582_v20  ;;  %v6634_v20 = vld [vmem:[#allocation14 + $0x1f0] ss:$24 sps:$4 sm:$0xff]  }
 0x298   : > { %v745_v4 = vpop.xlane.xlu0 %744 }
 0x299   : > { %v747_v5 = vmul.f32 0.00390625, %v745_v4  ;;  %v6615_v4 = vld [vmem:[#allocation14 + $0xa4] ss:$24 sps:$4 sm:$0xff]  }
 0x29b   : > { %v8503_v7 = vsub.f32 %v8496_v22, %v747_v5  ;;  %v8506_v8 = vsub.f32 %v8498_v23, %v747_v5  ;;  %v6585_v22 = vld [vmem:[#allocation14 + $0x248] ss:$24 sps:$4 sm:$0xff]   ;;  %v6586_v23 = vld [vmem:[#allocation14 + $0x274] ss:$24 sps:$4 sm:$0xff]  }
 0x29c   : > { %1477 = vmatpush1.bf16.msra.mxu1 %v6585_v22  ;;  %1437 = vmatprep.subr.bf16.mxu0 %v6586_v23  ;;  %v6613_v5 = vld [vmem:[#allocation14 + $0xa0] ss:$24 sps:$4 sm:$0xff]   ;;  %v6642_v23 = vld [vmem:[#allocation14 + $0x254] ss:$24 sps:$4 sm:$0xff]  }
 0x29d   : > { %v750_v9 = vmul.f32 %v8503_v7, %v8503_v7  ;;  %v751_v10 = vmul.f32 %v8506_v8, %v8506_v8  ;;  %1478 = vmatprep.subr.bf16.mxu1 %v6589_v24  ;;  %1438 = vmatpush1.bf16.msra.mxu0 %v6588_v25  ;;  %v6637_v22 = vld [vmem:[#allocation14 + $0x220] ss:$24 sps:$4 sm:$0xff]   ;;  %v6640_v24 = vld [vmem:[#allocation14 + $0x250] ss:$24 sps:$4 sm:$0xff]   ;;  %v6645_v25 = vld [vmem:[#allocation14 + $0x284] ss:$24 sps:$4 sm:$0xff]  }
 0x29e   : > { %1439 = vmatprep.subr.bf16.mxu0 %v6592_v27  ;;  %v6648_v27 = vld [vmem:[#allocation14 + $0x2b4] ss:$24 sps:$4 sm:$0xff]  }
 0x29f   : > { %v752_v11 = vadd.f32 %v751_v10, %v750_v9  ;;  %v6621_v9 = vld [vmem:[#allocation14 + $0x104] ss:$24 sps:$4 sm:$0xff]   ;;  %v6619_v10 = vld [vmem:[#allocation14 + $0x100] ss:$24 sps:$4 sm:$0xff]  }
 0x2a0   : > { %1479 = vmatpush1.bf16.msra.mxu1 %v6591_v26  ;;  %v6643_v26 = vld [vmem:[#allocation14 + $0x280] ss:$24 sps:$4 sm:$0xff]  }
 0x2a1   : > { %753 = vadd.xlane.f32.xlu0 %v752_v11  ;;  %1480 = vmatprep.subr.bf16.mxu1 %v6595_v28  ;;  %v6624_v11 = vld [vmem:[#allocation14 + $0x134] ss:$24 sps:$4 sm:$0xff]   ;;  %v6646_v28 = vld [vmem:[#allocation14 + $0x2b0] ss:$24 sps:$4 sm:$0xff]  }
 0x2a2   : > { %1440 = vmatpush1.bf16.msra.mxu0 %v6594_v29  ;;  %v6651_v29 = vld [vmem:[#allocation14 + $0x2e4] ss:$24 sps:$4 sm:$0xff]  }
 0x2a3   : > { %1441 = vmatprep.subr.bf16.mxu0 %v6598_v31  ;;  %v7867_v31 = vmov 0.0  }
 0x2a4   : > { %1481 = vmatpush1.bf16.msra.mxu1 %v6597_v30  ;;  %v6649_v30 = vld [vmem:[#allocation14 + $0x2e0] ss:$24 sps:$4 sm:$0xff]  }
 0x2a5   : > { %1482 = vmatprep.subr.bf16.mxu1 %v6601_v32  ;;  %v8556_v32 = vld [vmem:[%s8862_s8] sm:$0x3f] }
 0x2a6   : > { %1442 = vmatpush1.bf16.msra.mxu0 %v6600_v33  ;;  %v912_v33 = vrot.slane %v8556_v32, %v8519_v41  ;;  %v904_v42 = vrot.slane %v8556_v32, %v8516_v40 }
 0x2a7   : > { %1493 = vmatprep.subr.bf16.mxu0 %v6606_v35 }
 0x2a8   : > { %1483 = vmatpush1.bf16.msra.mxu1 %v6603_v34 }
 0x2a9   : > { %6325 = vmatprep.subr.bf16.mxu1 %v7867_v31 }
 0x32e   : > { %v754_v36 = vpop.xlane.xlu0 %753 }
 0x32f   : > { %v755_v37 = vmul.f32 0.00390625, %v754_v36 }
 0x331   : > { %v756_v39 = vadd.f32 1e-12, %v755_v37 }
 0x333   : > { %7276 = vrsqrt.f32 %v756_v39 }
 0x33d   : > { %v7277_v50 = vpop.eup %7276 }
 0x33e   : > { %v759_v51 = vmul.f32 %v7277_v50, %v8506_v8  ;;  %v758_v53 = vmul.f32 %v7277_v50, %v8503_v7  ;;  %v6618_v7 = vld [vmem:[#allocation14 + $0xd4] ss:$24 sps:$4 sm:$0xff]   ;;  %v6616_v8 = vld [vmem:[#allocation14 + $0xd0] ss:$24 sps:$4 sm:$0xff]  }
 0x340   : > { %v780_v55 = vmul.f32 %v778_v48, %v759_v51  ;;  %v779_v56 = vmul.f32 %v774_v49, %v758_v53  ;;  %v919_v51 = vsub.s32 4, %v8513_v38 }
 0x342   : > { %v8537_v57 = vadd.f32 %v798_v52, %v780_v55  ;;  %v8539_v58 = vadd.f32 %v794_v54, %v779_v56  ;;  %v920_v52 = vrot.slane %v8556_v32, %v919_v51 }
 0x344   : > { %v802_v59 = vpack.c.bf16 %v8537_v57, %v8537_v57  ;;  %v8545_v61 = vpack.c.bf16 %v8539_v58, %v8539_v58 }
 0x346   : > { %1443 = vmatprep.mubr.bf16.mxu0 %v802_v59  ;;  %1484 = vmatprep.mubr.bf16.mxu1 %v802_v59 }
 0x347   : > { %1444 = vmatmul.mubr.bf16.vlgmr.msra.gmra.mrb[0].mxu0 %v8545_v61  ;;  %1485 = vmatmul.mubr.bf16.vlgmr.msra.gmra.mrb[0].mxu1 %v8545_v61 }
 0x348   : > { %1494 = vmatpush1.bf16.msra.mxu0 %v6604_v60  ;;  %1525 = vmatprep.mubr.bf16.mxu0 %v802_v59 }
 0x349   : > { %1495 = vmatprep.subr.bf16.mxu0 %v6609_v62  ;;  %6327 = vmatprep.mubr.msk.bf16.mxu1 %vm7868_vm2, %v7867_v31 }
 0x34c   : > { %1496 = vmatpush1.bf16.msra.mxu0 %v6607_v63 }
 0x34d   : > { %1497 = vmatprep.subr.bf16.mxu0 %v6612_v1 }
 0x350   : > { %1498 = vmatpush1.bf16.msra.mxu0 %v6610_v3 }
 0x351   : > { %1499 = vmatprep.subr.bf16.mxu0 %v6615_v4 }
 0x354   : > { %1500 = vmatpush1.bf16.msra.mxu0 %v6613_v5 }
 0x355   : > { %1501 = vmatprep.subr.bf16.mxu0 %v6618_v7 }
 0x358   : > { %1502 = vmatpush1.bf16.msra.mxu0 %v6616_v8 }
 0x359   : > { %1503 = vmatprep.subr.bf16.mxu0 %v6621_v9 }
 0x35c   : > { %1504 = vmatpush1.bf16.msra.mxu0 %v6619_v10 }
 0x35d   : > { %1505 = vmatprep.subr.bf16.mxu0 %v6624_v11 }
 0x360   : > { %1506 = vmatpush1.bf16.msra.mxu0 %v6622_v12 }
 0x361   : > { %1507 = vmatprep.subr.bf16.mxu0 %v6627_v13 }
 0x364   : > { %1508 = vmatpush1.bf16.msra.mxu0 %v6625_v14  ;;  %v916_v14 = vrot.slane %v8556_v32, %v8525_v44 }
 0x365   : > { %1509 = vmatprep.subr.bf16.mxu0 %v6630_v15  ;;  %v923_v15 = vsub.s32 5, %v8513_v38 }
 0x368   : > { %1510 = vmatpush1.bf16.msra.mxu0 %v6628_v16 }
 0x369   : > { %1511 = vmatprep.subr.bf16.mxu0 %v6633_v17 }
 0x36c   : > { %1512 = vmatpush1.bf16.msra.mxu0 %v6631_v18  ;;  %v924_v18 = vrot.slane %v8556_v32, %v923_v15 }
 0x36d   : > { %1513 = vmatprep.subr.bf16.mxu0 %v6636_v19 }
 0x370   : > { %1514 = vmatpush1.bf16.msra.mxu0 %v6634_v20  ;;  %v908_v20 = vrot.slane %v8556_v32, %v8522_v43 }
 0x371   : > { %1515 = vmatprep.subr.bf16.mxu0 %v6639_v21 }
 0x374   : > { %1516 = vmatpush1.bf16.msra.mxu0 %v6637_v22 }
 0x375   : > { %1517 = vmatprep.subr.bf16.mxu0 %v6642_v23 }
 0x378   : > { %1518 = vmatpush1.bf16.msra.mxu0 %v6640_v24 }
 0x379   : > { %1519 = vmatprep.subr.bf16.mxu0 %v6645_v25 }
 0x37c   : > { %1520 = vmatpush1.bf16.msra.mxu0 %v6643_v26 }
 0x37d   : > { %1521 = vmatprep.subr.bf16.mxu0 %v6648_v27 }
 0x380   : > { %1522 = vmatpush1.bf16.msra.mxu0 %v6646_v28 }
 0x381   : > { %1523 = vmatprep.subr.bf16.mxu0 %v6651_v29 }
 0x384   : > { %1524 = vmatpush1.bf16.msra.mxu0 %v6649_v30 }
 0x387   : > { %1526 = vmatmul.mubr.bf16.vlgmr.msra.gmra.mrb[4].mxu0 %v8545_v61 }
 0x41a   : > { %v1445_v34 = vpop.f32.mrb[0].mxu0  ;;  %v1486_v35 = vpop.f32.mrb[0].mxu1 }
 0x41b   : > { %v1487_v36 = vadd.f32 %v1486_v35, %v912_v33  ;;  %v1447_v37 = vpop.f32.mrb[1].mxu0  ;;  %v1488_v39 = vpop.f32.mrb[1].mxu1  ;;  %v1446_v49 = vadd.f32 %v1445_v34, %v904_v42 }
 0x41c   : > { %v1449_v45 = vpop.f32.mrb[2].mxu0  ;;  %v1490_v0 = vpop.f32.mrb[2].mxu1  ;;  %v1489_v17 = vadd.f32 %v1488_v39, %v916_v14  ;;  %v1448_v24 = vadd.f32 %v1447_v37, %v908_v20  ;;  %v6679_v14 = vld [vmem:[#allocation15 + $0x90] ss:$8 sps:$4 sm:$0xff]   ;;  %v6690_v20 = vld [vmem:[#allocation15 + $0xc4] ss:$8 sps:$4 sm:$0xff]  }
 0x41d   : > { %v1535_v46 = vpack.c.bf16 %v1487_v36, %v1487_v36  ;;  %v1450_v47 = vpop.f32.mrb[3].mxu0  ;;  %v1491_v48 = vpop.f32.mrb[3].mxu1  ;;  %v1534_v50 = vpack.c.bf16 %v1446_v49, %v1446_v49  ;;  %v6654_v49 = vld [vmem:[#allocation15 + $0x4] ss:$8 sps:$4 sm:$0xff]  }
 0x41e   : > { %v1640_v22 = vpack.c.bf16 %v1489_v17, %v1489_v17  ;;  %v1639_v26 = vpack.c.bf16 %v1448_v24, %v1448_v24  ;;  %v6682_v17 = vld [vmem:[#allocation15 + $0xa0] ss:$8 sps:$4 sm:$0xff]   ;;  %v6696_v24 = vld [vmem:[#allocation15 + $0xe4] ss:$8 sps:$4 sm:$0xff]  }
 0x41f   : > { %6326 = vmatpush3.bf16.xpose.msra.mxu1 %v1535_v46 }
 0x420   : > { %6331 = vmatprep.subr.bf16.mxu1 %v7867_v31 }
 0x426   : > { %6328 = vmatmul.mubr.bf16.vlgmr.msra.gmra.mrb[4].mxu1 %v1534_v50 }
 0x427   : > { %6333 = vmatprep.mubr.msk.bf16.mxu1 %vm7868_vm2, %v7867_v31 }
 0x45a   : > { %v1527_v53 = vpop.f32.mrb[4].mxu0 }
 0x45b   : > { %v1528_v54 = vadd.f32 %v1527_v53, %v920_v52  ;;  %v1529_v55 = vpop.f32.mrb[5].mxu0 }
 0x45c   : > { %v1531_v56 = vpop.f32.mrb[6].mxu0  ;;  %v1530_v23 = vadd.f32 %v1529_v55, %v924_v18  ;;  %v6687_v18 = vld [vmem:[#allocation15 + $0xb4] ss:$8 sps:$4 sm:$0xff]  }
 0x45d   : > { %v1536_v59 = vpack.c.bf16 %v1528_v54, %v1528_v54  ;;  %v1532_v60 = vpop.f32.mrb[7].mxu0  ;;  %v6652_v54 = vld [vmem:[#allocation15] ss:$8 sps:$4 sm:$0xff]   ;;  %v6657_v56 = vld [vmem:[#allocation15 + $0x14] ss:$8 sps:$4 sm:$0xff]  }
 0x45e   : > { %v1641_v25 = vpack.c.bf16 %v1530_v23, %v1530_v23  ;;  %v6660_v60 = vld [vmem:[#allocation15 + $0x24] ss:$8 sps:$4 sm:$0xff]   ;;  %v6691_v23 = vld [vmem:[#allocation15 + $0xd0] ss:$8 sps:$4 sm:$0xff]  }
 0x45f   : > { %v1597_v61 = vsel %vm1595_vm3, %v1536_v59, 0  ;;  %v6655_v59 = vld [vmem:[#allocation15 + $0x10] ss:$8 sps:$4 sm:$0xff]  }
 0x460   : > { %6332 = vmatpush3.bf16.msra.mxu1 %v1597_v61  ;;  %v1700_v27 = vsel %vm1595_vm3, %v1641_v25, 0  ;;  %v6658_v61 = vld [vmem:[#allocation15 + $0x20] ss:$8 sps:$4 sm:$0xff]  }
 0x461   : > { %6337 = vmatprep.subr.bf16.mxu1 %v7867_v31  ;;  %v6694_v25 = vld [vmem:[#allocation15 + $0xe0] ss:$8 sps:$4 sm:$0xff]  }
 0x4f9   : > { %v1571_v62 = vpop.f32.mrb[4].mxu1 }
 0x4fa   : > { %v1577_v63 = vmul.f32 0.088388346, %v1571_v62  ;;  %v6329_v1 = vpop.f32.mrb[5].mxu1  ;;  %v6663_v62 = vld [vmem:[#allocation15 + $0x34] ss:$8 sps:$4 sm:$0xff]  }
 0x4fb   : > { %v1574_v3 = vpop.f32.mrb[6].mxu1  ;;  %v6666_v1 = vld [vmem:[#allocation15 + $0x44] ss:$8 sps:$4 sm:$0xff]  }
 0x4fc   : > { %v1578_v4 = vadd.f32 %v1577_v63, %v8460_v6  ;;  %v6330_v5 = vpop.f32.mrb[7].mxu1  ;;  %v6661_v63 = vld [vmem:[#allocation15 + $0x30] ss:$8 sps:$4 sm:$0xff]   ;;  %v6664_v3 = vld [vmem:[#allocation15 + $0x40] ss:$8 sps:$4 sm:$0xff]  }
 0x4fd   : > { %v6667_v5 = vld [vmem:[#allocation15 + $0x50] ss:$8 sps:$4 sm:$0xff]  }
 0x4fe   : > { %v1580_v7 = vsel %vm1579_vm4, %v1578_v4, -inf }
 0x4ff   : > { %1581 = vmax.xlane.f32.xlu1 %v1580_v7  ;;  %v6672_v7 = vld [vmem:[#allocation15 + $0x64] ss:$8 sps:$4 sm:$0xff]  }
 0x58c   : > { %v1582_v8 = vpop.xlane.xlu1 %1581 }
 0x58d   : > { %v1583_v9 = vsub.f32 %v1578_v4, %v1582_v8  ;;  %v6669_v4 = vld [vmem:[#allocation15 + $0x54] ss:$8 sps:$4 sm:$0xff]   ;;  %v6670_v8 = vld [vmem:[#allocation15 + $0x60] ss:$8 sps:$4 sm:$0xff]  }
 0x58f   : > { %v1584_v10 = vmul.f32 1.442695, %v1583_v9  ;;  %v6675_v9 = vld [vmem:[#allocation15 + $0x74] ss:$8 sps:$4 sm:$0xff]  }
 0x591   : > { %7278 = vpow2.f32 %v1584_v10  ;;  %v6673_v10 = vld [vmem:[#allocation15 + $0x70] ss:$8 sps:$4 sm:$0xff]  }
 0x59b   : > { %v7279_v11 = vpop.eup %7278 }
 0x59c   : > { %v1586_v12 = vsel %vm1579_vm4, %v7279_v11, 0.0 }
 0x59d   : > { %1587 = vadd.xlane.f32.xlu1 %v1586_v12  ;;  %v6676_v12 = vld [vmem:[#allocation15 + $0x80] ss:$8 sps:$4 sm:$0xff]  }
 0x62a   : > { %v1588_v13 = vpop.xlane.xlu1 %1587 }
 0x62b   : > { %7280 = vrcp.f32 %v1588_v13  ;;  %v6681_v13 = vld [vmem:[#allocation15 + $0x94] ss:$8 sps:$4 sm:$0xff]  }
 0x635   : > { %v7281_v16 = vpop.eup %7280 }
 0x636   : > { %v1590_v19 = vmul.f32 %v7281_v16, %v7279_v11  ;;  %v6678_v11 = vld [vmem:[#allocation15 + $0x84] ss:$8 sps:$4 sm:$0xff]  }
 0x637   : > { %v6684_v16 = vld [vmem:[#allocation15 + $0xa4] ss:$8 sps:$4 sm:$0xff]  }
 0x638   : > { %v1591_v21 = vpack.c.bf16 %v1590_v19, %v1590_v19  ;;  %v6685_v19 = vld [vmem:[#allocation15 + $0xb0] ss:$8 sps:$4 sm:$0xff]  }
 0x63a   : > { %6334 = vmatmul.mubr.msk.bf16.vlgmr.msra.gmra.mrb[8].mxu1 %vm1579_vm4, %v1591_v21  ;;  %v6688_v21 = vld [vmem:[#allocation15 + $0xc0] ss:$8 sps:$4 sm:$0xff]  }
 0x63b   : > { %6338 = vmatpush3.bf16.xpose.msra.mxu1 %v1640_v22  ;;  %6339 = vmatprep.mubr.msk.bf16.mxu1 %vm7868_vm2, %v7867_v31  ;;  %v6693_v22 = vld [vmem:[#allocation15 + $0xd4] ss:$8 sps:$4 sm:$0xff]  }
 0x63c   : > { %6343 = vmatprep.subr.bf16.mxu1 %v7867_v31 }
 0x642   : > { %6340 = vmatmul.mubr.bf16.vlgmr.msra.gmra.mrb[12].mxu1 %v1639_v26  ;;  %v6699_v26 = vld [vmem:[#allocation15 + $0xf4] ss:$8 sps:$4 sm:$0xff]  }
 0x643   : > { %6344 = vmatpush3.bf16.msra.mxu1 %v1700_v27  ;;  %6345 = vmatprep.mubr.msk.bf16.mxu1 %vm7868_vm2, %v7867_v31  ;;  %v6697_v27 = vld [vmem:[#allocation15 + $0xf0] ss:$8 sps:$4 sm:$0xff]  }
 0x644   : > { %1948 = vmatprep.subr.bf16.mxu1 %v6654_v49 }
 0x70d   : > { %v8589_v28 = vpop.f32.mrb[8].mxu1 }
 0x70e   : > { %v6335_v29 = vpop.f32.mrb[9].mxu1 }
 0x70f   : > { %v1636_v30 = vpop.f32.mrb[10].mxu1 }
 0x710   : > { %v6336_v32 = vpop.f32.mrb[11].mxu1 }
 0x715   : > { %v1676_v33 = vpop.f32.mrb[12].mxu1 }
 0x716   : > { %v1682_v34 = vmul.f32 0.088388346, %v1676_v33  ;;  %v6341_v35 = vpop.f32.mrb[13].mxu1  ;;  %v1742_v33 = vpack.c.bf16 %v8589_v28, %v8589_v28 }
 0x717   : > { %v1679_v36 = vpop.f32.mrb[14].mxu1 }
 0x718   : > { %v1683_v37 = vadd.f32 %v1682_v34, %v8460_v6  ;;  %v6342_v39 = vpop.f32.mrb[15].mxu1  ;;  %v1776_v36 = vld [vmem:[#allocation17] sm:$0x3] }
 0x719   : > { %v1785_v39 = vrot.slane %v1776_v36, %v8522_v43 }
 0x71a   : > { %v1684_v42 = vsel %vm1579_vm4, %v1683_v37, -inf }
 0x71b   : > { %1685 = vmax.xlane.f32.xlu0 %v1684_v42 }
 0x7a8   : > { %v1686_v45 = vpop.xlane.xlu0 %1685 }
 0x7a9   : > { %v1687_v0 = vsub.f32 %v1683_v37, %v1686_v45  ;;  %v1781_v37 = vrot.slane %v1776_v36, %v8516_v40 }
 0x7ab   : > { %v1688_v46 = vmul.f32 1.442695, %v1687_v0 }
 0x7ad   : > { %7282 = vpow2.f32 %v1688_v46 }
 0x7b7   : > { %v7283_v47 = vpop.eup %7282 }
 0x7b8   : > { %v1690_v48 = vsel %vm1579_vm4, %v7283_v47, 0.0 }
 0x7b9   : > { %1691 = vadd.xlane.f32.xlu1 %v1690_v48 }
 0x846   : > { %v1692_v50 = vpop.xlane.xlu1 %1691 }
 0x847   : > { %7284 = vrcp.f32 %v1692_v50 }
 0x851   : > { %v7285_v52 = vpop.eup %7284 }
 0x852   : > { %v1694_v53 = vmul.f32 %v7285_v52, %v7283_v47  ;;  %v6700_v52 = vld [vmem:[#allocation18] ss:$16 sps:$4 sm:$0xff]  }
 0x854   : > { %v1695_v55 = vpack.c.bf16 %v1694_v53, %v1694_v53  ;;  %v6702_v53 = vld [vmem:[#allocation18 + $0x4] ss:$16 sps:$4 sm:$0xff]  }
 0x855   : > { %2457 = vmatprep.subr.bf16.mxu0 %v6702_v53  ;;  %v6774_v53 = vld [vmem:[#allocation18 + $0x184] ss:$16 sps:$4 sm:$0xff]  }
 0x856   : > { %6346 = vmatmul.mubr.msk.bf16.vlgmr.msra.gmra.mrb[16].mxu1 %vm1579_vm4, %v1695_v55  ;;  %v6705_v55 = vld [vmem:[#allocation18 + $0xc] ss:$16 sps:$4 sm:$0xff]   ;;  %2458 = vmatpush1.bf16.msra.mxu0 %v6700_v52  ;;  %v6769_v52 = vld [vmem:[#allocation18 + $0x168] ss:$16 sps:$4 sm:$0xff]  }
 0x857   : > { %1949 = vmatpush1.bf16.msra.mxu1 %v6652_v54  ;;  %v6703_v54 = vld [vmem:[#allocation18 + $0x8] ss:$16 sps:$4 sm:$0xff]  }
 0x858   : > { %1950 = vmatprep.subr.bf16.mxu1 %v6657_v56  ;;  %v6708_v56 = vld [vmem:[#allocation18 + $0x24] ss:$16 sps:$4 sm:$0xff]  }
 0x859   : > { %2459 = vmatprep.subr.bf16.mxu0 %v6708_v56  ;;  %v6775_v56 = vld [vmem:[#allocation18 + $0x188] ss:$16 sps:$4 sm:$0xff]  }
 0x85b   : > { %1951 = vmatpush1.bf16.msra.mxu1 %v6655_v59  ;;  %v6711_v59 = vld [vmem:[#allocation18 + $0x2c] ss:$16 sps:$4 sm:$0xff]  }
 0x85c   : > { %1952 = vmatprep.subr.bf16.mxu1 %v6660_v60  ;;  %v6706_v60 = vld [vmem:[#allocation18 + $0x20] ss:$16 sps:$4 sm:$0xff]  }
 0x85d   : > { %2460 = vmatpush1.bf16.msra.mxu0 %v6706_v60  ;;  %v6783_v60 = vld [vmem:[#allocation18 + $0x1ac] ss:$16 sps:$4 sm:$0xff]  }
 0x85f   : > { %1953 = vmatpush1.bf16.msra.mxu1 %v6658_v61  ;;  %v6714_v61 = vld [vmem:[#allocation18 + $0x44] ss:$16 sps:$4 sm:$0xff]  }
 0x860   : > { %1954 = vmatprep.subr.bf16.mxu1 %v6663_v62  ;;  %v6712_v62 = vld [vmem:[#allocation18 + $0x40] ss:$16 sps:$4 sm:$0xff]   ;;  %2461 = vmatprep.subr.bf16.mxu0 %v6714_v61  ;;  %v6781_v61 = vld [vmem:[#allocation18 + $0x1a8] ss:$16 sps:$4 sm:$0xff]  }
 0x861   : > { %2462 = vmatpush1.bf16.msra.mxu0 %v6712_v62  ;;  %v6786_v62 = vld [vmem:[#allocation18 + $0x1c4] ss:$16 sps:$4 sm:$0xff]  }
 0x863   : > { %1955 = vmatpush1.bf16.msra.mxu1 %v6661_v63  ;;  %v6715_v63 = vld [vmem:[#allocation18 + $0x48] ss:$16 sps:$4 sm:$0xff]  }
 0x864   : > { %1956 = vmatprep.subr.bf16.mxu1 %v6666_v1  ;;  %v6720_v1 = vld [vmem:[#allocation18 + $0x64] ss:$16 sps:$4 sm:$0xff]  }
 0x865   : > { %2463 = vmatprep.subr.bf16.mxu0 %v6720_v1  ;;  %v6789_v1 = vld [vmem:[#allocation18 + $0x1cc] ss:$16 sps:$4 sm:$0xff]  }
 0x867   : > { %1957 = vmatpush1.bf16.msra.mxu1 %v6664_v3  ;;  %v6723_v3 = vld [vmem:[#allocation18 + $0x6c] ss:$16 sps:$4 sm:$0xff]  }
 0x868   : > { %1958 = vmatprep.subr.bf16.mxu1 %v6669_v4  ;;  %v6718_v4 = vld [vmem:[#allocation18 + $0x60] ss:$16 sps:$4 sm:$0xff]  }
 0x869   : > { %2464 = vmatpush1.bf16.msra.mxu0 %v6718_v4  ;;  %v6795_v4 = vld [vmem:[#allocation18 + $0x1ec] ss:$16 sps:$4 sm:$0xff]  }
 0x86b   : > { %1959 = vmatpush1.bf16.msra.mxu1 %v6667_v5  ;;  %v6721_v5 = vld [vmem:[#allocation18 + $0x68] ss:$16 sps:$4 sm:$0xff]  }
 0x86c   : > { %1960 = vmatprep.subr.bf16.mxu1 %v6672_v7  ;;  %v6726_v7 = vld [vmem:[#allocation18 + $0x84] ss:$16 sps:$4 sm:$0xff]  }
 0x86d   : > { %2465 = vmatprep.subr.bf16.mxu0 %v6726_v7  ;;  %v6793_v7 = vld [vmem:[#allocation18 + $0x1e8] ss:$16 sps:$4 sm:$0xff]  }
 0x86f   : > { %1961 = vmatpush1.bf16.msra.mxu1 %v6670_v8  ;;  %v6729_v8 = vld [vmem:[#allocation18 + $0x8c] ss:$16 sps:$4 sm:$0xff]  }
 0x870   : > { %1962 = vmatprep.subr.bf16.mxu1 %v6675_v9  ;;  %v6724_v9 = vld [vmem:[#allocation18 + $0x80] ss:$16 sps:$4 sm:$0xff]  }
 0x871   : > { %2466 = vmatpush1.bf16.msra.mxu0 %v6724_v9  ;;  %v6801_v9 = vld [vmem:[#allocation20 + $0x104] ss:$8 sps:$4 sm:$0xff]  }
 0x873   : > { %1963 = vmatpush1.bf16.msra.mxu1 %v6673_v10  ;;  %v6727_v10 = vld [vmem:[#allocation18 + $0x88] ss:$16 sps:$4 sm:$0xff]  }
 0x874   : > { %1964 = vmatprep.subr.bf16.mxu1 %v6678_v11  ;;  %v6732_v11 = vld [vmem:[#allocation18 + $0xa4] ss:$16 sps:$4 sm:$0xff]  }
 0x875   : > { %2467 = vmatprep.subr.bf16.mxu0 %v6732_v11 }
 0x877   : > { %1965 = vmatpush1.bf16.msra.mxu1 %v6676_v12  ;;  %v6735_v12 = vld [vmem:[#allocation18 + $0xac] ss:$16 sps:$4 sm:$0xff]  }
 0x878   : > { %1966 = vmatprep.subr.bf16.mxu1 %v6681_v13  ;;  %v6730_v13 = vld [vmem:[#allocation18 + $0xa0] ss:$16 sps:$4 sm:$0xff]  }
 0x879   : > { %2468 = vmatpush1.bf16.msra.mxu0 %v6730_v13  ;;  %v1991_v13 = vld [vmem:[%s8865_s11] sm:$0xf] }
 0x87b   : > { %1967 = vmatpush1.bf16.msra.mxu1 %v6679_v14  ;;  %v6733_v14 = vld [vmem:[#allocation18 + $0xa8] ss:$16 sps:$4 sm:$0xff]  }
 0x87c   : > { %1968 = vmatprep.subr.bf16.mxu1 %v6684_v16  ;;  %v6738_v16 = vld [vmem:[#allocation18 + $0xc4] ss:$16 sps:$4 sm:$0xff]  }
 0x87d   : > { %2469 = vmatprep.subr.bf16.mxu0 %v6738_v16  ;;  %v2012_v16 = vrot.slane %v1991_v13, %v8516_v40 }
 0x87f   : > { %1969 = vmatpush1.bf16.msra.mxu1 %v6682_v17  ;;  %v6741_v17 = vld [vmem:[#allocation18 + $0xcc] ss:$16 sps:$4 sm:$0xff]  }
 0x880   : > { %1970 = vmatprep.subr.bf16.mxu1 %v6687_v18  ;;  %v6736_v18 = vld [vmem:[#allocation18 + $0xc0] ss:$16 sps:$4 sm:$0xff]  }
 0x881   : > { %2470 = vmatpush1.bf16.msra.mxu0 %v6736_v18  ;;  %v2032_v18 = vrot.slane %v1991_v13, %v8522_v43 }
 0x883   : > { %1971 = vmatpush1.bf16.msra.mxu1 %v6685_v19  ;;  %v6739_v19 = vld [vmem:[#allocation18 + $0xc8] ss:$16 sps:$4 sm:$0xff]  }
 0x884   : > { %1972 = vmatprep.subr.bf16.mxu1 %v6690_v20  ;;  %v6744_v20 = vld [vmem:[#allocation18 + $0xe4] ss:$16 sps:$4 sm:$0xff]  }
 0x885   : > { %2471 = vmatprep.subr.bf16.mxu0 %v6744_v20  ;;  %v2022_v20 = vrot.slane %v2012_v16, %v8516_v40  ;;  %v6858_v16 = vld [vmem:[#allocation20 + $0xa4] ss:$8 sps:$4 sm:$0xff]  }
 0x887   : > { %1973 = vmatpush1.bf16.msra.mxu1 %v6688_v21  ;;  %v6747_v21 = vld [vmem:[#allocation18 + $0xec] ss:$16 sps:$4 sm:$0xff]  }
 0x888   : > { %1974 = vmatprep.subr.bf16.mxu1 %v6693_v22  ;;  %v6742_v22 = vld [vmem:[#allocation18 + $0xe0] ss:$16 sps:$4 sm:$0xff]  }
 0x889   : > { %2472 = vmatpush1.bf16.msra.mxu0 %v6742_v22 }
 0x88b   : > { %1975 = vmatpush1.bf16.msra.mxu1 %v6691_v23  ;;  %v6745_v23 = vld [vmem:[#allocation18 + $0xe8] ss:$16 sps:$4 sm:$0xff]  }
 0x88c   : > { %1976 = vmatprep.subr.bf16.mxu1 %v6696_v24  ;;  %v6750_v24 = vld [vmem:[#allocation18 + $0x104] ss:$16 sps:$4 sm:$0xff]  }
 0x88d   : > { %2473 = vmatprep.subr.bf16.mxu0 %v6750_v24 }
 0x88f   : > { %1977 = vmatpush1.bf16.msra.mxu1 %v6694_v25  ;;  %v6753_v25 = vld [vmem:[#allocation18 + $0x10c] ss:$16 sps:$4 sm:$0xff]  }
 0x890   : > { %1978 = vmatprep.subr.bf16.mxu1 %v6699_v26  ;;  %v6748_v26 = vld [vmem:[#allocation18 + $0x100] ss:$16 sps:$4 sm:$0xff]  }
 0x891   : > { %2474 = vmatpush1.bf16.msra.mxu0 %v6748_v26 }
 0x893   : > { %1979 = vmatpush1.bf16.msra.mxu1 %v6697_v27  ;;  %v6751_v27 = vld [vmem:[#allocation18 + $0x108] ss:$16 sps:$4 sm:$0xff]  }
 0x894   : > { %2498 = vmatprep.subr.bf16.mxu1 %v6705_v55  ;;  %v6772_v55 = vld [vmem:[#allocation18 + $0x180] ss:$16 sps:$4 sm:$0xff]  }
 0x929   : > { %v1736_v29 = vpop.f32.mrb[16].mxu1 }
 0x92a   : > { %v1743_v30 = vpack.c.bf16 %v1736_v29, %v1736_v29  ;;  %v6347_v32 = vpop.f32.mrb[17].mxu1  ;;  %v6756_v29 = vld [vmem:[#allocation18 + $0x124] ss:$16 sps:$4 sm:$0xff]  }
 0x92b   : > { %v1739_v34 = vpop.f32.mrb[18].mxu1  ;;  %v6754_v32 = vld [vmem:[#allocation18 + $0x120] ss:$16 sps:$4 sm:$0xff]   ;;  %2475 = vmatprep.subr.bf16.mxu0 %v6756_v29 }
 0x92c   : > { %v6348_v35 = vpop.f32.mrb[19].mxu1  ;;  %1980 = vmatprep.mubr.bf16.mxu1 %v1743_v30  ;;  %v6759_v30 = vld [vmem:[#allocation18 + $0x12c] ss:$16 sps:$4 sm:$0xff]   ;;  %2476 = vmatpush1.bf16.msra.mxu0 %v6754_v32 }
 0x92d   : > { %1981 = vmatmul.mubr.bf16.vlgmr.msra.gmra.mrb[20].mxu1 %v1742_v33  ;;  %v6757_v33 = vld [vmem:[#allocation18 + $0x128] ss:$16 sps:$4 sm:$0xff]  }
 0x92e   : > { %2499 = vmatpush1.bf16.msra.mxu1 %v6703_v54  ;;  %v6777_v54 = vld [vmem:[#allocation18 + $0x18c] ss:$16 sps:$4 sm:$0xff]  }
 0x92f   : > { %2500 = vmatprep.subr.bf16.mxu1 %v6711_v59  ;;  %v6780_v59 = vld [vmem:[#allocation18 + $0x1a4] ss:$16 sps:$4 sm:$0xff]  }
 0xa00   : > { %v1982_v42 = vpop.f32.mrb[20].mxu1 }
 0xa01   : > { %v1983_v45 = vadd.f32 %v1982_v42, %v1781_v37  ;;  %v1984_v0 = vpop.f32.mrb[21].mxu1 }
 0xa02   : > { %v1985_v46 = vadd.f32 %v1984_v0, %v1785_v39  ;;  %v1986_v47 = vpop.f32.mrb[22].mxu1  ;;  %v6762_v0 = vld [vmem:[#allocation18 + $0x144] ss:$16 sps:$4 sm:$0xff]  }
 0xa03   : > { %v8600_v48 = vadd.f32 %v1983_v45, %v8539_v58  ;;  %v1987_v49 = vpop.f32.mrb[23].mxu1  ;;  %v6709_v58 = vld [vmem:[#allocation18 + $0x28] ss:$16 sps:$4 sm:$0xff]   ;;  %v6760_v47 = vld [vmem:[#allocation18 + $0x140] ss:$16 sps:$4 sm:$0xff]   ;;  %2477 = vmatprep.subr.bf16.mxu0 %v6762_v0 }
 0xa04   : > { %v8603_v28 = vadd.f32 %v1985_v46, %v8537_v57  ;;  %v6717_v57 = vld [vmem:[#allocation18 + $0x4c] ss:$16 sps:$4 sm:$0xff]   ;;  %2501 = vmatpush1.bf16.msra.mxu1 %v6709_v58  ;;  %v6763_v49 = vld [vmem:[#allocation18 + $0x148] ss:$16 sps:$4 sm:$0xff]   ;;  %2478 = vmatpush1.bf16.msra.mxu0 %v6760_v47  ;;  %v6778_v58 = vld [vmem:[#allocation18 + $0x1a0] ss:$16 sps:$4 sm:$0xff]  }
 0xa05   : > { %2502 = vmatprep.subr.bf16.mxu1 %v6717_v57  ;;  %v6765_v46 = vld [vmem:[#allocation18 + $0x14c] ss:$16 sps:$4 sm:$0xff]   ;;  %v6784_v57 = vld [vmem:[#allocation18 + $0x1c0] ss:$16 sps:$4 sm:$0xff]  }
 0xa06   : > { %v1992_v50 = vadd.f32 %v8603_v28, %v8600_v48  ;;  %v6813_v0 = vld [vmem:[#allocation20 + $0x124] ss:$8 sps:$4 sm:$0xff]   ;;  %v6811_v47 = vld [vmem:[#allocation20 + $0x120] ss:$8 sps:$4 sm:$0xff]  }
 0xa08   : > { %1993 = vadd.xlane.f32.xlu0 %v1992_v50  ;;  %2503 = vmatpush1.bf16.msra.mxu1 %v6715_v63  ;;  %v6771_v50 = vld [vmem:[#allocation18 + $0x16c] ss:$16 sps:$4 sm:$0xff]   ;;  %v6787_v63 = vld [vmem:[#allocation18 + $0x1c8] ss:$16 sps:$4 sm:$0xff]  }
 0xa09   : > { %2504 = vmatprep.subr.bf16.mxu1 %v6723_v3  ;;  %v6792_v3 = vld [vmem:[#allocation18 + $0x1e4] ss:$16 sps:$4 sm:$0xff]  }
 0xa0c   : > { %2505 = vmatpush1.bf16.msra.mxu1 %v6721_v5  ;;  %v6790_v5 = vld [vmem:[#allocation18 + $0x1e0] ss:$16 sps:$4 sm:$0xff]  }
 0xa0d   : > { %2506 = vmatprep.subr.bf16.mxu1 %v6729_v8  ;;  %v6798_v8 = vld [vmem:[#allocation20 + $0x4] ss:$8 sps:$4 sm:$0xff]  }
 0xa10   : > { %2507 = vmatpush1.bf16.msra.mxu1 %v6727_v10 }
 0xa11   : > { %2508 = vmatprep.subr.bf16.mxu1 %v6735_v12 }
 0xa14   : > { %2509 = vmatpush1.bf16.msra.mxu1 %v6733_v14  ;;  %v2016_v14 = vrot.slane %v1991_v13, %v8519_v41 }
 0xa15   : > { %2510 = vmatprep.subr.bf16.mxu1 %v6741_v17  ;;  %v2036_v17 = vrot.slane %v1991_v13, %v8525_v44  ;;  %v6850_v13 = vld [vmem:[#allocation20 + $0x90] ss:$8 sps:$4 sm:$0xff]  }
 0xa17   : > { %v2046_v24 = vrot.slane %v2036_v17, %v8522_v43  ;;  %v6861_v17 = vld [vmem:[#allocation20 + $0x1a4] ss:$8 sps:$4 sm:$0xff]  }
 0xa18   : > { %2511 = vmatpush1.bf16.msra.mxu1 %v6739_v19  ;;  %v2026_v19 = vrot.slane %v2016_v14, %v8516_v40  ;;  %v6853_v14 = vld [vmem:[#allocation20 + $0x190] ss:$8 sps:$4 sm:$0xff]  }
 0xa19   : > { %2512 = vmatprep.subr.bf16.mxu1 %v6747_v21 }
 0xa1c   : > { %2513 = vmatpush1.bf16.msra.mxu1 %v6745_v23 }
 0xa1d   : > { %2514 = vmatprep.subr.bf16.mxu1 %v6753_v25  ;;  %v2042_v25 = vrot.slane %v2032_v18, %v8522_v43  ;;  %v6856_v18 = vld [vmem:[#allocation20 + $0xa0] ss:$8 sps:$4 sm:$0xff]  }
 0xa20   : > { %2515 = vmatpush1.bf16.msra.mxu1 %v6751_v27 }
 0xa21   : > { %2516 = vmatprep.subr.bf16.mxu1 %v6759_v30 }
 0xa24   : > { %2517 = vmatpush1.bf16.msra.mxu1 %v6757_v33 }
 0xa25   : > { %2518 = vmatprep.subr.bf16.mxu1 %v6765_v46  ;;  %v6808_v46 = vld [vmem:[#allocation20 + $0x20] ss:$8 sps:$4 sm:$0xff]  }
 0xa28   : > { %2519 = vmatpush1.bf16.msra.mxu1 %v6763_v49  ;;  %v6816_v49 = vld [vmem:[#allocation20 + $0x34] ss:$8 sps:$4 sm:$0xff]  }
 0xa29   : > { %2520 = vmatprep.subr.bf16.mxu1 %v6771_v50  ;;  %v6814_v50 = vld [vmem:[#allocation20 + $0x30] ss:$8 sps:$4 sm:$0xff]  }
 0xa2c   : > { %2521 = vmatpush1.bf16.msra.mxu1 %v6769_v52  ;;  %v6822_v52 = vld [vmem:[#allocation20 + $0x44] ss:$8 sps:$4 sm:$0xff]  }
 0xa2d   : > { %2522 = vmatprep.subr.bf16.mxu1 %v6777_v54  ;;  %v6820_v54 = vld [vmem:[#allocation20 + $0x40] ss:$8 sps:$4 sm:$0xff]  }
 0xa30   : > { %2523 = vmatpush1.bf16.msra.mxu1 %v6775_v56  ;;  %v6828_v56 = vld [vmem:[#allocation20 + $0x54] ss:$8 sps:$4 sm:$0xff]  }
 0xa31   : > { %2524 = vmatprep.subr.bf16.mxu1 %v6783_v60  ;;  %v6826_v60 = vld [vmem:[#allocation20 + $0x50] ss:$8 sps:$4 sm:$0xff]  }
 0xa34   : > { %2525 = vmatpush1.bf16.msra.mxu1 %v6781_v61  ;;  %v6834_v61 = vld [vmem:[#allocation20 + $0x64] ss:$8 sps:$4 sm:$0xff]  }
 0xa35   : > { %2526 = vmatprep.subr.bf16.mxu1 %v6789_v1  ;;  %v6840_v1 = vld [vmem:[#allocation20 + $0x74] ss:$8 sps:$4 sm:$0xff]  }
 0xa38   : > { %2527 = vmatpush1.bf16.msra.mxu1 %v6787_v63  ;;  %v6835_v63 = vld [vmem:[#allocation20 + $0x160] ss:$8 sps:$4 sm:$0xff]  }
 0xa39   : > { %2528 = vmatprep.subr.bf16.mxu1 %v6795_v4  ;;  %v6838_v4 = vld [vmem:[#allocation20 + $0x70] ss:$8 sps:$4 sm:$0xff]  }
 0xa3c   : > { %2529 = vmatpush1.bf16.msra.mxu1 %v6793_v7  ;;  %v6846_v7 = vld [vmem:[#allocation20 + $0x84] ss:$8 sps:$4 sm:$0xff]  }
 0xa3d   : > { %3016 = vmatprep.subr.bf16.mxu1 %v6801_v9  ;;  %v6844_v9 = vld [vmem:[#allocation20 + $0x80] ss:$8 sps:$4 sm:$0xff]  }
 0xa95   : > { %v1994_v34 = vpop.xlane.xlu0 %1993 }
 0xa96   : > { %v1995_v35 = vmul.f32 0.00390625, %v1994_v34  ;;  %v6796_v34 = vld [vmem:[#allocation20] ss:$8 sps:$4 sm:$0xff]  }
 0xa98   : > { %v8608_v36 = vsub.f32 %v8600_v48, %v1995_v35  ;;  %v8611_v37 = vsub.f32 %v8603_v28, %v1995_v35  ;;  %v6768_v48 = vld [vmem:[#allocation18 + $0x164] ss:$16 sps:$4 sm:$0xff]   ;;  %v6766_v28 = vld [vmem:[#allocation18 + $0x160] ss:$16 sps:$4 sm:$0xff]  }
 0xa99   : > { %2479 = vmatprep.subr.bf16.mxu0 %v6768_v48  ;;  %v6799_v35 = vld [vmem:[#allocation20 + $0x100] ss:$8 sps:$4 sm:$0xff]   ;;  %v6819_v48 = vld [vmem:[#allocation20 + $0x134] ss:$8 sps:$4 sm:$0xff]  }
 0xa9a   : > { %v1998_v39 = vmul.f32 %v8608_v36, %v8608_v36  ;;  %v1999_v42 = vmul.f32 %v8611_v37, %v8611_v37  ;;  %2480 = vmatpush1.bf16.msra.mxu0 %v6766_v28  ;;  %v6817_v28 = vld [vmem:[#allocation20 + $0x130] ss:$8 sps:$4 sm:$0xff]  }
 0xa9b   : > { %2481 = vmatprep.subr.bf16.mxu0 %v6774_v53  ;;  %v6825_v53 = vld [vmem:[#allocation20 + $0x144] ss:$8 sps:$4 sm:$0xff]  }
 0xa9c   : > { %v2000_v45 = vadd.f32 %v1999_v42, %v1998_v39  ;;  %v6802_v39 = vld [vmem:[#allocation20 + $0x10] ss:$8 sps:$4 sm:$0xff]  }
 0xa9d   : > { %v6805_v42 = vld [vmem:[#allocation20 + $0x110] ss:$8 sps:$4 sm:$0xff]  }
 0xa9e   : > { %2001 = vadd.xlane.f32.xlu1 %v2000_v45  ;;  %2482 = vmatpush1.bf16.msra.mxu0 %v6772_v55  ;;  %v6810_v45 = vld [vmem:[#allocation20 + $0x24] ss:$8 sps:$4 sm:$0xff]   ;;  %v6823_v55 = vld [vmem:[#allocation20 + $0x140] ss:$8 sps:$4 sm:$0xff]  }
 0xa9f   : > { %2483 = vmatprep.subr.bf16.mxu0 %v6780_v59  ;;  %v6831_v59 = vld [vmem:[#allocation20 + $0x154] ss:$8 sps:$4 sm:$0xff]  }
 0xaa2   : > { %2484 = vmatpush1.bf16.msra.mxu0 %v6778_v58  ;;  %v6829_v58 = vld [vmem:[#allocation20 + $0x150] ss:$8 sps:$4 sm:$0xff]  }
 0xaa3   : > { %2485 = vmatprep.subr.bf16.mxu0 %v6786_v62  ;;  %v6832_v62 = vld [vmem:[#allocation20 + $0x60] ss:$8 sps:$4 sm:$0xff]  }
 0xaa6   : > { %2486 = vmatpush1.bf16.msra.mxu0 %v6784_v57  ;;  %v6837_v57 = vld [vmem:[#allocation20 + $0x164] ss:$8 sps:$4 sm:$0xff]  }
 0xaa7   : > { %2487 = vmatprep.subr.bf16.mxu0 %v6792_v3  ;;  %v6843_v3 = vld [vmem:[#allocation20 + $0x174] ss:$8 sps:$4 sm:$0xff]  }
 0xaaa   : > { %2488 = vmatpush1.bf16.msra.mxu0 %v6790_v5  ;;  %v6841_v5 = vld [vmem:[#allocation20 + $0x170] ss:$8 sps:$4 sm:$0xff]  }
 0xaab   : > { %2975 = vmatprep.subr.bf16.mxu0 %v6798_v8  ;;  %v6849_v8 = vld [vmem:[#allocation20 + $0x184] ss:$8 sps:$4 sm:$0xff]  }
 0xb2b   : > { %v2002_v10 = vpop.xlane.xlu1 %2001 }
 0xb2c   : > { %v2003_v11 = vmul.f32 0.00390625, %v2002_v10  ;;  %v6847_v10 = vld [vmem:[#allocation20 + $0x180] ss:$8 sps:$4 sm:$0xff]  }
 0xb2e   : > { %v2004_v12 = vadd.f32 1e-12, %v2003_v11  ;;  %v6852_v11 = vld [vmem:[#allocation20 + $0x94] ss:$8 sps:$4 sm:$0xff]  }
 0xb30   : > { %7286 = vrsqrt.f32 %v2004_v12  ;;  %v6855_v12 = vld [vmem:[#allocation20 + $0x194] ss:$8 sps:$4 sm:$0xff]  }
 0xb3a   : > { %v7287_v21 = vpop.eup %7286 }
 0xb3b   : > { %v2006_v22 = vmul.f32 %v7287_v21, %v8608_v36  ;;  %v2007_v23 = vmul.f32 %v7287_v21, %v8611_v37  ;;  %v6804_v36 = vld [vmem:[#allocation20 + $0x14] ss:$8 sps:$4 sm:$0xff]   ;;  %v6862_v21 = vld [vmem:[#allocation20 + $0xb0] ss:$8 sps:$4 sm:$0xff]  }
 0xb3c   : > { %v6807_v37 = vld [vmem:[#allocation20 + $0x114] ss:$8 sps:$4 sm:$0xff]  }
 0xb3d   : > { %v2028_v26 = vmul.f32 %v2026_v19, %v2007_v23  ;;  %v2027_v27 = vmul.f32 %v2022_v20, %v2006_v22  ;;  %v6859_v19 = vld [vmem:[#allocation20 + $0x1a0] ss:$8 sps:$4 sm:$0xff]   ;;  %v6864_v20 = vld [vmem:[#allocation20 + $0xb4] ss:$8 sps:$4 sm:$0xff]   ;;  %v6865_v22 = vld [vmem:[#allocation20 + $0x1b0] ss:$8 sps:$4 sm:$0xff]  }
 0xb3e   : > { %v6867_v23 = vld [vmem:[#allocation20 + $0x1b4] ss:$8 sps:$4 sm:$0xff]  }
 0xb3f   : > { %v8630_v29 = vadd.f32 %v2046_v24, %v2028_v26  ;;  %v8632_v30 = vadd.f32 %v2042_v25, %v2027_v27  ;;  %v6870_v24 = vld [vmem:[#allocation20 + $0xc4] ss:$8 sps:$4 sm:$0xff]   ;;  %v6868_v26 = vld [vmem:[#allocation20 + $0xc0] ss:$8 sps:$4 sm:$0xff]  }
 0xb40   : > { %v6873_v25 = vld [vmem:[#allocation20 + $0x1c4] ss:$8 sps:$4 sm:$0xff]   ;;  %v6871_v27 = vld [vmem:[#allocation20 + $0x1c0] ss:$8 sps:$4 sm:$0xff]  }
 0xb41   : > { %v2050_v32 = vpack.c.bf16 %v8630_v29, %v8630_v29  ;;  %v2049_v33 = vpack.c.bf16 %v8632_v30, %v8632_v30 }
 0xb43   : > { %2489 = vmatprep.mubr.bf16.mxu0 %v2050_v32  ;;  %2530 = vmatprep.mubr.bf16.mxu1 %v2050_v32  ;;  %v6876_v32 = vld [vmem:[#allocation20 + $0xd4] ss:$8 sps:$4 sm:$0xff]  }
 0xb44   : > { %2490 = vmatmul.mubr.bf16.vlgmr.msra.gmra.mrb[8].mxu0 %v2049_v33  ;;  %2531 = vmatmul.mubr.bf16.vlgmr.msra.gmra.mrb[24].mxu1 %v2049_v33  ;;  %v6879_v33 = vld [vmem:[#allocation20 + $0x1d4] ss:$8 sps:$4 sm:$0xff]  }
 0xb45   : > { %2976 = vmatpush1.bf16.msra.mxu0 %v6796_v34  ;;  %3017 = vmatpush1.bf16.msra.mxu1 %v6799_v35  ;;  %v6874_v34 = vld [vmem:[#allocation20 + $0xd0] ss:$8 sps:$4 sm:$0xff]  }
 0xb46   : > { %2977 = vmatprep.subr.bf16.mxu0 %v6804_v36  ;;  %3018 = vmatprep.subr.bf16.mxu1 %v6807_v37  ;;  %v6877_v35 = vld [vmem:[#allocation20 + $0x1d0] ss:$8 sps:$4 sm:$0xff]   ;;  %v6882_v36 = vld [vmem:[#allocation20 + $0xe4] ss:$8 sps:$4 sm:$0xff]  }
 0xb47   : > { %v6885_v37 = vld [vmem:[#allocation20 + $0x1e4] ss:$8 sps:$4 sm:$0xff]  }
 0xb49   : > { %2978 = vmatpush1.bf16.msra.mxu0 %v6802_v39  ;;  %3019 = vmatpush1.bf16.msra.mxu1 %v6805_v42  ;;  %v6880_v39 = vld [vmem:[#allocation20 + $0xe0] ss:$8 sps:$4 sm:$0xff]  }
 0xb4a   : > { %2979 = vmatprep.subr.bf16.mxu0 %v6810_v45  ;;  %3020 = vmatprep.subr.bf16.mxu1 %v6813_v0  ;;  %v6883_v42 = vld [vmem:[#allocation20 + $0x1e0] ss:$8 sps:$4 sm:$0xff]   ;;  %v6888_v45 = vld [vmem:[#allocation20 + $0xf4] ss:$8 sps:$4 sm:$0xff]  }
 0xb4b   : > { %v6891_v0 = vld [vmem:[#allocation20 + $0x1f4] ss:$8 sps:$4 sm:$0xff]  }
 0xb4d   : > { %2980 = vmatpush1.bf16.msra.mxu0 %v6808_v46  ;;  %3021 = vmatpush1.bf16.msra.mxu1 %v6811_v47  ;;  %v6886_v46 = vld [vmem:[#allocation20 + $0xf0] ss:$8 sps:$4 sm:$0xff]  }
 0xb4e   : > { %2981 = vmatprep.subr.bf16.mxu0 %v6816_v49  ;;  %3022 = vmatprep.subr.bf16.mxu1 %v6819_v48  ;;  %v6889_v47 = vld [vmem:[#allocation20 + $0x1f0] ss:$8 sps:$4 sm:$0xff]   ;;  %v2115_v49 = vld [vmem:[%s8961_s12] sm:$0xf] }
 0xb4f   : > { %v2120_v48 = vrot.slane %v2115_v49, %v8516_v40 }
 0xb51   : > { %2982 = vmatpush1.bf16.msra.mxu0 %v6814_v50  ;;  %3023 = vmatpush1.bf16.msra.mxu1 %v6817_v28  ;;  %v2128_v50 = vrot.slane %v2115_v49, %v8519_v41  ;;  %v2124_v28 = vrot.slane %v2115_v49, %v8522_v43 }
 0xb52   : > { %2983 = vmatprep.subr.bf16.mxu0 %v6822_v52  ;;  %3024 = vmatprep.subr.bf16.mxu1 %v6825_v53  ;;  %v2132_v52 = vrot.slane %v2115_v49, %v8525_v44 }
 0xb55   : > { %2984 = vmatpush1.bf16.msra.mxu0 %v6820_v54  ;;  %3025 = vmatpush1.bf16.msra.mxu1 %v6823_v55 }
 0xb56   : > { %2985 = vmatprep.subr.bf16.mxu0 %v6828_v56  ;;  %3026 = vmatprep.subr.bf16.mxu1 %v6831_v59 }
 0xb59   : > { %2986 = vmatpush1.bf16.msra.mxu0 %v6826_v60  ;;  %3027 = vmatpush1.bf16.msra.mxu1 %v6829_v58 }
 0xb5a   : > { %2987 = vmatprep.subr.bf16.mxu0 %v6834_v61  ;;  %3028 = vmatprep.subr.bf16.mxu1 %v6837_v57 }
 0xb5d   : > { %2988 = vmatpush1.bf16.msra.mxu0 %v6832_v62  ;;  %3029 = vmatpush1.bf16.msra.mxu1 %v6835_v63 }
 0xb5e   : > { %2989 = vmatprep.subr.bf16.mxu0 %v6840_v1  ;;  %3030 = vmatprep.subr.bf16.mxu1 %v6843_v3 }
 0xb61   : > { %2990 = vmatpush1.bf16.msra.mxu0 %v6838_v4  ;;  %3031 = vmatpush1.bf16.msra.mxu1 %v6841_v5 }
 0xb62   : > { %2991 = vmatprep.subr.bf16.mxu0 %v6846_v7  ;;  %3032 = vmatprep.subr.bf16.mxu1 %v6849_v8 }
 0xb65   : > { %2992 = vmatpush1.bf16.msra.mxu0 %v6844_v9  ;;  %3033 = vmatpush1.bf16.msra.mxu1 %v6847_v10 }
 0xb66   : > { %2993 = vmatprep.subr.bf16.mxu0 %v6852_v11  ;;  %3034 = vmatprep.subr.bf16.mxu1 %v6855_v12 }
 0xb69   : > { %2994 = vmatpush1.bf16.msra.mxu0 %v6850_v13  ;;  %3035 = vmatpush1.bf16.msra.mxu1 %v6853_v14 }
 0xb6a   : > { %2995 = vmatprep.subr.bf16.mxu0 %v6858_v16  ;;  %3036 = vmatprep.subr.bf16.mxu1 %v6861_v17 }
 0xb6d   : > { %2996 = vmatpush1.bf16.msra.mxu0 %v6856_v18  ;;  %3037 = vmatpush1.bf16.msra.mxu1 %v6859_v19 }
 0xb6e   : > { %2997 = vmatprep.subr.bf16.mxu0 %v6864_v20  ;;  %3038 = vmatprep.subr.bf16.mxu1 %v6867_v23 }
 0xb71   : > { %2998 = vmatpush1.bf16.msra.mxu0 %v6862_v21  ;;  %3039 = vmatpush1.bf16.msra.mxu1 %v6865_v22 }
 0xb72   : > { %2999 = vmatprep.subr.bf16.mxu0 %v6870_v24  ;;  %3040 = vmatprep.subr.bf16.mxu1 %v6873_v25 }
 0xb75   : > { %3000 = vmatpush1.bf16.msra.mxu0 %v6868_v26  ;;  %3041 = vmatpush1.bf16.msra.mxu1 %v6871_v27 }
 0xb76   : > { %3001 = vmatprep.subr.bf16.mxu0 %v6876_v32  ;;  %3042 = vmatprep.subr.bf16.mxu1 %v6879_v33 }
 0xb79   : > { %3002 = vmatpush1.bf16.msra.mxu0 %v6874_v34  ;;  %3043 = vmatpush1.bf16.msra.mxu1 %v6877_v35 }
 0xb7a   : > { %3003 = vmatprep.subr.bf16.mxu0 %v6882_v36  ;;  %3044 = vmatprep.subr.bf16.mxu1 %v6885_v37 }
 0xb7d   : > { %3004 = vmatpush1.bf16.msra.mxu0 %v6880_v39  ;;  %3045 = vmatpush1.bf16.msra.mxu1 %v6883_v42 }
 0xb7e   : > { %3005 = vmatprep.subr.bf16.mxu0 %v6888_v45  ;;  %3046 = vmatprep.subr.bf16.mxu1 %v6891_v0 }
 0xb81   : > { %3006 = vmatpush1.bf16.msra.mxu0 %v6886_v46  ;;  %3047 = vmatpush1.bf16.msra.mxu1 %v6889_v47 }
 0xc17   : > { %v2491_v53 = vpop.f32.mrb[8].mxu0  ;;  %v2532_v54 = vpop.f32.mrb[24].mxu1 }
 0xc18   : > { %v2492_v55 = vadd.f32 %v2491_v53, %v2120_v48  ;;  %v2533_v56 = vadd.f32 %v2532_v54, %v2128_v50  ;;  %v2493_v59 = vpop.f32.mrb[9].mxu0  ;;  %v2534_v60 = vpop.f32.mrb[25].mxu1  ;;  %v2643_v53 = vld [vmem:[%s8962_s15] sm:$0x3] }
 0xc19   : > { %v2494_v58 = vadd.f32 %v2493_v59, %v2124_v28  ;;  %v2535_v61 = vadd.f32 %v2534_v60, %v2132_v52  ;;  %v2495_v57 = vpop.f32.mrb[10].mxu0  ;;  %v2536_v62 = vpop.f32.mrb[26].mxu1  ;;  %v2648_v54 = vrot.slane %v2643_v53, %v8516_v40 }
 0xc1a   : > { %v2543_v63 = vmul.f32 0.044715, %v2492_v55  ;;  %v2545_v1 = vmul.f32 0.044715, %v2533_v56  ;;  %v2496_v3 = vpop.f32.mrb[11].mxu0  ;;  %v2537_v4 = vpop.f32.mrb[27].mxu1 }
 0xc1b   : > { %v2544_v5 = vmul.f32 0.044715, %v2494_v58  ;;  %v2546_v7 = vmul.f32 0.044715, %v2535_v61  ;;  %v2539_v27 = vmul.f32 0.5, %v2492_v55  ;;  %v2540_v34 = vmul.f32 0.5, %v2494_v58 }
 0xc1c   : > { %v2547_v8 = vmul.f32 %v2543_v63, %v2492_v55  ;;  %v2549_v9 = vmul.f32 %v2545_v1, %v2533_v56  ;;  %v2542_v37 = vmul.f32 0.5, %v2535_v61  ;;  %v2541_v0 = vmul.f32 0.5, %v2533_v56 }
 0xc1d   : > { %v2548_v10 = vmul.f32 %v2544_v5, %v2494_v58  ;;  %v2550_v11 = vmul.f32 %v2546_v7, %v2535_v61 }
 0xc1e   : > { %v2551_v12 = vmul.f32 %v2547_v8, %v2492_v55  ;;  %v2553_v13 = vmul.f32 %v2549_v9, %v2533_v56 }
 0xc1f   : > { %v2552_v14 = vmul.f32 %v2548_v10, %v2494_v58  ;;  %v2554_v16 = vmul.f32 %v2550_v11, %v2535_v61  ;;  %v6892_v10 = vld [vmem:[#allocation14 + $0x300] ss:$24 sps:$4 sm:$0xff]   ;;  %v6894_v11 = vld [vmem:[#allocation14 + $0x304] ss:$24 sps:$4 sm:$0xff]  }
 0xc20   : > { %v2555_v17 = vadd.f32 %v2551_v12, %v2492_v55  ;;  %v2557_v18 = vadd.f32 %v2553_v13, %v2533_v56  ;;  %v2652_v55 = vrot.slane %v2643_v53, %v8522_v43  ;;  %v6895_v12 = vld [vmem:[#allocation14 + $0x308] ss:$24 sps:$4 sm:$0xff]   ;;  %v6897_v13 = vld [vmem:[#allocation14 + $0x30c] ss:$24 sps:$4 sm:$0xff]   ;;  %3729 = vmatprep.subr.bf16.mxu0 %v6894_v11  ;;  %v6963_v11 = vld [vmem:[#allocation14 + $0x51c] ss:$24 sps:$4 sm:$0xff]  }
 0xc21   : > { %v2556_v19 = vadd.f32 %v2552_v14, %v2494_v58  ;;  %v2558_v20 = vadd.f32 %v2554_v16, %v2535_v61  ;;  %v6900_v14 = vld [vmem:[#allocation14 + $0x334] ss:$24 sps:$4 sm:$0xff]   ;;  %3770 = vmatprep.subr.bf16.mxu1 %v6897_v13 }
 0xc22   : > { %v2559_v21 = vmul.f32 0.7978846, %v2555_v17  ;;  %v2561_v24 = vmul.f32 0.7978846, %v2557_v18  ;;  %v6903_v16 = vld [vmem:[#allocation14 + $0x33c] ss:$24 sps:$4 sm:$0xff]  }
 0xc23   : > { %v2560_v22 = vmul.f32 0.7978846, %v2556_v19  ;;  %v2562_v23 = vmul.f32 0.7978846, %v2558_v20  ;;  %v6898_v17 = vld [vmem:[#allocation14 + $0x330] ss:$24 sps:$4 sm:$0xff]  }
 0xc24   : > { %7288 = vtanh.f32 %v2559_v21  ;;  %v6906_v18 = vld [vmem:[#allocation14 + $0x364] ss:$24 sps:$4 sm:$0xff]   ;;  %v6904_v19 = vld [vmem:[#allocation14 + $0x360] ss:$24 sps:$4 sm:$0xff]   ;;  %v6912_v21 = vld [vmem:[#allocation14 + $0x394] ss:$24 sps:$4 sm:$0xff]  }
 0xc25   : > { %7290 = vtanh.f32 %v2560_v22  ;;  %v6907_v20 = vld [vmem:[#allocation14 + $0x368] ss:$24 sps:$4 sm:$0xff]   ;;  %v6915_v22 = vld [vmem:[#allocation14 + $0x39c] ss:$24 sps:$4 sm:$0xff]   ;;  %v6969_v13 = vld [vmem:[#allocation14 + $0x54c] ss:$24 sps:$4 sm:$0xff]  }
 0xc26   : > { %7292 = vtanh.f32 %v2562_v23  ;;  %v6910_v23 = vld [vmem:[#allocation14 + $0x390] ss:$24 sps:$4 sm:$0xff]   ;;  %v6948_v53 = vld [vmem:[#allocation14 + $0x4b4] ss:$24 sps:$4 sm:$0xff]  }
 0xc27   : > { %7294 = vtanh.f32 %v2561_v24  ;;  %v6913_v24 = vld [vmem:[#allocation14 + $0x398] ss:$24 sps:$4 sm:$0xff]  }
 0xc2e   : > { %v7289_v25 = vpop.eup %7288 }
 0xc2f   : > { %v7291_v26 = vpop.eup %7290  ;;  %v2567_v32 = vadd.f32 1.0, %v7289_v25  ;;  %v6918_v25 = vld [vmem:[#allocation14 + $0x3c4] ss:$24 sps:$4 sm:$0xff]  }
 0xc30   : > { %v7293_v33 = vpop.eup %7292  ;;  %v2568_v35 = vadd.f32 1.0, %v7291_v26  ;;  %v6921_v26 = vld [vmem:[#allocation14 + $0x3cc] ss:$24 sps:$4 sm:$0xff]  }
 0xc31   : > { %v7295_v36 = vpop.eup %7294  ;;  %v2570_v39 = vadd.f32 1.0, %v7293_v33  ;;  %v2571_v42 = vmul.f32 %v2567_v32, %v2539_v27  ;;  %v6916_v27 = vld [vmem:[#allocation14 + $0x3c0] ss:$24 sps:$4 sm:$0xff]   ;;  %v6924_v33 = vld [vmem:[#allocation14 + $0x3f4] ss:$24 sps:$4 sm:$0xff]  }
 0xc32   : > { %v2572_v45 = vmul.f32 %v2568_v35, %v2540_v34  ;;  %v2569_v46 = vadd.f32 1.0, %v7295_v36  ;;  %v6919_v32 = vld [vmem:[#allocation14 + $0x3c8] ss:$24 sps:$4 sm:$0xff]   ;;  %v6927_v34 = vld [vmem:[#allocation14 + $0x3fc] ss:$24 sps:$4 sm:$0xff]  }
 0xc33   : > { %v2574_v47 = vmul.f32 %v2570_v39, %v2542_v37  ;;  %v2575_v28 = vpack.c.bf16 %v2571_v42, %v2571_v42  ;;  %v6922_v35 = vld [vmem:[#allocation14 + $0x3f0] ss:$24 sps:$4 sm:$0xff]   ;;  %v6930_v37 = vld [vmem:[#allocation14 + $0x424] ss:$24 sps:$4 sm:$0xff]   ;;  %v6928_v42 = vld [vmem:[#allocation14 + $0x420] ss:$24 sps:$4 sm:$0xff]  }
 0xc34   : > { %v2576_v49 = vpack.c.bf16 %v2572_v45, %v2572_v45  ;;  %v2573_v48 = vmul.f32 %v2569_v46, %v2541_v0  ;;  %v6925_v36 = vld [vmem:[#allocation14 + $0x3f8] ss:$24 sps:$4 sm:$0xff]   ;;  %v6933_v39 = vld [vmem:[#allocation14 + $0x42c] ss:$24 sps:$4 sm:$0xff]   ;;  %v6931_v45 = vld [vmem:[#allocation14 + $0x428] ss:$24 sps:$4 sm:$0xff]  }
 0xc35   : > { %v2578_v50 = vpack.c.bf16 %v2574_v47, %v2574_v47  ;;  %v6936_v0 = vld [vmem:[#allocation14 + $0x454] ss:$24 sps:$4 sm:$0xff]   ;;  %v6934_v47 = vld [vmem:[#allocation14 + $0x450] ss:$24 sps:$4 sm:$0xff]  }
 0xc36   : > { %3007 = vmatprep.mubr.bf16.mxu0 %v2576_v49  ;;  %v2577_v52 = vpack.c.bf16 %v2573_v48, %v2573_v48  ;;  %v6939_v46 = vld [vmem:[#allocation14 + $0x45c] ss:$24 sps:$4 sm:$0xff]   ;;  %v6937_v49 = vld [vmem:[#allocation14 + $0x458] ss:$24 sps:$4 sm:$0xff]  }
 0xc37   : > { %3048 = vmatprep.mubr.bf16.mxu1 %v2578_v50  ;;  %3008 = vmatmul.mubr.bf16.vlgmr.msra.gmra.mrb[12].mxu0 %v2575_v28  ;;  %v6942_v48 = vld [vmem:[#allocation14 + $0x484] ss:$24 sps:$4 sm:$0xff]   ;;  %v6940_v28 = vld [vmem:[#allocation14 + $0x480] ss:$24 sps:$4 sm:$0xff]  }
 0xc38   : > { %3049 = vmatmul.mubr.bf16.vlgmr.msra.gmra.mrb[28].mxu1 %v2577_v52  ;;  %3730 = vmatpush1.bf16.msra.mxu0 %v6892_v10  ;;  %v6945_v50 = vld [vmem:[#allocation14 + $0x48c] ss:$24 sps:$4 sm:$0xff]   ;;  %v6943_v52 = vld [vmem:[#allocation14 + $0x488] ss:$24 sps:$4 sm:$0xff]  }
 0xc39   : > { %3771 = vmatpush1.bf16.msra.mxu1 %v6895_v12  ;;  %3731 = vmatprep.subr.bf16.mxu0 %v6900_v14  ;;  %v6958_v10 = vld [vmem:[#allocation14 + $0x510] ss:$24 sps:$4 sm:$0xff]   ;;  %v6964_v12 = vld [vmem:[#allocation14 + $0x540] ss:$24 sps:$4 sm:$0xff]  }
 0xc3a   : > { %3772 = vmatprep.subr.bf16.mxu1 %v6903_v16  ;;  %v6967_v14 = vld [vmem:[#allocation14 + $0x548] ss:$24 sps:$4 sm:$0xff]   ;;  %v6972_v16 = vld [vmem:[#allocation14 + $0x574] ss:$24 sps:$4 sm:$0xff]  }
 0xc3c   : > { %3732 = vmatpush1.bf16.msra.mxu0 %v6898_v17  ;;  %v6970_v17 = vld [vmem:[#allocation14 + $0x570] ss:$24 sps:$4 sm:$0xff]  }
 0xc3d   : > { %3733 = vmatprep.subr.bf16.mxu0 %v6906_v18  ;;  %v6973_v18 = vld [vmem:[#allocation14 + $0x578] ss:$24 sps:$4 sm:$0xff]  }
 0xc40   : > { %3734 = vmatpush1.bf16.msra.mxu0 %v6904_v19  ;;  %v6978_v19 = vld [vmem:[#allocation14 + $0x5a4] ss:$24 sps:$4 sm:$0xff]  }
 0xc41   : > { %3735 = vmatprep.subr.bf16.mxu0 %v6912_v21  ;;  %v6981_v21 = vld [vmem:[#allocation14 + $0x5ac] ss:$24 sps:$4 sm:$0xff]  }
 0xc44   : > { %3736 = vmatpush1.bf16.msra.mxu0 %v6910_v23  ;;  %v6987_v23 = vld [vmem:[#allocation14 + $0x5dc] ss:$24 sps:$4 sm:$0xff]  }
 0xc45   : > { %3737 = vmatprep.subr.bf16.mxu0 %v6918_v25  ;;  %v6985_v25 = vld [vmem:[#allocation14 + $0x5d8] ss:$24 sps:$4 sm:$0xff]  }
 0xc48   : > { %3738 = vmatpush1.bf16.msra.mxu0 %v6916_v27 }
 0xc49   : > { %3739 = vmatprep.subr.bf16.mxu0 %v6924_v33 }
 0xc4c   : > { %3740 = vmatpush1.bf16.msra.mxu0 %v6922_v35 }
 0xc4d   : > { %3741 = vmatprep.subr.bf16.mxu0 %v6930_v37 }
 0xc50   : > { %3742 = vmatpush1.bf16.msra.mxu0 %v6928_v42 }
 0xc51   : > { %3743 = vmatprep.subr.bf16.mxu0 %v6936_v0 }
 0xc54   : > { %3744 = vmatpush1.bf16.msra.mxu0 %v6934_v47 }
 0xc55   : > { %3745 = vmatprep.subr.bf16.mxu0 %v6942_v48 }
 0xc58   : > { %3746 = vmatpush1.bf16.msra.mxu0 %v6940_v28 }
 0xc59   : > { %3747 = vmatprep.subr.bf16.mxu0 %v6948_v53 }
 0xd0a   : > { %v3009_v56 = vpop.f32.mrb[12].mxu0 }
 0xd0b   : > { %v3010_v59 = vadd.f32 %v3009_v56, %v2648_v54  ;;  %v3050_v60 = vpop.f32.mrb[28].mxu1  ;;  %v3011_v58 = vpop.f32.mrb[13].mxu0  ;;  %v6951_v54 = vld [vmem:[#allocation14 + $0x4bc] ss:$24 sps:$4 sm:$0xff]   ;;  %v6949_v56 = vld [vmem:[#allocation14 + $0x4b8] ss:$24 sps:$4 sm:$0xff]  }
 0xd0c   : > { %v3012_v61 = vadd.f32 %v3011_v58, %v2652_v55  ;;  %v3052_v57 = vpop.f32.mrb[29].mxu1  ;;  %v3013_v62 = vpop.f32.mrb[14].mxu0  ;;  %v6946_v55 = vld [vmem:[#allocation14 + $0x4b0] ss:$24 sps:$4 sm:$0xff]  }
 0xd0d   : > { %v3051_v63 = vadd.f32 %v3050_v60, %v3010_v59  ;;  %v3054_v1 = vpop.f32.mrb[30].mxu1  ;;  %v3014_v3 = vpop.f32.mrb[15].mxu0  ;;  %v6954_v59 = vld [vmem:[#allocation14 + $0x4e4] ss:$24 sps:$4 sm:$0xff]   ;;  %3748 = vmatpush1.bf16.msra.mxu0 %v6946_v55  ;;  %v6952_v60 = vld [vmem:[#allocation14 + $0x4e0] ss:$24 sps:$4 sm:$0xff]  }
 0xd0e   : > { %v3053_v4 = vadd.f32 %v3052_v57, %v3012_v61  ;;  %v3055_v5 = vpop.f32.mrb[31].mxu1  ;;  %3749 = vmatprep.subr.bf16.mxu0 %v6954_v59  ;;  %v6988_v55 = vld [vmem:[#allocation14 + $0x310] ss:$24 sps:$4 sm:$0xff]   ;;  %v6993_v59 = vld [vmem:[#allocation14 + $0x344] ss:$24 sps:$4 sm:$0xff]  }
 0xd0f   : > { %v8651_v7 = vadd.f32 %v3051_v63, %v8632_v30  ;;  %v6901_v30 = vld [vmem:[#allocation14 + $0x338] ss:$24 sps:$4 sm:$0xff]   ;;  %v6955_v5 = vld [vmem:[#allocation14 + $0x4e8] ss:$24 sps:$4 sm:$0xff]  }
 0xd10   : > { %v8654_v8 = vadd.f32 %v3053_v4, %v8630_v29  ;;  %v6909_v29 = vld [vmem:[#allocation14 + $0x36c] ss:$24 sps:$4 sm:$0xff]   ;;  %3773 = vmatpush1.bf16.msra.mxu1 %v6901_v30  ;;  %v6975_v30 = vld [vmem:[#allocation14 + $0x57c] ss:$24 sps:$4 sm:$0xff]  }
 0xd11   : > { %3774 = vmatprep.subr.bf16.mxu1 %v6909_v29  ;;  %3750 = vmatpush1.bf16.msra.mxu0 %v6952_v60  ;;  %v6957_v4 = vld [vmem:[#allocation14 + $0x4ec] ss:$24 sps:$4 sm:$0xff]   ;;  %v6976_v29 = vld [vmem:[#allocation14 + $0x5a0] ss:$24 sps:$4 sm:$0xff]  }
 0xd12   : > { %v3060_v9 = vadd.f32 %v8654_v8, %v8651_v7  ;;  %v6991_v60 = vld [vmem:[#allocation14 + $0x340] ss:$24 sps:$4 sm:$0xff]  }
 0xd14   : > { %3061 = vadd.xlane.f32.xlu0 %v3060_v9  ;;  %3775 = vmatpush1.bf16.msra.mxu1 %v6907_v20  ;;  %v6960_v9 = vld [vmem:[#allocation14 + $0x514] ss:$24 sps:$4 sm:$0xff]   ;;  %v6979_v20 = vld [vmem:[#allocation14 + $0x5a8] ss:$24 sps:$4 sm:$0xff]  }
 0xd15   : > { %3776 = vmatprep.subr.bf16.mxu1 %v6915_v22  ;;  %3751 = vmatprep.subr.bf16.mxu0 %v6960_v9  ;;  %v6984_v22 = vld [vmem:[#allocation14 + $0x5d4] ss:$24 sps:$4 sm:$0xff]   ;;  %v7006_v9 = vld [vmem:[#allocation14 + $0x430] ss:$24 sps:$4 sm:$0xff]  }
 0xd16   : > { %3752 = vmatpush1.bf16.msra.mxu0 %v6958_v10  ;;  %v7011_v10 = vld [vmem:[#allocation14 + $0x464] ss:$24 sps:$4 sm:$0xff]  }
 0xd18   : > { %3777 = vmatpush1.bf16.msra.mxu1 %v6913_v24  ;;  %v6982_v24 = vld [vmem:[#allocation14 + $0x5d0] ss:$24 sps:$4 sm:$0xff]  }
 0xd19   : > { %3778 = vmatprep.subr.bf16.mxu1 %v6921_v26  ;;  %v6990_v26 = vld [vmem:[#allocation14 + $0x314] ss:$24 sps:$4 sm:$0xff]  }
 0xd1c   : > { %3779 = vmatpush1.bf16.msra.mxu1 %v6919_v32 }
 0xd1d   : > { %3780 = vmatprep.subr.bf16.mxu1 %v6927_v34  ;;  %v3059_v34 = vld [vmem:[%s8963_s30] sm:$0xf] }
 0xd1e   : > { %v3084_v35 = vrot.slane %v3059_v34, %v8519_v41  ;;  %v3104_v37 = vrot.slane %v3059_v34, %v8525_v44 }
 0xd20   : > { %3781 = vmatpush1.bf16.msra.mxu1 %v6925_v36  ;;  %v3080_v36 = vrot.slane %v3059_v34, %v8516_v40  ;;  %v3094_v42 = vrot.slane %v3084_v35, %v8516_v40 }
 0xd21   : > { %3782 = vmatprep.subr.bf16.mxu1 %v6933_v39  ;;  %v3100_v39 = vrot.slane %v3059_v34, %v8522_v43 }
 0xd23   : > { %v3110_v48 = vrot.slane %v3100_v39, %v8522_v43 }
 0xd24   : > { %3783 = vmatpush1.bf16.msra.mxu1 %v6931_v45  ;;  %v3090_v45 = vrot.slane %v3080_v36, %v8516_v40 }
 0xd25   : > { %3784 = vmatprep.subr.bf16.mxu1 %v6939_v46 }
 0xd28   : > { %3785 = vmatpush1.bf16.msra.mxu1 %v6937_v49  ;;  %v3114_v49 = vrot.slane %v3104_v37, %v8522_v43 }
 0xd29   : > { %3786 = vmatprep.subr.bf16.mxu1 %v6945_v50 }
 0xd2c   : > { %3787 = vmatpush1.bf16.msra.mxu1 %v6943_v52 }
 0xd2d   : > { %3788 = vmatprep.subr.bf16.mxu1 %v6951_v54 }
 0xd30   : > { %3789 = vmatpush1.bf16.msra.mxu1 %v6949_v56 }
 0xd31   : > { %3790 = vmatprep.subr.bf16.mxu1 %v6957_v4  ;;  %v7003_v4 = vld [vmem:[#allocation14 + $0x400] ss:$24 sps:$4 sm:$0xff]  }
 0xd34   : > { %3791 = vmatpush1.bf16.msra.mxu1 %v6955_v5  ;;  %v7008_v5 = vld [vmem:[#allocation14 + $0x434] ss:$24 sps:$4 sm:$0xff]  }
 0xd35   : > { %3792 = vmatprep.subr.bf16.mxu1 %v6963_v11  ;;  %v7009_v11 = vld [vmem:[#allocation14 + $0x460] ss:$24 sps:$4 sm:$0xff]  }
 0xda1   : > { %v3062_v58 = vpop.xlane.xlu0 %3061 }
 0xda2   : > { %v3063_v61 = vmul.f32 0.00390625, %v3062_v58  ;;  %v6996_v58 = vld [vmem:[#allocation14 + $0x374] ss:$24 sps:$4 sm:$0xff]  }
 0xda4   : > { %v8659_v57 = vsub.f32 %v8651_v7, %v3063_v61  ;;  %v8662_v62 = vsub.f32 %v8654_v8, %v3063_v61  ;;  %v6961_v7 = vld [vmem:[#allocation14 + $0x518] ss:$24 sps:$4 sm:$0xff]   ;;  %v6966_v8 = vld [vmem:[#allocation14 + $0x544] ss:$24 sps:$4 sm:$0xff]  }
 0xda5   : > { %3793 = vmatpush1.bf16.msra.mxu1 %v6961_v7  ;;  %3753 = vmatprep.subr.bf16.mxu0 %v6966_v8  ;;  %v6994_v61 = vld [vmem:[#allocation14 + $0x370] ss:$24 sps:$4 sm:$0xff]   ;;  %v7014_v7 = vld [vmem:[#allocation14 + $0x494] ss:$24 sps:$4 sm:$0xff]  }
 0xda6   : > { %v3066_v63 = vmul.f32 %v8659_v57, %v8659_v57  ;;  %v3067_v1 = vmul.f32 %v8662_v62, %v8662_v62  ;;  %3754 = vmatpush1.bf16.msra.mxu0 %v6964_v12  ;;  %3794 = vmatprep.subr.bf16.mxu1 %v6969_v13  ;;  %v7012_v8 = vld [vmem:[#allocation14 + $0x490] ss:$24 sps:$4 sm:$0xff]   ;;  %v7017_v12 = vld [vmem:[#allocation14 + $0x4c4] ss:$24 sps:$4 sm:$0xff]   ;;  %v7015_v13 = vld [vmem:[#allocation14 + $0x4c0] ss:$24 sps:$4 sm:$0xff]  }
 0xda7   : > { %3755 = vmatprep.subr.bf16.mxu0 %v6972_v16  ;;  %v7018_v16 = vld [vmem:[#allocation14 + $0x4f0] ss:$24 sps:$4 sm:$0xff]  }
 0xda8   : > { %v3068_v3 = vadd.f32 %v3067_v1, %v3066_v63  ;;  %v7002_v63 = vld [vmem:[#allocation14 + $0x3d4] ss:$24 sps:$4 sm:$0xff]   ;;  %v7000_v1 = vld [vmem:[#allocation14 + $0x3d0] ss:$24 sps:$4 sm:$0xff]  }
 0xda9   : > { %3795 = vmatpush1.bf16.msra.mxu1 %v6967_v14  ;;  %v7020_v14 = vld [vmem:[#allocation14 + $0x4f4] ss:$24 sps:$4 sm:$0xff]  }
 0xdaa   : > { %3069 = vadd.xlane.f32.xlu1 %v3068_v3  ;;  %3756 = vmatpush1.bf16.msra.mxu0 %v6970_v17  ;;  %v7005_v3 = vld [vmem:[#allocation14 + $0x404] ss:$24 sps:$4 sm:$0xff]  }
 0xdab   : > { %3796 = vmatprep.subr.bf16.mxu1 %v6975_v30  ;;  %3757 = vmatprep.subr.bf16.mxu0 %v6978_v19  ;;  %v7023_v17 = vld [vmem:[#allocation14 + $0x524] ss:$24 sps:$4 sm:$0xff]   ;;  %v7021_v30 = vld [vmem:[#allocation14 + $0x520] ss:$24 sps:$4 sm:$0xff]  }
 0xdac   : > { %v7029_v19 = vld [vmem:[#allocation14 + $0x584] ss:$24 sps:$4 sm:$0xff]  }
 0xdad   : > { %3797 = vmatpush1.bf16.msra.mxu1 %v6973_v18  ;;  %v7026_v18 = vld [vmem:[#allocation14 + $0x554] ss:$24 sps:$4 sm:$0xff]  }
 0xdae   : > { %3798 = vmatprep.subr.bf16.mxu1 %v6981_v21  ;;  %3758 = vmatpush1.bf16.msra.mxu0 %v6976_v29  ;;  %v7024_v29 = vld [vmem:[#allocation14 + $0x550] ss:$24 sps:$4 sm:$0xff]   ;;  %v7032_v21 = vld [vmem:[#allocation14 + $0x5b4] ss:$24 sps:$4 sm:$0xff]  }
 0xdaf   : > { %3759 = vmatprep.subr.bf16.mxu0 %v6984_v22  ;;  %v7030_v22 = vld [vmem:[#allocation14 + $0x5b0] ss:$24 sps:$4 sm:$0xff]  }
 0xdb1   : > { %3799 = vmatpush1.bf16.msra.mxu1 %v6979_v20  ;;  %v7027_v20 = vld [vmem:[#allocation14 + $0x580] ss:$24 sps:$4 sm:$0xff]  }
 0xdb2   : > { %3800 = vmatprep.subr.bf16.mxu1 %v6987_v23  ;;  %3760 = vmatpush1.bf16.msra.mxu0 %v6982_v24  ;;  %v7035_v23 = vld [vmem:[#allocation14 + $0x5e4] ss:$24 sps:$4 sm:$0xff]   ;;  %v7033_v24 = vld [vmem:[#allocation14 + $0x5e0] ss:$24 sps:$4 sm:$0xff]  }
 0xdb3   : > { %3811 = vmatprep.subr.bf16.mxu0 %v6990_v26 }
 0xdb5   : > { %3801 = vmatpush1.bf16.msra.mxu1 %v6985_v25  ;;  %v6032_v25 = vld [vmem:[%s8862_s8 + $0x6] sm:$0x3f] }
 0xdb6   : > { %6349 = vmatprep.subr.bf16.mxu1 %v7867_v31  ;;  %v3230_v26 = vrot.slane %v6032_v25, %v8519_v41  ;;  %v3222_v36 = vrot.slane %v6032_v25, %v8516_v40 }
 0xe37   : > { %v3070_v27 = vpop.xlane.xlu1 %3069 }
 0xe38   : > { %v3071_v32 = vmul.f32 0.00390625, %v3070_v27 }
 0xe3a   : > { %v3072_v33 = vadd.f32 1e-12, %v3071_v32 }
 0xe3c   : > { %7296 = vrsqrt.f32 %v3072_v33 }
 0xe46   : > { %v7297_v0 = vpop.eup %7296 }
 0xe47   : > { %v3074_v46 = vmul.f32 %v7297_v0, %v8659_v57  ;;  %v3075_v47 = vmul.f32 %v7297_v0, %v8662_v62  ;;  %v6999_v57 = vld [vmem:[#allocation14 + $0x3a4] ss:$24 sps:$4 sm:$0xff]   ;;  %v6997_v62 = vld [vmem:[#allocation14 + $0x3a0] ss:$24 sps:$4 sm:$0xff]  }
 0xe49   : > { %v3096_v50 = vmul.f32 %v3094_v42, %v3075_v47  ;;  %v3095_v28 = vmul.f32 %v3090_v45, %v3074_v46 }
 0xe4b   : > { %v8682_v52 = vadd.f32 %v3114_v49, %v3096_v50  ;;  %v8684_v53 = vadd.f32 %v3110_v48, %v3095_v28  ;;  %v3238_v49 = vrot.slane %v6032_v25, %v919_v51 }
 0xe4d   : > { %v3118_v54 = vpack.c.bf16 %v8682_v52, %v8682_v52  ;;  %v8690_v56 = vpack.c.bf16 %v8684_v53, %v8684_v53 }
 0xe4f   : > { %3761 = vmatprep.mubr.bf16.mxu0 %v3118_v54  ;;  %3802 = vmatprep.mubr.bf16.mxu1 %v3118_v54 }
 0xe50   : > { %3762 = vmatmul.mubr.bf16.vlgmr.msra.gmra.mrb[16].mxu0 %v8690_v56  ;;  %3803 = vmatmul.mubr.bf16.vlgmr.msra.gmra.mrb[32].mxu1 %v8690_v56 }
 0xe51   : > { %3812 = vmatpush1.bf16.msra.mxu0 %v6988_v55  ;;  %3843 = vmatprep.mubr.bf16.mxu0 %v3118_v54 }
 0xe52   : > { %3813 = vmatprep.subr.bf16.mxu0 %v6993_v59  ;;  %6351 = vmatprep.mubr.msk.bf16.mxu1 %vm7868_vm2, %v7867_v31 }
 0xe55   : > { %3814 = vmatpush1.bf16.msra.mxu0 %v6991_v60 }
 0xe56   : > { %3815 = vmatprep.subr.bf16.mxu0 %v6996_v58 }
 0xe59   : > { %3816 = vmatpush1.bf16.msra.mxu0 %v6994_v61 }
 0xe5a   : > { %3817 = vmatprep.subr.bf16.mxu0 %v6999_v57 }
 0xe5d   : > { %3818 = vmatpush1.bf16.msra.mxu0 %v6997_v62 }
 0xe5e   : > { %3819 = vmatprep.subr.bf16.mxu0 %v7002_v63 }
 0xe61   : > { %3820 = vmatpush1.bf16.msra.mxu0 %v7000_v1 }
 0xe62   : > { %3821 = vmatprep.subr.bf16.mxu0 %v7005_v3 }
 0xe65   : > { %3822 = vmatpush1.bf16.msra.mxu0 %v7003_v4 }
 0xe66   : > { %3823 = vmatprep.subr.bf16.mxu0 %v7008_v5 }
 0xe69   : > { %3824 = vmatpush1.bf16.msra.mxu0 %v7006_v9 }
 0xe6a   : > { %3825 = vmatprep.subr.bf16.mxu0 %v7011_v10 }
 0xe6d   : > { %3826 = vmatpush1.bf16.msra.mxu0 %v7009_v11  ;;  %v3234_v11 = vrot.slane %v6032_v25, %v8525_v44 }
 0xe6e   : > { %3827 = vmatprep.subr.bf16.mxu0 %v7014_v7 }
 0xe71   : > { %3828 = vmatpush1.bf16.msra.mxu0 %v7012_v8 }
 0xe72   : > { %3829 = vmatprep.subr.bf16.mxu0 %v7017_v12  ;;  %v3242_v12 = vrot.slane %v6032_v25, %v923_v15 }
 0xe75   : > { %3830 = vmatpush1.bf16.msra.mxu0 %v7015_v13 }
 0xe76   : > { %3831 = vmatprep.subr.bf16.mxu0 %v7020_v14  ;;  %v3226_v14 = vrot.slane %v6032_v25, %v8522_v43 }
 0xe79   : > { %3832 = vmatpush1.bf16.msra.mxu0 %v7018_v16 }
 0xe7a   : > { %3833 = vmatprep.subr.bf16.mxu0 %v7023_v17 }
 0xe7d   : > { %3834 = vmatpush1.bf16.msra.mxu0 %v7021_v30 }
 0xe7e   : > { %3835 = vmatprep.subr.bf16.mxu0 %v7026_v18 }
 0xe81   : > { %3836 = vmatpush1.bf16.msra.mxu0 %v7024_v29 }
 0xe82   : > { %3837 = vmatprep.subr.bf16.mxu0 %v7029_v19 }
 0xe85   : > { %3838 = vmatpush1.bf16.msra.mxu0 %v7027_v20 }
 0xe86   : > { %3839 = vmatprep.subr.bf16.mxu0 %v7032_v21 }
 0xe89   : > { %3840 = vmatpush1.bf16.msra.mxu0 %v7030_v22 }
 0xe8a   : > { %3841 = vmatprep.subr.bf16.mxu0 %v7035_v23 }
 0xe8d   : > { %3842 = vmatpush1.bf16.msra.mxu0 %v7033_v24 }
 0xe90   : > { %3844 = vmatmul.mubr.bf16.vlgmr.msra.gmra.mrb[20].mxu0 %v8690_v56 }
 0xf23   : > { %v3763_v27 = vpop.f32.mrb[16].mxu0  ;;  %v3804_v32 = vpop.f32.mrb[32].mxu1 }
 0xf24   : > { %v3805_v33 = vadd.f32 %v3804_v32, %v3230_v26  ;;  %v3765_v34 = vpop.f32.mrb[17].mxu0  ;;  %v3806_v35 = vpop.f32.mrb[33].mxu1  ;;  %v3764_v46 = vadd.f32 %v3763_v27, %v3222_v36 }
 0xf25   : > { %v3767_v37 = vpop.f32.mrb[18].mxu0  ;;  %v3808_v39 = vpop.f32.mrb[34].mxu1  ;;  %v3807_v8 = vadd.f32 %v3806_v35, %v3234_v11  ;;  %v3766_v18 = vadd.f32 %v3765_v34, %v3226_v14  ;;  %v7075_v11 = vld [vmem:[#allocation15 + $0x1d0] ss:$8 sps:$4 sm:$0xff]  }
 0xf26   : > { %v3853_v42 = vpack.c.bf16 %v3805_v33, %v3805_v33  ;;  %v3768_v45 = vpop.f32.mrb[19].mxu0  ;;  %v3809_v0 = vpop.f32.mrb[35].mxu1  ;;  %v3852_v47 = vpack.c.bf16 %v3764_v46, %v3764_v46  ;;  %v7044_v46 = vld [vmem:[#allocation15 + $0x124] ss:$8 sps:$4 sm:$0xff]  }
 0xf27   : > { %v3956_v17 = vpack.c.bf16 %v3807_v8, %v3807_v8  ;;  %v3955_v19 = vpack.c.bf16 %v3766_v18, %v3766_v18  ;;  %v7038_v45 = vld [vmem:[#allocation15 + $0x104] ss:$8 sps:$4 sm:$0xff]   ;;  %v7041_v0 = vld [vmem:[#allocation15 + $0x114] ss:$8 sps:$4 sm:$0xff]   ;;  %v7078_v8 = vld [vmem:[#allocation15 + $0x1e0] ss:$8 sps:$4 sm:$0xff]  }
 0xf28   : > { %6350 = vmatpush3.bf16.xpose.msra.mxu1 %v3853_v42  ;;  %v7036_v42 = vld [vmem:[#allocation15 + $0x100] ss:$8 sps:$4 sm:$0xff]   ;;  %4266 = vmatprep.subr.bf16.mxu0 %v7038_v45 }
 0xf29   : > { %6355 = vmatprep.subr.bf16.mxu1 %v7867_v31  ;;  %4267 = vmatpush1.bf16.msra.mxu0 %v7036_v42  ;;  %v7087_v42 = vld [vmem:[#allocation18 + $0x208] ss:$16 sps:$4 sm:$0xff]   ;;  %v7089_v45 = vld [vmem:[#allocation18 + $0x20c] ss:$16 sps:$4 sm:$0xff]  }
 0xf2a   : > { %4268 = vmatprep.subr.bf16.mxu0 %v7041_v0  ;;  %v7092_v0 = vld [vmem:[#allocation18 + $0x224] ss:$16 sps:$4 sm:$0xff]  }
 0xf2f   : > { %6352 = vmatmul.mubr.bf16.vlgmr.msra.gmra.mrb[36].mxu1 %v3852_v47  ;;  %v7042_v47 = vld [vmem:[#allocation15 + $0x120] ss:$8 sps:$4 sm:$0xff]  }
 0xf30   : > { %6357 = vmatprep.mubr.msk.bf16.mxu1 %vm7868_vm2, %v7867_v31 }
 0xf63   : > { %v3845_v48 = vpop.f32.mrb[20].mxu0 }
 0xf64   : > { %v3846_v50 = vadd.f32 %v3845_v48, %v3238_v49  ;;  %v3847_v28 = vpop.f32.mrb[21].mxu0  ;;  %v7047_v49 = vld [vmem:[#allocation15 + $0x134] ss:$8 sps:$4 sm:$0xff]   ;;  %v7045_v48 = vld [vmem:[#allocation15 + $0x130] ss:$8 sps:$4 sm:$0xff]  }
 0xf65   : > { %v3849_v54 = vpop.f32.mrb[22].mxu0  ;;  %v3848_v30 = vadd.f32 %v3847_v28, %v3242_v12  ;;  %v7048_v28 = vld [vmem:[#allocation15 + $0x140] ss:$8 sps:$4 sm:$0xff]  }
 0xf66   : > { %v3854_v55 = vpack.c.bf16 %v3846_v50, %v3846_v50  ;;  %v3850_v56 = vpop.f32.mrb[23].mxu0  ;;  %v7050_v50 = vld [vmem:[#allocation15 + $0x144] ss:$8 sps:$4 sm:$0xff]   ;;  %v7053_v54 = vld [vmem:[#allocation15 + $0x154] ss:$8 sps:$4 sm:$0xff]  }
 0xf67   : > { %v3957_v29 = vpack.c.bf16 %v3848_v30, %v3848_v30  ;;  %v7056_v56 = vld [vmem:[#allocation15 + $0x164] ss:$8 sps:$4 sm:$0xff]   ;;  %v7083_v30 = vld [vmem:[#allocation15 + $0x1f4] ss:$8 sps:$4 sm:$0xff]  }
 0xf68   : > { %v3913_v59 = vsel %vm1595_vm3, %v3854_v55, 0  ;;  %v7051_v55 = vld [vmem:[#allocation15 + $0x150] ss:$8 sps:$4 sm:$0xff]  }
 0xf69   : > { %6356 = vmatpush3.bf16.msra.mxu1 %v3913_v59  ;;  %v4016_v20 = vsel %vm1595_vm3, %v3957_v29, 0  ;;  %v7054_v59 = vld [vmem:[#allocation15 + $0x160] ss:$8 sps:$4 sm:$0xff]  }
 0xf6a   : > { %6361 = vmatprep.subr.bf16.mxu1 %v7867_v31 }
0x1002   : > { %v3889_v60 = vpop.f32.mrb[36].mxu1 }
0x1003   : > { %v3895_v58 = vmul.f32 0.088388346, %v3889_v60  ;;  %v6353_v61 = vpop.f32.mrb[37].mxu1  ;;  %v7059_v60 = vld [vmem:[#allocation15 + $0x174] ss:$8 sps:$4 sm:$0xff]  }
0x1004   : > { %v3892_v57 = vpop.f32.mrb[38].mxu1  ;;  %v7062_v61 = vld [vmem:[#allocation15 + $0x184] ss:$8 sps:$4 sm:$0xff]  }
0x1005   : > { %v3896_v62 = vadd.f32 %v3895_v58, %v8460_v6  ;;  %v6354_v63 = vpop.f32.mrb[39].mxu1  ;;  %v7057_v58 = vld [vmem:[#allocation15 + $0x170] ss:$8 sps:$4 sm:$0xff]   ;;  %v7060_v57 = vld [vmem:[#allocation15 + $0x180] ss:$8 sps:$4 sm:$0xff]  }
0x1006   : > { %v7063_v63 = vld [vmem:[#allocation15 + $0x190] ss:$8 sps:$4 sm:$0xff]  }
0x1007   : > { %v3897_v51 = vsel %vm1579_vm4, %v3896_v62, -inf }
0x1008   : > { %3898 = vmax.xlane.f32.xlu0 %v3897_v51  ;;  %v7068_v51 = vld [vmem:[#allocation15 + $0x1a4] ss:$8 sps:$4 sm:$0xff]  }
0x1095   : > { %v3899_v1 = vpop.xlane.xlu0 %3898 }
0x1096   : > { %v3900_v3 = vsub.f32 %v3896_v62, %v3899_v1  ;;  %v7065_v62 = vld [vmem:[#allocation15 + $0x194] ss:$8 sps:$4 sm:$0xff]   ;;  %v7066_v1 = vld [vmem:[#allocation15 + $0x1a0] ss:$8 sps:$4 sm:$0xff]  }
0x1098   : > { %v3901_v4 = vmul.f32 1.442695, %v3900_v3  ;;  %v7071_v3 = vld [vmem:[#allocation15 + $0x1b4] ss:$8 sps:$4 sm:$0xff]  }
0x109a   : > { %7298 = vpow2.f32 %v3901_v4  ;;  %v7069_v4 = vld [vmem:[#allocation15 + $0x1b0] ss:$8 sps:$4 sm:$0xff]  }
0x10a4   : > { %v7299_v5 = vpop.eup %7298 }
0x10a5   : > { %v3903_v9 = vsel %vm1579_vm4, %v7299_v5, 0.0 }
0x10a6   : > { %3904 = vadd.xlane.f32.xlu1 %v3903_v9  ;;  %v7072_v9 = vld [vmem:[#allocation15 + $0x1c0] ss:$8 sps:$4 sm:$0xff]  }
0x1133   : > { %v3905_v10 = vpop.xlane.xlu1 %3904 }
0x1134   : > { %7300 = vrcp.f32 %v3905_v10  ;;  %v7077_v10 = vld [vmem:[#allocation15 + $0x1d4] ss:$8 sps:$4 sm:$0xff]  }
0x113e   : > { %v7301_v7 = vpop.eup %7300 }
0x113f   : > { %v3907_v13 = vmul.f32 %v7301_v7, %v7299_v5  ;;  %v7074_v5 = vld [vmem:[#allocation15 + $0x1c4] ss:$8 sps:$4 sm:$0xff]  }
0x1140   : > { %v7080_v7 = vld [vmem:[#allocation15 + $0x1e4] ss:$8 sps:$4 sm:$0xff]  }
0x1141   : > { %v3908_v16 = vpack.c.bf16 %v3907_v13, %v3907_v13 }
0x1143   : > { %6358 = vmatmul.mubr.msk.bf16.vlgmr.msra.gmra.mrb[40].mxu1 %vm1579_vm4, %v3908_v16 }
0x1144   : > { %6362 = vmatpush3.bf16.xpose.msra.mxu1 %v3956_v17  ;;  %6363 = vmatprep.mubr.msk.bf16.mxu1 %vm7868_vm2, %v7867_v31  ;;  %v7081_v17 = vld [vmem:[#allocation15 + $0x1f0] ss:$8 sps:$4 sm:$0xff]  }
0x1145   : > { %6367 = vmatprep.subr.bf16.mxu1 %v7867_v31 }
0x114b   : > { %6364 = vmatmul.mubr.bf16.vlgmr.msra.gmra.mrb[44].mxu1 %v3955_v19 }
0x114c   : > { %6368 = vmatpush3.bf16.msra.mxu1 %v4016_v20  ;;  %6369 = vmatprep.mubr.msk.bf16.mxu1 %vm7868_vm2, %v7867_v31 }
0x1216   : > { %v8723_v15 = vpop.f32.mrb[40].mxu1 }
0x1217   : > { %v6359_v21 = vpop.f32.mrb[41].mxu1  ;;  %v4058_v20 = vpack.c.bf16 %v8723_v15, %v8723_v15 }
0x1218   : > { %v3952_v22 = vpop.f32.mrb[42].mxu1 }
0x1219   : > { %v6360_v23 = vpop.f32.mrb[43].mxu1 }
0x121a   : > { %v4094_v23 = vld [vmem:[#allocation17 + $0x2] sm:$0x3] }
0x121e   : > { %v3992_v24 = vpop.f32.mrb[44].mxu1 }
0x121f   : > { %v3998_v25 = vmul.f32 0.088388346, %v3992_v24  ;;  %v6365_v26 = vpop.f32.mrb[45].mxu1  ;;  %v4099_v24 = vrot.slane %v4094_v23, %v8516_v40 }
0x1220   : > { %v3995_v27 = vpop.f32.mrb[46].mxu1 }
0x1221   : > { %v3999_v32 = vadd.f32 %v3998_v25, %v8460_v6  ;;  %v6366_v33 = vpop.f32.mrb[47].mxu1  ;;  %v7039_v6 = vld [vmem:[#allocation15 + $0x110] ss:$8 sps:$4 sm:$0xff]   ;;  %v4103_v25 = vrot.slane %v4094_v23, %v8522_v43 }
0x1222   : > { %4269 = vmatpush1.bf16.msra.mxu0 %v7039_v6  ;;  %v7095_v6 = vld [vmem:[#allocation18 + $0x22c] ss:$16 sps:$4 sm:$0xff]  }
0x1223   : > { %v4000_v34 = vsel %vm1579_vm4, %v3999_v32, -inf  ;;  %4270 = vmatprep.subr.bf16.mxu0 %v7044_v46  ;;  %v7090_v46 = vld [vmem:[#allocation18 + $0x220] ss:$16 sps:$4 sm:$0xff]  }
0x1224   : > { %4001 = vmax.xlane.f32.xlu0 %v4000_v34 }
0x1226   : > { %4271 = vmatpush1.bf16.msra.mxu0 %v7042_v47  ;;  %v7098_v47 = vld [vmem:[#allocation18 + $0x244] ss:$16 sps:$4 sm:$0xff]  }
0x1227   : > { %4272 = vmatprep.subr.bf16.mxu0 %v7047_v49  ;;  %v7096_v49 = vld [vmem:[#allocation18 + $0x240] ss:$16 sps:$4 sm:$0xff]  }
0x122a   : > { %4273 = vmatpush1.bf16.msra.mxu0 %v7045_v48  ;;  %v7099_v48 = vld [vmem:[#allocation18 + $0x248] ss:$16 sps:$4 sm:$0xff]  }
0x122b   : > { %4274 = vmatprep.subr.bf16.mxu0 %v7050_v50  ;;  %v7104_v50 = vld [vmem:[#allocation18 + $0x264] ss:$16 sps:$4 sm:$0xff]  }
0x122e   : > { %4275 = vmatpush1.bf16.msra.mxu0 %v7048_v28  ;;  %v7107_v28 = vld [vmem:[#allocation18 + $0x26c] ss:$16 sps:$4 sm:$0xff]  }
0x122f   : > { %4276 = vmatprep.subr.bf16.mxu0 %v7053_v54  ;;  %v7102_v54 = vld [vmem:[#allocation18 + $0x260] ss:$16 sps:$4 sm:$0xff]  }
0x1232   : > { %4277 = vmatpush1.bf16.msra.mxu0 %v7051_v55  ;;  %v7105_v55 = vld [vmem:[#allocation18 + $0x268] ss:$16 sps:$4 sm:$0xff]  }
0x1233   : > { %4278 = vmatprep.subr.bf16.mxu0 %v7056_v56  ;;  %v7110_v56 = vld [vmem:[#allocation18 + $0x284] ss:$16 sps:$4 sm:$0xff]  }
0x1236   : > { %4279 = vmatpush1.bf16.msra.mxu0 %v7054_v59  ;;  %v7113_v59 = vld [vmem:[#allocation18 + $0x28c] ss:$16 sps:$4 sm:$0xff]  }
0x1237   : > { %4280 = vmatprep.subr.bf16.mxu0 %v7059_v60  ;;  %v7108_v60 = vld [vmem:[#allocation18 + $0x280] ss:$16 sps:$4 sm:$0xff]  }
0x123a   : > { %4281 = vmatpush1.bf16.msra.mxu0 %v7057_v58  ;;  %v7111_v58 = vld [vmem:[#allocation18 + $0x288] ss:$16 sps:$4 sm:$0xff]  }
0x123b   : > { %4282 = vmatprep.subr.bf16.mxu0 %v7062_v61  ;;  %v7116_v61 = vld [vmem:[#allocation18 + $0x2a4] ss:$16 sps:$4 sm:$0xff]  }
0x123e   : > { %4283 = vmatpush1.bf16.msra.mxu0 %v7060_v57  ;;  %v7119_v57 = vld [vmem:[#allocation18 + $0x2ac] ss:$16 sps:$4 sm:$0xff]  }
0x123f   : > { %4284 = vmatprep.subr.bf16.mxu0 %v7065_v62  ;;  %v7114_v62 = vld [vmem:[#allocation18 + $0x2a0] ss:$16 sps:$4 sm:$0xff]  }
0x1242   : > { %4285 = vmatpush1.bf16.msra.mxu0 %v7063_v63  ;;  %v7117_v63 = vld [vmem:[#allocation18 + $0x2a8] ss:$16 sps:$4 sm:$0xff]  }
0x1243   : > { %4286 = vmatprep.subr.bf16.mxu0 %v7068_v51  ;;  %v7122_v51 = vld [vmem:[#allocation18 + $0x2c4] ss:$16 sps:$4 sm:$0xff]  }
0x1246   : > { %4287 = vmatpush1.bf16.msra.mxu0 %v7066_v1  ;;  %v7125_v1 = vld [vmem:[#allocation18 + $0x2cc] ss:$16 sps:$4 sm:$0xff]  }
0x1247   : > { %4288 = vmatprep.subr.bf16.mxu0 %v7071_v3  ;;  %v7120_v3 = vld [vmem:[#allocation18 + $0x2c0] ss:$16 sps:$4 sm:$0xff]  }
0x124a   : > { %4289 = vmatpush1.bf16.msra.mxu0 %v7069_v4  ;;  %v7123_v4 = vld [vmem:[#allocation18 + $0x2c8] ss:$16 sps:$4 sm:$0xff]  }
0x124b   : > { %4290 = vmatprep.subr.bf16.mxu0 %v7074_v5  ;;  %v7128_v5 = vld [vmem:[#allocation18 + $0x2e4] ss:$16 sps:$4 sm:$0xff]  }
0x124e   : > { %4291 = vmatpush1.bf16.msra.mxu0 %v7072_v9  ;;  %v7131_v9 = vld [vmem:[#allocation18 + $0x2ec] ss:$16 sps:$4 sm:$0xff]  }
0x124f   : > { %4292 = vmatprep.subr.bf16.mxu0 %v7077_v10  ;;  %v7126_v10 = vld [vmem:[#allocation18 + $0x2e0] ss:$16 sps:$4 sm:$0xff]  }
0x1252   : > { %4293 = vmatpush1.bf16.msra.mxu0 %v7075_v11  ;;  %v7129_v11 = vld [vmem:[#allocation18 + $0x2e8] ss:$16 sps:$4 sm:$0xff]  }
0x1253   : > { %4294 = vmatprep.subr.bf16.mxu0 %v7080_v7  ;;  %v7134_v7 = vld [vmem:[#allocation18 + $0x304] ss:$16 sps:$4 sm:$0xff]  }
0x1256   : > { %4295 = vmatpush1.bf16.msra.mxu0 %v7078_v8  ;;  %v7137_v8 = vld [vmem:[#allocation18 + $0x30c] ss:$16 sps:$4 sm:$0xff]  }
0x1257   : > { %4296 = vmatprep.subr.bf16.mxu0 %v7083_v30  ;;  %v7141_v30 = vld [vmem:[#allocation18 + $0x328] ss:$16 sps:$4 sm:$0xff]  }
0x125a   : > { %4297 = vmatpush1.bf16.msra.mxu0 %v7081_v17  ;;  %v7138_v17 = vld [vmem:[#allocation18 + $0x320] ss:$16 sps:$4 sm:$0xff]  }
0x125b   : > { %4819 = vmatprep.subr.bf16.mxu0 %v7089_v45  ;;  %v7162_v45 = vld [vmem:[#allocation18 + $0x3a0] ss:$16 sps:$4 sm:$0xff]  }
0x12b1   : > { %v4002_v35 = vpop.xlane.xlu0 %4001 }
0x12b2   : > { %v4003_v36 = vsub.f32 %v3999_v32, %v4002_v35 }
0x12b4   : > { %v4004_v37 = vmul.f32 1.442695, %v4003_v36 }
0x12b6   : > { %7302 = vpow2.f32 %v4004_v37 }
0x12c0   : > { %v8727_v31 = vpop.eup %7302 }
0x12c1   : > { %v4006_v39 = vsel %vm1579_vm4, %v8727_v31, 0.0 }
0x12c2   : > { %4007 = vadd.xlane.f32.xlu1 %v4006_v39  ;;  %v7086_v39 = vld [vmem:[#allocation18 + $0x204] ss:$16 sps:$4 sm:$0xff]  }
0x12c3   : > { %4778 = vmatprep.subr.bf16.mxu1 %v7086_v39  ;;  %v7164_v39 = vld [vmem:[#allocation18 + $0x3a4] ss:$16 sps:$4 sm:$0xff]  }
0x134f   : > { %v4008_v12 = vpop.xlane.xlu1 %4007 }
0x1350   : > { %7304 = vrcp.f32 %v4008_v12  ;;  %v7132_v12 = vld [vmem:[#allocation18 + $0x300] ss:$16 sps:$4 sm:$0xff]  }
0x135a   : > { %v7305_v13 = vpop.eup %7304 }
0x135b   : > { %v4010_v14 = vmul.f32 %v7305_v13, %v8727_v31  ;;  %v7084_v31 = vld [vmem:[#allocation18 + $0x200] ss:$16 sps:$4 sm:$0xff]   ;;  %v7135_v13 = vld [vmem:[#allocation18 + $0x308] ss:$16 sps:$4 sm:$0xff]  }
0x135d   : > { %v4011_v16 = vpack.c.bf16 %v4010_v14, %v4010_v14  ;;  %v7140_v14 = vld [vmem:[#allocation18 + $0x324] ss:$16 sps:$4 sm:$0xff]  }
0x135f   : > { %6370 = vmatmul.mubr.msk.bf16.vlgmr.msra.gmra.mrb[48].mxu1 %vm1579_vm4, %v4011_v16  ;;  %v7143_v16 = vld [vmem:[#allocation18 + $0x32c] ss:$16 sps:$4 sm:$0xff]  }
0x1360   : > { %4779 = vmatpush1.bf16.msra.mxu1 %v7084_v31  ;;  %v7159_v31 = vld [vmem:[#allocation18 + $0x388] ss:$16 sps:$4 sm:$0xff]  }
0x1361   : > { %4780 = vmatprep.subr.bf16.mxu1 %v7092_v0  ;;  %v7165_v0 = vld [vmem:[#allocation18 + $0x3a8] ss:$16 sps:$4 sm:$0xff]  }
0x1364   : > { %4781 = vmatpush1.bf16.msra.mxu1 %v7090_v46  ;;  %v7168_v46 = vld [vmem:[#allocation18 + $0x3c0] ss:$16 sps:$4 sm:$0xff]  }
0x1365   : > { %4782 = vmatprep.subr.bf16.mxu1 %v7098_v47  ;;  %v7173_v47 = vld [vmem:[#allocation18 + $0x3cc] ss:$16 sps:$4 sm:$0xff]  }
0x1368   : > { %4783 = vmatpush1.bf16.msra.mxu1 %v7096_v49  ;;  %v7179_v49 = vld [vmem:[#allocation18 + $0x3ec] ss:$16 sps:$4 sm:$0xff]  }
0x1369   : > { %4784 = vmatprep.subr.bf16.mxu1 %v7104_v50  ;;  %v7177_v50 = vld [vmem:[#allocation18 + $0x3e8] ss:$16 sps:$4 sm:$0xff]  }
0x136c   : > { %4785 = vmatpush1.bf16.msra.mxu1 %v7102_v54  ;;  %v7185_v54 = vld [vmem:[#allocation20 + $0x304] ss:$8 sps:$4 sm:$0xff]  }
0x136d   : > { %4786 = vmatprep.subr.bf16.mxu1 %v7110_v56 }
0x1370   : > { %4787 = vmatpush1.bf16.msra.mxu1 %v7108_v60  ;;  %v6163_v60 = vld [vmem:[%s8865_s11 + $0x4] sm:$0xf] }
0x1371   : > { %4788 = vmatprep.subr.bf16.mxu1 %v7116_v61  ;;  %v4331_v61 = vrot.slane %v6163_v60, %v8516_v40 }
0x1374   : > { %4789 = vmatpush1.bf16.msra.mxu1 %v7114_v62  ;;  %v4351_v62 = vrot.slane %v6163_v60, %v8522_v43 }
0x1375   : > { %4790 = vmatprep.subr.bf16.mxu1 %v7122_v51  ;;  %v4341_v51 = vrot.slane %v4331_v61, %v8516_v40  ;;  %v7248_v61 = vld [vmem:[#allocation20 + $0x2b4] ss:$8 sps:$4 sm:$0xff]  }
0x1378   : > { %4791 = vmatpush1.bf16.msra.mxu1 %v7120_v3 }
0x1379   : > { %4792 = vmatprep.subr.bf16.mxu1 %v7128_v5 }
0x137c   : > { %4793 = vmatpush1.bf16.msra.mxu1 %v7126_v10 }
0x137d   : > { %4794 = vmatprep.subr.bf16.mxu1 %v7134_v7 }
0x1380   : > { %4795 = vmatpush1.bf16.msra.mxu1 %v7132_v12 }
0x1381   : > { %4796 = vmatprep.subr.bf16.mxu1 %v7140_v14  ;;  %v7180_v14 = vld [vmem:[#allocation20 + $0x200] ss:$8 sps:$4 sm:$0xff]  }
0x1384   : > { %4797 = vmatpush1.bf16.msra.mxu1 %v7138_v17  ;;  %v7188_v17 = vld [vmem:[#allocation20 + $0x214] ss:$8 sps:$4 sm:$0xff]  }
0x1432   : > { %v4052_v18 = vpop.f32.mrb[48].mxu1 }
0x1433   : > { %v4059_v29 = vpack.c.bf16 %v4052_v18, %v4052_v18  ;;  %v6371_v19 = vpop.f32.mrb[49].mxu1 }
0x1434   : > { %v4055_v21 = vpop.f32.mrb[50].mxu1 }
0x1435   : > { %v6372_v22 = vpop.f32.mrb[51].mxu1  ;;  %4298 = vmatprep.mubr.bf16.mxu0 %v4059_v29 }
0x1436   : > { %4299 = vmatmul.mubr.bf16.vlgmr.msra.gmra.mrb[24].mxu0 %v4058_v20 }
0x1437   : > { %4820 = vmatpush1.bf16.msra.mxu0 %v7087_v42  ;;  %v7167_v42 = vld [vmem:[#allocation18 + $0x3ac] ss:$16 sps:$4 sm:$0xff]  }
0x1438   : > { %4821 = vmatprep.subr.bf16.mxu0 %v7095_v6  ;;  %v7170_v6 = vld [vmem:[#allocation18 + $0x3c4] ss:$16 sps:$4 sm:$0xff]  }
0x1509   : > { %v4300_v26 = vpop.f32.mrb[24].mxu0 }
0x150a   : > { %v4301_v27 = vadd.f32 %v4300_v26, %v4099_v24  ;;  %v4302_v32 = vpop.f32.mrb[25].mxu0  ;;  %v7146_v24 = vld [vmem:[#allocation18 + $0x344] ss:$16 sps:$4 sm:$0xff]   ;;  %v7144_v26 = vld [vmem:[#allocation18 + $0x340] ss:$16 sps:$4 sm:$0xff]  }
0x150b   : > { %v4303_v33 = vadd.f32 %v4302_v32, %v4103_v25  ;;  %v4304_v34 = vpop.f32.mrb[26].mxu0  ;;  %v7149_v25 = vld [vmem:[#allocation18 + $0x34c] ss:$16 sps:$4 sm:$0xff]   ;;  %4798 = vmatprep.subr.bf16.mxu1 %v7146_v24  ;;  %v7152_v32 = vld [vmem:[#allocation18 + $0x364] ss:$16 sps:$4 sm:$0xff]  }
0x150c   : > { %v8738_v35 = vadd.f32 %v4301_v27, %v8684_v53  ;;  %v4305_v36 = vpop.f32.mrb[27].mxu0  ;;  %v7093_v53 = vld [vmem:[#allocation18 + $0x228] ss:$16 sps:$4 sm:$0xff]   ;;  %4799 = vmatpush1.bf16.msra.mxu1 %v7144_v26  ;;  %v7150_v34 = vld [vmem:[#allocation18 + $0x360] ss:$16 sps:$4 sm:$0xff]  }
0x150d   : > { %v8741_v15 = vadd.f32 %v4303_v33, %v8682_v52  ;;  %v7101_v52 = vld [vmem:[#allocation18 + $0x24c] ss:$16 sps:$4 sm:$0xff]   ;;  %4822 = vmatpush1.bf16.msra.mxu0 %v7093_v53  ;;  %v7147_v27 = vld [vmem:[#allocation18 + $0x348] ss:$16 sps:$4 sm:$0xff]   ;;  %4800 = vmatprep.subr.bf16.mxu1 %v7152_v32  ;;  %v7158_v36 = vld [vmem:[#allocation18 + $0x384] ss:$16 sps:$4 sm:$0xff]  }
0x150e   : > { %4823 = vmatprep.subr.bf16.mxu0 %v7101_v52  ;;  %v7155_v33 = vld [vmem:[#allocation18 + $0x36c] ss:$16 sps:$4 sm:$0xff]   ;;  %v7171_v53 = vld [vmem:[#allocation18 + $0x3c8] ss:$16 sps:$4 sm:$0xff]   ;;  %v7176_v52 = vld [vmem:[#allocation18 + $0x3e4] ss:$16 sps:$4 sm:$0xff]  }
0x150f   : > { %v4311_v37 = vadd.f32 %v8741_v15, %v8738_v35  ;;  %v7203_v24 = vld [vmem:[#allocation20 + $0x334] ss:$8 sps:$4 sm:$0xff]   ;;  %v7201_v26 = vld [vmem:[#allocation20 + $0x330] ss:$8 sps:$4 sm:$0xff]   ;;  %v7209_v32 = vld [vmem:[#allocation20 + $0x344] ss:$8 sps:$4 sm:$0xff]  }
0x1510   : > { %4801 = vmatpush1.bf16.msra.mxu1 %v7150_v34  ;;  %v7207_v34 = vld [vmem:[#allocation20 + $0x340] ss:$8 sps:$4 sm:$0xff]  }
0x1511   : > { %4312 = vadd.xlane.f32.xlu0 %v4311_v37  ;;  %4824 = vmatpush1.bf16.msra.mxu0 %v7099_v48  ;;  %v7156_v37 = vld [vmem:[#allocation18 + $0x380] ss:$16 sps:$4 sm:$0xff]  }
0x1512   : > { %4825 = vmatprep.subr.bf16.mxu0 %v7107_v28  ;;  %4802 = vmatprep.subr.bf16.mxu1 %v7158_v36  ;;  %v7174_v48 = vld [vmem:[#allocation18 + $0x3e0] ss:$16 sps:$4 sm:$0xff]   ;;  %v7182_v28 = vld [vmem:[#allocation20 + $0x204] ss:$8 sps:$4 sm:$0xff]   ;;  %v7215_v36 = vld [vmem:[#allocation20 + $0x354] ss:$8 sps:$4 sm:$0xff]  }
0x1514   : > { %4803 = vmatpush1.bf16.msra.mxu1 %v7156_v37  ;;  %v7213_v37 = vld [vmem:[#allocation20 + $0x350] ss:$8 sps:$4 sm:$0xff]  }
0x1515   : > { %4826 = vmatpush1.bf16.msra.mxu0 %v7105_v55  ;;  %4804 = vmatprep.subr.bf16.mxu1 %v7164_v39  ;;  %v7221_v39 = vld [vmem:[#allocation20 + $0x364] ss:$8 sps:$4 sm:$0xff]  }
0x1516   : > { %4827 = vmatprep.subr.bf16.mxu0 %v7113_v59 }
0x1518   : > { %4805 = vmatpush1.bf16.msra.mxu1 %v7162_v45  ;;  %v7219_v45 = vld [vmem:[#allocation20 + $0x360] ss:$8 sps:$4 sm:$0xff]  }
0x1519   : > { %4828 = vmatpush1.bf16.msra.mxu0 %v7111_v58  ;;  %4806 = vmatprep.subr.bf16.mxu1 %v7170_v6  ;;  %v4335_v58 = vrot.slane %v6163_v60, %v8519_v41  ;;  %v7227_v6 = vld [vmem:[#allocation20 + $0x374] ss:$8 sps:$4 sm:$0xff]  }
0x151a   : > { %4829 = vmatprep.subr.bf16.mxu0 %v7119_v57  ;;  %v4355_v57 = vrot.slane %v6163_v60, %v8525_v44  ;;  %v7243_v60 = vld [vmem:[#allocation20 + $0x3a0] ss:$8 sps:$4 sm:$0xff]  }
0x151c   : > { %4807 = vmatpush1.bf16.msra.mxu1 %v7168_v46  ;;  %v4365_v5 = vrot.slane %v4355_v57, %v8522_v43  ;;  %v7222_v46 = vld [vmem:[#allocation20 + $0x270] ss:$8 sps:$4 sm:$0xff]   ;;  %v7251_v57 = vld [vmem:[#allocation20 + $0x3b4] ss:$8 sps:$4 sm:$0xff]  }
0x151d   : > { %4830 = vmatpush1.bf16.msra.mxu0 %v7117_v63  ;;  %4808 = vmatprep.subr.bf16.mxu1 %v7176_v52  ;;  %v4345_v63 = vrot.slane %v4335_v58, %v8516_v40  ;;  %v7233_v52 = vld [vmem:[#allocation20 + $0x384] ss:$8 sps:$4 sm:$0xff]  }
0x151e   : > { %4831 = vmatprep.subr.bf16.mxu0 %v7125_v1  ;;  %v7245_v58 = vld [vmem:[#allocation20 + $0x3a4] ss:$8 sps:$4 sm:$0xff]  }
0x1520   : > { %4809 = vmatpush1.bf16.msra.mxu1 %v7174_v48  ;;  %v7231_v48 = vld [vmem:[#allocation20 + $0x380] ss:$8 sps:$4 sm:$0xff]  }
0x1521   : > { %4832 = vmatpush1.bf16.msra.mxu0 %v7123_v4  ;;  %5298 = vmatprep.subr.bf16.mxu1 %v7182_v28  ;;  %v7239_v28 = vld [vmem:[#allocation20 + $0x394] ss:$8 sps:$4 sm:$0xff]  }
0x1522   : > { %4833 = vmatprep.subr.bf16.mxu0 %v7131_v9  ;;  %v4361_v9 = vrot.slane %v4351_v62, %v8522_v43  ;;  %v7246_v62 = vld [vmem:[#allocation20 + $0x2b0] ss:$8 sps:$4 sm:$0xff]  }
0x1525   : > { %4834 = vmatpush1.bf16.msra.mxu0 %v7129_v11 }
0x1526   : > { %4835 = vmatprep.subr.bf16.mxu0 %v7137_v8 }
0x1529   : > { %4836 = vmatpush1.bf16.msra.mxu0 %v7135_v13 }
0x152a   : > { %4837 = vmatprep.subr.bf16.mxu0 %v7143_v16  ;;  %v7183_v16 = vld [vmem:[#allocation20 + $0x300] ss:$8 sps:$4 sm:$0xff]  }
0x152d   : > { %4838 = vmatpush1.bf16.msra.mxu0 %v7141_v30  ;;  %v7191_v30 = vld [vmem:[#allocation20 + $0x314] ss:$8 sps:$4 sm:$0xff]  }
0x152e   : > { %4839 = vmatprep.subr.bf16.mxu0 %v7149_v25  ;;  %v7198_v25 = vld [vmem:[#allocation20 + $0x230] ss:$8 sps:$4 sm:$0xff]  }
0x1531   : > { %4840 = vmatpush1.bf16.msra.mxu0 %v7147_v27  ;;  %v7206_v27 = vld [vmem:[#allocation20 + $0x244] ss:$8 sps:$4 sm:$0xff]  }
0x1532   : > { %4841 = vmatprep.subr.bf16.mxu0 %v7155_v33  ;;  %v7204_v33 = vld [vmem:[#allocation20 + $0x240] ss:$8 sps:$4 sm:$0xff]  }
0x159e   : > { %v4313_v18 = vpop.xlane.xlu0 %4312 }
0x159f   : > { %v4314_v29 = vmul.f32 0.00390625, %v4313_v18  ;;  %v7186_v18 = vld [vmem:[#allocation20 + $0x210] ss:$8 sps:$4 sm:$0xff]  }
0x15a1   : > { %v8746_v19 = vsub.f32 %v8738_v35, %v4314_v29  ;;  %v8749_v20 = vsub.f32 %v8741_v15, %v4314_v29  ;;  %v7153_v35 = vld [vmem:[#allocation18 + $0x368] ss:$16 sps:$4 sm:$0xff]   ;;  %v7161_v15 = vld [vmem:[#allocation18 + $0x38c] ss:$16 sps:$4 sm:$0xff]  }
0x15a2   : > { %4842 = vmatpush1.bf16.msra.mxu0 %v7153_v35  ;;  %v7189_v29 = vld [vmem:[#allocation20 + $0x310] ss:$8 sps:$4 sm:$0xff]   ;;  %v7212_v35 = vld [vmem:[#allocation20 + $0x254] ss:$8 sps:$4 sm:$0xff]  }
0x15a3   : > { %v4317_v21 = vmul.f32 %v8746_v19, %v8746_v19  ;;  %v4318_v22 = vmul.f32 %v8749_v20, %v8749_v20  ;;  %4843 = vmatprep.subr.bf16.mxu0 %v7161_v15  ;;  %v7210_v15 = vld [vmem:[#allocation20 + $0x250] ss:$8 sps:$4 sm:$0xff]  }
0x15a5   : > { %v4319_v23 = vadd.f32 %v4318_v22, %v4317_v21  ;;  %v7192_v21 = vld [vmem:[#allocation20 + $0x220] ss:$8 sps:$4 sm:$0xff]  }
0x15a6   : > { %4844 = vmatpush1.bf16.msra.mxu0 %v7159_v31  ;;  %v7195_v22 = vld [vmem:[#allocation20 + $0x320] ss:$8 sps:$4 sm:$0xff]   ;;  %v7218_v31 = vld [vmem:[#allocation20 + $0x264] ss:$8 sps:$4 sm:$0xff]  }
0x15a7   : > { %4320 = vadd.xlane.f32.xlu1 %v4319_v23  ;;  %4845 = vmatprep.subr.bf16.mxu0 %v7167_v42  ;;  %v7200_v23 = vld [vmem:[#allocation20 + $0x234] ss:$8 sps:$4 sm:$0xff]   ;;  %v7216_v42 = vld [vmem:[#allocation20 + $0x260] ss:$8 sps:$4 sm:$0xff]  }
0x15aa   : > { %4846 = vmatpush1.bf16.msra.mxu0 %v7165_v0  ;;  %v7224_v0 = vld [vmem:[#allocation20 + $0x274] ss:$8 sps:$4 sm:$0xff]  }
0x15ab   : > { %4847 = vmatprep.subr.bf16.mxu0 %v7173_v47  ;;  %v7230_v47 = vld [vmem:[#allocation20 + $0x284] ss:$8 sps:$4 sm:$0xff]  }
0x15ae   : > { %4848 = vmatpush1.bf16.msra.mxu0 %v7171_v53  ;;  %v7225_v53 = vld [vmem:[#allocation20 + $0x370] ss:$8 sps:$4 sm:$0xff]  }
0x15af   : > { %4849 = vmatprep.subr.bf16.mxu0 %v7179_v49  ;;  %v7228_v49 = vld [vmem:[#allocation20 + $0x280] ss:$8 sps:$4 sm:$0xff]  }
0x15b2   : > { %4850 = vmatpush1.bf16.msra.mxu0 %v7177_v50  ;;  %v7236_v50 = vld [vmem:[#allocation20 + $0x294] ss:$8 sps:$4 sm:$0xff]  }
0x15b3   : > { %5339 = vmatprep.subr.bf16.mxu0 %v7185_v54  ;;  %v7234_v54 = vld [vmem:[#allocation20 + $0x290] ss:$8 sps:$4 sm:$0xff]  }
0x1634   : > { %v4321_v55 = vpop.xlane.xlu1 %4320 }
0x1635   : > { %v4322_v56 = vmul.f32 0.00390625, %v4321_v55  ;;  %v7237_v55 = vld [vmem:[#allocation20 + $0x390] ss:$8 sps:$4 sm:$0xff]  }
0x1637   : > { %v4323_v59 = vadd.f32 1e-12, %v4322_v56  ;;  %v7240_v56 = vld [vmem:[#allocation20 + $0x2a0] ss:$8 sps:$4 sm:$0xff]  }
0x1639   : > { %7306 = vrsqrt.f32 %v4323_v59  ;;  %v7242_v59 = vld [vmem:[#allocation20 + $0x2a4] ss:$8 sps:$4 sm:$0xff]  }
0x1643   : > { %v7307_v1 = vpop.eup %7306 }
0x1644   : > { %v4325_v3 = vmul.f32 %v7307_v1, %v8746_v19  ;;  %v4326_v4 = vmul.f32 %v7307_v1, %v8749_v20  ;;  %v7194_v19 = vld [vmem:[#allocation20 + $0x224] ss:$8 sps:$4 sm:$0xff]  }
0x1645   : > { %v7197_v20 = vld [vmem:[#allocation20 + $0x324] ss:$8 sps:$4 sm:$0xff]  }
0x1646   : > { %v4347_v10 = vmul.f32 %v4345_v63, %v4326_v4  ;;  %v4346_v11 = vmul.f32 %v4341_v51, %v4325_v3  ;;  %v7249_v63 = vld [vmem:[#allocation20 + $0x3b0] ss:$8 sps:$4 sm:$0xff]   ;;  %v7254_v51 = vld [vmem:[#allocation20 + $0x2c4] ss:$8 sps:$4 sm:$0xff]   ;;  %v7252_v3 = vld [vmem:[#allocation20 + $0x2c0] ss:$8 sps:$4 sm:$0xff]  }
0x1647   : > { %v7257_v1 = vld [vmem:[#allocation20 + $0x3c4] ss:$8 sps:$4 sm:$0xff]   ;;  %v7255_v4 = vld [vmem:[#allocation20 + $0x3c0] ss:$8 sps:$4 sm:$0xff]  }
0x1648   : > { %v8768_v7 = vadd.f32 %v4365_v5, %v4347_v10  ;;  %v8770_v8 = vadd.f32 %v4361_v9, %v4346_v11  ;;  %v7260_v5 = vld [vmem:[#allocation20 + $0x2d4] ss:$8 sps:$4 sm:$0xff]   ;;  %v7258_v10 = vld [vmem:[#allocation20 + $0x2d0] ss:$8 sps:$4 sm:$0xff]  }
0x1649   : > { %v7263_v9 = vld [vmem:[#allocation20 + $0x3d4] ss:$8 sps:$4 sm:$0xff]   ;;  %v7261_v11 = vld [vmem:[#allocation20 + $0x3d0] ss:$8 sps:$4 sm:$0xff]  }
0x164a   : > { %v4369_v12 = vpack.c.bf16 %v8768_v7, %v8768_v7  ;;  %v4368_v13 = vpack.c.bf16 %v8770_v8, %v8770_v8 }
0x164c   : > { %4810 = vmatprep.mubr.bf16.mxu1 %v4369_v12  ;;  %4851 = vmatprep.mubr.bf16.mxu0 %v4369_v12  ;;  %v7266_v12 = vld [vmem:[#allocation20 + $0x2e4] ss:$8 sps:$4 sm:$0xff]  }
0x164d   : > { %4811 = vmatmul.mubr.bf16.vlgmr.msra.gmra.mrb[52].mxu1 %v4368_v13  ;;  %4852 = vmatmul.mubr.bf16.vlgmr.msra.gmra.mrb[28].mxu0 %v4368_v13  ;;  %v7269_v13 = vld [vmem:[#allocation20 + $0x3e4] ss:$8 sps:$4 sm:$0xff]  }
0x164e   : > { %5299 = vmatpush1.bf16.msra.mxu1 %v7180_v14  ;;  %5340 = vmatpush1.bf16.msra.mxu0 %v7183_v16  ;;  %v7264_v14 = vld [vmem:[#allocation20 + $0x2e0] ss:$8 sps:$4 sm:$0xff]  }
0x164f   : > { %5300 = vmatprep.subr.bf16.mxu1 %v7188_v17  ;;  %5341 = vmatprep.subr.bf16.mxu0 %v7191_v30  ;;  %v7267_v16 = vld [vmem:[#allocation20 + $0x3e0] ss:$8 sps:$4 sm:$0xff]   ;;  %v7272_v17 = vld [vmem:[#allocation20 + $0x2f4] ss:$8 sps:$4 sm:$0xff]  }
0x1650   : > { %v7275_v30 = vld [vmem:[#allocation20 + $0x3f4] ss:$8 sps:$4 sm:$0xff]  }
0x1652   : > { %5301 = vmatpush1.bf16.msra.mxu1 %v7186_v18  ;;  %5342 = vmatpush1.bf16.msra.mxu0 %v7189_v29  ;;  %v7270_v18 = vld [vmem:[#allocation20 + $0x2f0] ss:$8 sps:$4 sm:$0xff]  }
0x1653   : > { %5302 = vmatprep.subr.bf16.mxu1 %v7194_v19  ;;  %5343 = vmatprep.subr.bf16.mxu0 %v7197_v20  ;;  %v7273_v29 = vld [vmem:[#allocation20 + $0x3f0] ss:$8 sps:$4 sm:$0xff]  }
0x1654   : > { %v6164_v19 = vld [vmem:[%s8961_s12 + $0x4] sm:$0xf] }
0x1655   : > { %v4441_v20 = vrot.slane %v6164_v19, %v8516_v40 }
0x1656   : > { %5303 = vmatpush1.bf16.msra.mxu1 %v7192_v21  ;;  %5344 = vmatpush1.bf16.msra.mxu0 %v7195_v22  ;;  %v4449_v21 = vrot.slane %v6164_v19, %v8519_v41  ;;  %v4445_v22 = vrot.slane %v6164_v19, %v8522_v43 }
0x1657   : > { %5304 = vmatprep.subr.bf16.mxu1 %v7200_v23  ;;  %5345 = vmatprep.subr.bf16.mxu0 %v7203_v24  ;;  %v4453_v23 = vrot.slane %v6164_v19, %v8525_v44 }
0x165a   : > { %5305 = vmatpush1.bf16.msra.mxu1 %v7198_v25  ;;  %5346 = vmatpush1.bf16.msra.mxu0 %v7201_v26 }
0x165b   : > { %5306 = vmatprep.subr.bf16.mxu1 %v7206_v27  ;;  %5347 = vmatprep.subr.bf16.mxu0 %v7209_v32 }
0x165e   : > { %5307 = vmatpush1.bf16.msra.mxu1 %v7204_v33  ;;  %5348 = vmatpush1.bf16.msra.mxu0 %v7207_v34 }
0x165f   : > { %5308 = vmatprep.subr.bf16.mxu1 %v7212_v35  ;;  %5349 = vmatprep.subr.bf16.mxu0 %v7215_v36 }
0x1662   : > { %5309 = vmatpush1.bf16.msra.mxu1 %v7210_v15  ;;  %5350 = vmatpush1.bf16.msra.mxu0 %v7213_v37 }
0x1663   : > { %5310 = vmatprep.subr.bf16.mxu1 %v7218_v31  ;;  %5351 = vmatprep.subr.bf16.mxu0 %v7221_v39 }
0x1666   : > { %5311 = vmatpush1.bf16.msra.mxu1 %v7216_v42  ;;  %5352 = vmatpush1.bf16.msra.mxu0 %v7219_v45 }
0x1667   : > { %5312 = vmatprep.subr.bf16.mxu1 %v7224_v0  ;;  %5353 = vmatprep.subr.bf16.mxu0 %v7227_v6 }
0x166a   : > { %5313 = vmatpush1.bf16.msra.mxu1 %v7222_v46  ;;  %5354 = vmatpush1.bf16.msra.mxu0 %v7225_v53 }
0x166b   : > { %5314 = vmatprep.subr.bf16.mxu1 %v7230_v47  ;;  %5355 = vmatprep.subr.bf16.mxu0 %v7233_v52 }
0x166e   : > { %5315 = vmatpush1.bf16.msra.mxu1 %v7228_v49  ;;  %5356 = vmatpush1.bf16.msra.mxu0 %v7231_v48 }
0x166f   : > { %5316 = vmatprep.subr.bf16.mxu1 %v7236_v50  ;;  %5357 = vmatprep.subr.bf16.mxu0 %v7239_v28 }
0x1672   : > { %5317 = vmatpush1.bf16.msra.mxu1 %v7234_v54  ;;  %5358 = vmatpush1.bf16.msra.mxu0 %v7237_v55 }
0x1673   : > { %5318 = vmatprep.subr.bf16.mxu1 %v7242_v59  ;;  %5359 = vmatprep.subr.bf16.mxu0 %v7245_v58 }
0x1676   : > { %5319 = vmatpush1.bf16.msra.mxu1 %v7240_v56  ;;  %5360 = vmatpush1.bf16.msra.mxu0 %v7243_v60 }
0x1677   : > { %5320 = vmatprep.subr.bf16.mxu1 %v7248_v61  ;;  %5361 = vmatprep.subr.bf16.mxu0 %v7251_v57 }
0x167a   : > { %5321 = vmatpush1.bf16.msra.mxu1 %v7246_v62  ;;  %5362 = vmatpush1.bf16.msra.mxu0 %v7249_v63 }
0x167b   : > { %5322 = vmatprep.subr.bf16.mxu1 %v7254_v51  ;;  %5363 = vmatprep.subr.bf16.mxu0 %v7257_v1 }
0x167e   : > { %5323 = vmatpush1.bf16.msra.mxu1 %v7252_v3  ;;  %5364 = vmatpush1.bf16.msra.mxu0 %v7255_v4 }
0x167f   : > { %5324 = vmatprep.subr.bf16.mxu1 %v7260_v5  ;;  %5365 = vmatprep.subr.bf16.mxu0 %v7263_v9 }
0x1682   : > { %5325 = vmatpush1.bf16.msra.mxu1 %v7258_v10  ;;  %5366 = vmatpush1.bf16.msra.mxu0 %v7261_v11 }
0x1683   : > { %5326 = vmatprep.subr.bf16.mxu1 %v7266_v12  ;;  %5367 = vmatprep.subr.bf16.mxu0 %v7269_v13 }
0x1686   : > { %5327 = vmatpush1.bf16.msra.mxu1 %v7264_v14  ;;  %5368 = vmatpush1.bf16.msra.mxu0 %v7267_v16 }
0x1687   : > { %5328 = vmatprep.subr.bf16.mxu1 %v7272_v17  ;;  %5369 = vmatprep.subr.bf16.mxu0 %v7275_v30 }
0x168a   : > { %5329 = vmatpush1.bf16.msra.mxu1 %v7270_v18  ;;  %5370 = vmatpush1.bf16.msra.mxu0 %v7273_v29 }
0x1720   : > { %v4812_v24 = vpop.f32.mrb[52].mxu1  ;;  %v4853_v25 = vpop.f32.mrb[28].mxu0 }
0x1721   : > { %v4813_v26 = vadd.f32 %v4812_v24, %v4441_v20  ;;  %v4854_v27 = vadd.f32 %v4853_v25, %v4449_v21  ;;  %v4814_v32 = vpop.f32.mrb[53].mxu1  ;;  %v4855_v33 = vpop.f32.mrb[29].mxu0  ;;  %v6229_v20 = vld [vmem:[%s8962_s15 + $0x2] sm:$0x3] }
0x1722   : > { %v4815_v34 = vadd.f32 %v4814_v32, %v4445_v22  ;;  %v4856_v35 = vadd.f32 %v4855_v33, %v4453_v23  ;;  %v4816_v36 = vpop.f32.mrb[54].mxu1  ;;  %v4857_v15 = vpop.f32.mrb[30].mxu0  ;;  %v4971_v21 = vrot.slane %v6229_v20, %v8516_v40  ;;  %v4975_v22 = vrot.slane %v6229_v20, %v8522_v43 }
0x1723   : > { %v4864_v37 = vmul.f32 0.044715, %v4813_v26  ;;  %v4866_v31 = vmul.f32 0.044715, %v4854_v27  ;;  %v4817_v39 = vpop.f32.mrb[55].mxu1  ;;  %v4858_v42 = vpop.f32.mrb[31].mxu0 }
0x1724   : > { %v4865_v45 = vmul.f32 0.044715, %v4815_v34  ;;  %v4867_v0 = vmul.f32 0.044715, %v4856_v35  ;;  %v4860_v63 = vmul.f32 0.5, %v4813_v26  ;;  %v4861_v3 = vmul.f32 0.5, %v4815_v34 }
0x1725   : > { %v4868_v6 = vmul.f32 %v4864_v37, %v4813_v26  ;;  %v4870_v46 = vmul.f32 %v4866_v31, %v4854_v27  ;;  %v4863_v9 = vmul.f32 0.5, %v4856_v35  ;;  %v4862_v13 = vmul.f32 0.5, %v4854_v27 }
0x1726   : > { %v4869_v53 = vmul.f32 %v4865_v45, %v4815_v34  ;;  %v4871_v47 = vmul.f32 %v4867_v0, %v4856_v35 }
0x1727   : > { %v4872_v52 = vmul.f32 %v4868_v6, %v4813_v26  ;;  %v4874_v49 = vmul.f32 %v4870_v46, %v4854_v27 }
0x1728   : > { %v4873_v48 = vmul.f32 %v4869_v53, %v4815_v34  ;;  %v4875_v50 = vmul.f32 %v4871_v47, %v4856_v35 }
0x1729   : > { %v4876_v28 = vadd.f32 %v4872_v52, %v4813_v26  ;;  %v4878_v54 = vadd.f32 %v4874_v49, %v4854_v27 }
0x172a   : > { %v4877_v55 = vadd.f32 %v4873_v48, %v4815_v34  ;;  %v4879_v56 = vadd.f32 %v4875_v50, %v4856_v35 }
0x172b   : > { %v4880_v59 = vmul.f32 0.7978846, %v4876_v28  ;;  %v4882_v61 = vmul.f32 0.7978846, %v4878_v54 }
0x172c   : > { %v4881_v60 = vmul.f32 0.7978846, %v4877_v55  ;;  %v4883_v58 = vmul.f32 0.7978846, %v4879_v56 }
0x172d   : > { %7308 = vtanh.f32 %v4880_v59 }
0x172e   : > { %7310 = vtanh.f32 %v4881_v60 }
0x172f   : > { %7312 = vtanh.f32 %v4883_v58 }
0x1730   : > { %7314 = vtanh.f32 %v4882_v61 }
0x1737   : > { %v7309_v57 = vpop.eup %7308 }
0x1738   : > { %v7311_v62 = vpop.eup %7310  ;;  %v4888_v51 = vadd.f32 1.0, %v7309_v57 }
0x1739   : > { %v7313_v1 = vpop.eup %7312  ;;  %v4889_v4 = vadd.f32 1.0, %v7311_v62 }
0x173a   : > { %v7315_v5 = vpop.eup %7314  ;;  %v4891_v10 = vadd.f32 1.0, %v7313_v1  ;;  %v4892_v11 = vmul.f32 %v4888_v51, %v4860_v63 }
0x173b   : > { %v4893_v12 = vmul.f32 %v4889_v4, %v4861_v3  ;;  %v4890_v14 = vadd.f32 1.0, %v7315_v5 }
0x173c   : > { %v4895_v16 = vmul.f32 %v4891_v10, %v4863_v9  ;;  %v4896_v29 = vpack.c.bf16 %v4892_v11, %v4892_v11 }
0x173d   : > { %v4897_v17 = vpack.c.bf16 %v4893_v12, %v4893_v12  ;;  %v4894_v30 = vmul.f32 %v4890_v14, %v4862_v13 }
0x173e   : > { %v4899_v18 = vpack.c.bf16 %v4895_v16, %v4895_v16 }
0x173f   : > { %5330 = vmatprep.mubr.bf16.mxu1 %v4897_v17  ;;  %v4898_v19 = vpack.c.bf16 %v4894_v30, %v4894_v30 }
0x1740   : > { %5371 = vmatprep.mubr.bf16.mxu0 %v4899_v18  ;;  %5331 = vmatmul.mubr.bf16.vlgmr.msra.gmra.mrb[56].mxu1 %v4896_v29 }
0x1741   : > { %5372 = vmatmul.mubr.bf16.vlgmr.msra.gmra.mrb[32].mxu0 %v4898_v19 }
0x1813   : > { %v5332_v23 = vpop.f32.mrb[56].mxu1 }
0x1814   : > { %v5333_v24 = vadd.f32 %v5332_v23, %v4971_v21  ;;  %v5373_v25 = vpop.f32.mrb[32].mxu0  ;;  %v5334_v26 = vpop.f32.mrb[57].mxu1 }
0x1815   : > { %v5335_v27 = vadd.f32 %v5334_v26, %v4975_v22  ;;  %v5375_v32 = vpop.f32.mrb[33].mxu0  ;;  %v5336_v33 = vpop.f32.mrb[58].mxu1 }
0x1816   : > { %v5374_v34 = vadd.f32 %v5373_v25, %v5333_v24  ;;  %v5377_v35 = vpop.f32.mrb[34].mxu0  ;;  %v5337_v36 = vpop.f32.mrb[59].mxu1 }
0x1817   : > { %v5376_v15 = vadd.f32 %v5375_v32, %v5335_v27  ;;  %v5378_v37 = vpop.f32.mrb[35].mxu0  ;;  %v7869_v32 = vmov 1966171168  }
0x1818   : > { %v5380_v31 = vadd.f32 %v5374_v34, %v8770_v8  ;;  %v6294_v8 = vld [vmem:[%s8963_s30 + $0x4] sm:$0xf]  ;;  %v5482_v33 = vunpack.c.l.s4 %v7869_v32 }
0x1819   : > { %v5381_v39 = vadd.f32 %v5376_v15, %v8768_v7  ;;  %v5404_v7 = vrot.slane %v6294_v8, %v8516_v40  ;;  %v5408_v28 = vrot.slane %v6294_v8, %v8519_v41  ;;  %v5424_v54 = vrot.slane %v6294_v8, %v8522_v43 }
0x181a   : > { %v5428_v55 = vrot.slane %v6294_v8, %v8525_v44  ;;  %v5483_v34 = vunpack.c.0.s8 %v5482_v33 }
0x181b   : > { %v5384_v42 = vadd.f32 %v5381_v39, %v5380_v31  ;;  %v5414_v56 = vrot.slane %v5404_v7, %v8516_v40  ;;  %v5418_v59 = vrot.slane %v5408_v28, %v8516_v40  ;;  %v5434_v57 = vrot.slane %v5424_v54, %v8522_v43 }
0x181c   : > { %v5438_v62 = vrot.slane %v5428_v55, %v8522_v43  ;;  %v5486_v37 = vsub.s32 %v5483_v34, %v8513_v38 }
0x181d   : > { %5385 = vadd.xlane.f32.xlu0 %v5384_v42 }
0x18aa   : > { %v5386_v45 = vpop.xlane.xlu0 %5385 }
0x18ab   : > { %v5387_v0 = vmul.f32 0.00390625, %v5386_v45 }
0x18ad   : > { %v5388_v6 = vsub.f32 %v5380_v31, %v5387_v0  ;;  %v5389_v46 = vsub.f32 %v5381_v39, %v5387_v0 }
0x18af   : > { %v5390_v53 = vmul.f32 %v5388_v6, %v5388_v6  ;;  %v5391_v47 = vmul.f32 %v5389_v46, %v5389_v46 }
0x18b1   : > { %v5392_v52 = vadd.f32 %v5391_v47, %v5390_v53 }
0x18b3   : > { %5393 = vadd.xlane.f32.xlu1 %v5392_v52 }
0x1940   : > { %v5394_v49 = vpop.xlane.xlu1 %5393 }
0x1941   : > { %v5395_v48 = vmul.f32 0.00390625, %v5394_v49 }
0x1943   : > { %v5396_v50 = vadd.f32 1e-12, %v5395_v48 }
0x1945   : > { %7316 = vrsqrt.f32 %v5396_v50 }
0x194f   : > { %v7317_v60 = vpop.eup %7316 }
0x1950   : > { %v5398_v58 = vmul.f32 %v7317_v60, %v5388_v6  ;;  %v5399_v61 = vmul.f32 %v7317_v60, %v5389_v46 }
0x1952   : > { %v5419_v63 = vmul.f32 %v5414_v56, %v5398_v58  ;;  %v5420_v51 = vmul.f32 %v5418_v59, %v5399_v61 }
0x1954   : > { %v5439_v1 = vadd.f32 %v5434_v57, %v5419_v63  ;;  %v5440_v3 = vadd.f32 %v5438_v62, %v5420_v51 }
0x1956   : > { %v5443_v41 = vrot.slane %v5439_v1, 1  ;;  %v5444_v4 = vrot.slane %v5440_v3, 1 }
0x1958   : > { %v5448_v5 = vsel %vm5447_vm5, %v5443_v41, 0.0  ;;  %v5455_v44 = vsel %vm5447_vm5, %v5444_v4, 0.0 }
0x1959   : > { %v5449_v9 = vrot.slane %v5448_v5, 4  ;;  %v5456_v10 = vrot.slane %v5455_v44, 4 }
0x195b   : > { %v5450_v11 = vadd.f32 %v5449_v9, %v5448_v5  ;;  %v5457_v40 = vadd.f32 %v5456_v10, %v5455_v44 }
0x195d   : > { %v5451_v12 = vrot.slane %v5450_v11, 2  ;;  %v5458_v13 = vrot.slane %v5457_v40, 2 }
0x195f   : > { %v5452_v14 = vadd.f32 %v5451_v12, %v5450_v11  ;;  %v5459_v16 = vadd.f32 %v5458_v13, %v5457_v40 }
0x1961   : > { %v5453_v17 = vrot.slane %v5452_v14, 1  ;;  %v5460_v30 = vrot.slane %v5459_v16, 1 }
0x1963   : > { %v5454_v43 = vadd.f32 %v5453_v17, %v5452_v14  ;;  %v5461_v18 = vadd.f32 %v5460_v30, %v5459_v16 }
0x1965   : > { %v5462_v29 = vmul.f32 %v5454_v43, %v5454_v43  ;;  %v5463_v19 = vmul.f32 %v5461_v18, %v5461_v18 }
0x1967   : > { %v5464_v20 = vadd.f32 %v5463_v19, %v5462_v29 }
0x1969   : > { %5465 = vadd.xlane.f32.xlu0 %v5464_v20 }
0x19f6   : > { %v5466_v21 = vpop.xlane.xlu0 %5465 }
0x19f7   : > { %7318 = vrsqrt.f32 %v5466_v21  ;;  %vm5469_vm6 = vcmp.eq.f32.partialorder %v5466_v21, inf  ;;  %v5472_v24 = vand.u32 2147483648, %v5466_v21  ;;  %vm5471_vm7 = vcmp.eq.f32.partialorder %v5466_v21, 0.0 }
0x1a01   : > { %v7319_v22 = vpop.eup %7318 }
0x1a02   : > { %v5468_v23 = vmul.f32 %v7319_v22, %v5466_v21 }
0x1a04   : > { %v5470_v25 = vsel %vm5469_vm6, %v5466_v21, %v5468_v23 }
0x1a05   : > { %v5473_v26 = vsel %vm5471_vm7, %v5472_v24, %v5470_v25 }
0x1a06   : > { %v5474_v27 = vmax.f32 %v5473_v26, 1e-12 }
0x1a08   : > { %7320 = vrcp.f32 %v5474_v27 }
0x1a12   : > { %v7321_v35 = vpop.eup %7320 }
0x1a13   : > { %v5476_v36 = vmul.f32 %v7321_v35, %v5454_v43  ;;  %v5477_v15 = vmul.f32 %v7321_v35, %v5461_v18 }
0x1a15   : > { %v5480_v31 = vcombine.low %v5476_v36, %v5477_v15 }
0x1a17   : > { %v5487_v39 = vrot.slane %v5480_v31, %v5486_v37 }
0x1a19   : > { %v5494_v42 = vrot.slane %v5487_v39, %v5486_v37 }
0x1a1b   : > { %5496 = vst.msk [vmem:[%s530_s25] sm:$0x3] %vm8433_vm0, %v5494_v42 }
0x1a1c   : > { %7753 = shalt.err (!%p7750_p8)
}
0x1a1d   : > { %s7754_s20 = scalar_lea.hbm %s8808_s7, 32  ;;  %s7758_s3 = scalar_lea.hbm %s8966_s0, 64 }
0x1a1e   : > { %p7755_p9 = scmp.ne.s32.totalorder %s8808_s7, %s7754_s20  ;;  %p7759_p0 = scmp.lt.u32.totalorder %s8808_s7, %s8966_s0 }
0x1a1f   : > { %p7760_p4 = scmp.lt.u32.totalorder %s7758_s3, %s7754_s20  ;;  %p7762_p5 = scmp.lt.u32.totalorder %s7754_s20, %s8808_s7 }
0x1a20   : > { %p7756_p10 = pnand %p7755_p9, %p8968_p11 }
0x1a21   : > { %p7761_p7 = por %p7760_p4, %p7759_p0 }
0x1a22   : > { %p7757_p1 = pneg %p7756_p10 }
0x1a23   : > { %p7763_p12 = por %p7762_p5, %p7761_p7 }
0x1a25   : > { %p7764_p13 = pnand %p7763_p12, %p7757_p1 }
0x1a27   : > { %7767 = shalt.err (!%p7764_p13)
}
0x1a28   : > { %6401 = dma.vmem_to_hbm [thread:$0]  (%p8968_p11), %s8810_s16, 32, %s8808_s7, %s5498_s2  }
0x1a29 PF: > { %s8969_s4 = sld [smem:[#allocation47_spill]]  ;;  %s8970_s10 = sld [smem:[#allocation44_spill]] }
0x1a2a   : > { %s8971_s9 = sld [smem:[#allocation51_spill]] }
0x1a2f   : > { %p6443_p2 = scmp.ge.s32.totalorder %s8969_s4, 2  ;;  %s5524_s29 = sand.u32 1, %s8970_s10  }
0x1a30   : > { %p8972_p3 = scmp.ne.s32.totalorder %s8971_s9, 0  ;;  %s5525_s26 = scalar_lea.sflag [#allocation11], %s5524_s29 }
0x1a32   : > { %p6426_p6 = pnand %p6443_p2, %p8972_p3 }
0x1a34   : > { %7819 = dma.done.wait (!%p6426_p6), %s5525_s26, 32  }
0x1a35   : > { %7821 = vsyncadd (!%p6426_p6), %s5525_s26, 4294967264  ;;  %s8973_s25 = sld [smem:[#allocation48_spill]]  ;;  %s8974_s1 = sld [smem:[#allocation45_spill]] }
0x1a36   : > { %s8975_s23 = sld [smem:[#allocation46_spill]]  ;;  %s8976_s24 = sld [smem:[#allocation49_spill]] }
0x1a3b   : > { %p39_p8 = scmp.ge.s32.totalorder %s8973_s25, 4  }
0x1a3d   :  { %41 = sbr.rel (!%p39_p8) target bundleno = 42 (0x2a), region = 187 }
0x1a44   :  { %5530 = vsyncpa [#allocation10], 1 }
0x1a45   :  { %5532 = vsyncpa [#allocation10 + $0x1], 1 }
0x1a46   :  { %5533 = vsyncpa [#allocation13], 1 }
0x1a47   :  { %5534 = vsyncpa [#allocation16], 1 }
0x1a48   :  { %5535 = vsyncpa [#allocation19], 1 }
0x1a49   :  { %5536 = vsyncpa [#allocation11], 1 }
0x1a4a   :  { %5538 = vsyncpa [#allocation11 + $0x1], 1 }
0x1a4b   :  { %5539 = vsyncmov [#allocation4] }
0x1a4e   :  { %s5540_s17 = vpop.sfrf %5539 }
0x1a4f   :  { %p6300_p11 = scmp.ne.s32.totalorder %s5540_s17, 0 }
0x1a51   :  { %5544 = shalt.err (%p6300_p11)  }
0x1a52   :  { %5546 = vsyncmov [#allocation4 + $0x1] }
0x1a55   :  { %s5547_s16 = vpop.sfrf %5546 }
0x1a56   :  { %p6301_p9 = scmp.ne.s32.totalorder %s5547_s16, 0 }
0x1a58   :  { %5551 = shalt.err (%p6301_p9)  }
0x1a59   :  { %5553 = vsyncmov [#allocation4 + $0x2] }
0x1a5c   :  { %s5554_s27 = vpop.sfrf %5553 }
0x1a5d   :  { %p6302_p10 = scmp.ne.s32.totalorder %s5554_s27, 0 }
0x1a5f   :  { %5558 = shalt.err (%p6302_p10)  }
0x1a60   :  { %5560 = vsyncmov [#allocation4 + $0x3] }
0x1a63   :  { %s5561_s5 = vpop.sfrf %5560 }
0x1a64   :  { %p6303_p1 = scmp.ne.s32.totalorder %s5561_s5, 0 }
0x1a66   :  { %5565 = shalt.err (%p6303_p1)  }
0x1a67   :  { %5567 = vsyncmov [#allocation4 + $0x4] }
0x1a6a   :  { %s5568_s8 = vpop.sfrf %5567 }
0x1a6b   :  { %p6304_p0 = scmp.ne.s32.totalorder %s5568_s8, 0 }
0x1a6d   :  { %5572 = shalt.err (%p6304_p0)  }
0x1a6e   :  { %5574 = vsyncmov [#allocation4 + $0x5] }
0x1a71   :  { %s5575_s11 = vpop.sfrf %5574 }
0x1a72   :  { %p6305_p4 = scmp.ne.s32.totalorder %s5575_s11, 0 }
0x1a74   :  { %5579 = shalt.err (%p6305_p4)  }
0x1a75   :  { %5581 = vsyncmov [#allocation4 + $0x6] }
0x1a78   :  { %s5582_s21 = vpop.sfrf %5581 }
0x1a79   :  { %p6306_p7 = scmp.ne.s32.totalorder %s5582_s21, 0 }
0x1a7b   :  { %5586 = shalt.err (%p6306_p7)  }
0x1a7c   :  { %5588 = vsyncmov [#allocation4 + $0x7] }
0x1a7f   :  { %s5589_s12 = vpop.sfrf %5588 }
0x1a80   :  { %p6307_p5 = scmp.ne.s32.totalorder %s5589_s12, 0 }
0x1a82   :  { %5593 = shalt.err (%p6307_p5)  }

</bundles_post_ra>
